<compile_context>
chip_gen: v5e
topology: v5e:2x2
jax: 0.10.0
libtpu: 0.0.40
codegen_flags: <defaults>
</compile_context>

<pallas_src>
import functools
import math

import jax
import jax.numpy as jnp
from jax.experimental import pallas as pl
from jax.experimental.pallas import tpu as pltpu


def _layernorm(x, w, b, eps=1e-5):
    mu = jnp.mean(x, axis=-1, keepdims=True)
    var = jnp.mean((x - mu) ** 2, axis=-1, keepdims=True)
    return (x - mu) * jax.lax.rsqrt(var + eps) * w + b


def _mm(a, w_bf16):
    # bf16 MXU operands, f32 accumulation.
    return jnp.dot(a.astype(jnp.bfloat16), w_bf16, preferred_element_type=jnp.float32)


# ---------------------------------------------------------------------------
# Pallas kernel: ONE TransformerEncoder layer per grid step (layer streaming),
# fused over the three columns [user, pos_item, neg_item]; final grid step also
# computes the fc scores.
# ---------------------------------------------------------------------------
def transformer_layer_kernel(
    u_ref, pos_ref, neg_ref,                   # [S, D] f32 each (grid-invariant)
    inw_ref, inb_ref,                          # [1, D, 3D] bf16, [1, 1, 3D] f32
    outw_ref, outb_ref,                        # [1, D, D] bf16,  [1, 1, D] f32
    ln1w_ref, ln1b_ref,                        # [1, 1, D] f32 x2
    l1w_ref, l1b_ref,                          # [1, D, F] bf16,  [1, 1, F] f32
    l2w_ref, l2b_ref,                          # [1, F, D] bf16,  [1, 1, D] f32
    ln2w_ref, ln2b_ref,                        # [1, 1, D] f32 x2
    fcw_ref, fcb_ref,                          # [1, D] f32, [1, 1] f32
    score_ref,                                 # out: [2, S] f32 (row0=pos, row1=neg)
    x_ref,                                     # scratch: [3S, D] f32, persists over layers
    *, nhead, ff_chunk):
    l = pl.program_id(0)
    S, D = u_ref.shape
    C = 3                                      # columns: 0=user, 1=pos item, 2=neg item
    CS = C * S
    CH = C * nhead
    hd = D // nhead
    scale = 1.0 / math.sqrt(hd)
    F = l1w_ref.shape[-1]

    # Layer 0: build the fused [3S, D] activation slab from the embeddings.
    @pl.when(l == 0)
    def _():
        x_ref[0 * S:1 * S, :] = u_ref[...]
        x_ref[1 * S:2 * S, :] = pos_ref[...]
        x_ref[2 * S:3 * S, :] = neg_ref[...]

    x = x_ref[...]                                              # [CS, D] f32

    W_in, b_in = inw_ref[0], inb_ref[0]
    W_out, b_out = outw_ref[0], outb_ref[0]
    ln1w, ln1b = ln1w_ref[0], ln1b_ref[0]
    ln2w, ln2b = ln2w_ref[0], ln2b_ref[0]

    # ---- self-attention (heads batched, scale folded into q) ----
    qkv = _mm(x, W_in) + b_in                                   # [CS, 3D] f32

    def split_heads(slab):                                      # [CS, D] -> [C*H, S, hd]
        t = slab.reshape(C, S, nhead, hd)
        return jnp.swapaxes(t, 1, 2).reshape(CH, S, hd)

    q = split_heads(qkv[:, 0 * D:1 * D] * scale)
    k = split_heads(qkv[:, 1 * D:2 * D])
    v = split_heads(qkv[:, 2 * D:3 * D])

    s = jnp.einsum('bsk,btk->bst', q, k, preferred_element_type=jnp.float32)
    s = s - jnp.max(s, axis=-1, keepdims=True)
    p = jnp.exp(s)
    p = p * pl.reciprocal(jnp.sum(p, axis=-1, keepdims=True), approx=True)
    attn = jnp.einsum('bst,btk->bsk', p, v, preferred_element_type=jnp.float32)
    attn = jnp.swapaxes(attn.reshape(C, nhead, S, hd), 1, 2).reshape(CS, D)
    attn = _mm(attn, W_out) + b_out

    y = _layernorm(x + attn, ln1w, ln1b)                        # post-LN (norm_first=False)

    # ---- FFN, chunked over the F axis (never materializes [CS, F] f32) ----
    ffn = jnp.zeros((CS, D), jnp.float32)
    for c0 in range(0, F, ff_chunk):
        w1c = l1w_ref[0, :, c0:c0 + ff_chunk]                   # [D, chunk] bf16
        b1c = l1b_ref[0, :, c0:c0 + ff_chunk]                   # [1, chunk] f32
        w2c = l2w_ref[0, c0:c0 + ff_chunk, :]                   # [chunk, D] bf16
        h = jnp.maximum(_mm(y, w1c) + b1c, 0.0)                 # f32 ReLU (v5e-safe)
        ffn = ffn + _mm(h, w2c)
    ffn = ffn + l2b_ref[0]

    x_new = _layernorm(y + ffn, ln2w, ln2b)
    x_ref[...] = x_new

    # ---- final layer: fc scoring, written lane-dense as [2, S] ----
    @pl.when(l == pl.num_programs(0) - 1)
    def _():
        fcw = fcw_ref[...]                                      # [1, D]
        fcb = fcb_ref[0, 0]
        u = u_ref[...]
        x_u = x_new[0 * S:1 * S]
        x_p = x_new[1 * S:2 * S]
        x_n = x_new[2 * S:3 * S]
        # score = fc(u * out_col_user) + fc(u * out_col_item)   (bias once per column,
        # matching .sum(dim=1, keepdim=True) over the 2 PyTorch columns)
        base = jnp.sum(u * x_u * fcw, axis=-1, keepdims=True) + fcb   # [S, 1]
        psc = jnp.sum(u * x_p * fcw, axis=-1, keepdims=True) + fcb
        nsc = jnp.sum(u * x_n * fcw, axis=-1, keepdims=True) + fcb
        score_ref[...] = jnp.concatenate(
            [(base + psc).reshape(1, S), (base + nsc).reshape(1, S)], axis=0)


def _vmem_limit_bytes():
    """Generation-aware VMEM limit: large on v5e/v6e (128 MiB), headroom on v7x (64 MiB)."""
    cap = 128 * 1024 * 1024
    try:
        info = pltpu.get_tpu_info()
        cap = int(getattr(info, "vmem_capacity_bytes", cap) or cap)
    except Exception:
        cap = 64 * 1024 * 1024  # conservative fallback
    return int(min(cap - 16 * 1024 * 1024, cap * 0.8))


# ---------------------------------------------------------------------------
# Wrapper: embedding lookups (plain JAX), layer-streaming pallas_call, output shaping.
# ---------------------------------------------------------------------------
def transformer_self_forward(params, user, pos_item, neg_item, *, nhead, num_layers):
    u = params["user_emb"][user]               # [B, D]
    pos_emb = params["item_emb"][pos_item]     # [B, D]
    neg_emb = params["item_emb"][neg_item]     # [B, D]
    B, D = u.shape
    assert B % 8 == 0, "B should be a multiple of 8 for clean sublane alignment"
    assert D % nhead == 0

    L = num_layers
    F = params["l1wT"].shape[-1]
    D3 = 3 * D

    ff_chunk = F
    for c in (512, 256, 128):
        if F % c == 0:
            ff_chunk = c
            break

    weight_names = ["inwT", "inb", "outwT", "outb", "ln1w", "ln1b",
                    "l1wT", "l1b", "l2wT", "l2b", "ln2w", "ln2b", "fcw", "fcb"]
    weights = [params[n] for n in weight_names]

    const = lambda l: (0, 0)                   # grid-invariant blocks (stay resident)
    per_layer = lambda l: (l, 0, 0)            # one layer's weights per grid step

    grid_spec = pltpu.PrefetchScalarGridSpec(
        num_scalar_prefetch=0,
        grid=(L,),
        in_specs=[
            pl.BlockSpec((B, D), const),               # u
            pl.BlockSpec((B, D), const),               # pos_emb
            pl.BlockSpec((B, D), const),               # neg_emb
            pl.BlockSpec((1, D, D3), per_layer),       # inwT
            pl.BlockSpec((1, 1, D3), per_layer),       # inb
            pl.BlockSpec((1, D, D), per_layer),        # outwT
            pl.BlockSpec((1, 1, D), per_layer),        # outb
            pl.BlockSpec((1, 1, D), per_layer),        # ln1w
            pl.BlockSpec((1, 1, D), per_layer),        # ln1b
            pl.BlockSpec((1, D, F), per_layer),        # l1wT
            pl.BlockSpec((1, 1, F), per_layer),        # l1b
            pl.BlockSpec((1, F, D), per_layer),        # l2wT
            pl.BlockSpec((1, 1, D), per_layer),        # l2b
            pl.BlockSpec((1, 1, D), per_layer),        # ln2w
            pl.BlockSpec((1, 1, D), per_layer),        # ln2b
            pl.BlockSpec((1, D), const),               # fcw
            pl.BlockSpec((1, 1), const),               # fcb
        ],
        out_specs=pl.BlockSpec((2, B), const),
        scratch_shapes=[pltpu.VMEM((3 * B, D), jnp.float32)],   # activation slab carry
    )

    kern = functools.partial(transformer_layer_kernel, nhead=nhead, ff_chunk=ff_chunk)

    scores = pl.pallas_call(
        kern,
        out_shape=jax.ShapeDtypeStruct((2, B), jnp.float32),    # lane-dense: B on lanes
        grid_spec=grid_spec,
        compiler_params=pltpu.CompilerParams(
            dimension_semantics=("arbitrary",),                 # layers are sequential
            vmem_limit_bytes=_vmem_limit_bytes()),
    )(u, pos_emb, neg_emb, *weights)

    pos_score = scores[0].reshape(B, 1, 1)
    neg_score = scores[1].reshape(B, 1, 1)
    item_cat = jnp.concatenate([pos_emb[:, None, :], neg_emb[:, None, :]], axis=-1)  # [B,1,2D]
    u_out = u[:, None, :]                                                            # [B,1,D]
    return pos_score, neg_score, item_cat, u_out


# ---------------------------------------------------------------------------
# Deterministic parameter init.  Shapes follow nn.TransformerEncoderLayer defaults
# (dim_feedforward=2048, relu, post-LN, eps=1e-5) plus fc = Linear(D, 1).
# Matmul weights are stored PRE-TRANSPOSED and in bfloat16 (kernel layout);
# biases / LN params / fc / embeddings stay f32.
# ---------------------------------------------------------------------------
def init_params(key, num_users, num_items, D, num_layers, dim_feedforward=2048):
    L, F = num_layers, dim_feedforward
    keys = jax.random.split(key, 12)
    bf = jnp.bfloat16

    def nrm(k, shape, scale=0.1):
        return jax.random.normal(k, shape, jnp.float32) * scale

    p = {
        "user_emb": nrm(keys[0], (num_users, D)),
        "item_emb": nrm(keys[1], (num_items, D)),
        # pre-transposed weights: y = x @ W.T  ->  stored as W.T directly
        "inwT":  nrm(keys[2], (L, 3 * D, D)).transpose(0, 2, 1).astype(bf),   # [L, D, 3D]
        "inb":   nrm(keys[3], (L, 1, 3 * D), 0.01),
        "outwT": nrm(keys[4], (L, D, D)).transpose(0, 2, 1).astype(bf),       # [L, D, D]
        "outb":  nrm(keys[5], (L, 1, D), 0.01),
        "ln1w":  jnp.ones((L, 1, D), jnp.float32),
        "ln1b":  jnp.zeros((L, 1, D), jnp.float32),
        "l1wT":  nrm(keys[6], (L, F, D)).transpose(0, 2, 1).astype(bf),       # [L, D, F]
        "l1b":   nrm(keys[7], (L, 1, F), 0.01),
        "l2wT":  nrm(keys[8], (L, D, F), 0.05).transpose(0, 2, 1).astype(bf), # [L, F, D]
        "l2b":   nrm(keys[9], (L, 1, D), 0.01),
        "ln2w":  jnp.ones((L, 1, D), jnp.float32),
        "ln2b":  jnp.zeros((L, 1, D), jnp.float32),
        "fcw":   nrm(keys[10], (1, D)),            # = fc.weight (row vector)
        "fcb":   jnp.zeros((1, 1), jnp.float32),
    }
    return p


# ---------------------------------------------------------------------------
# Pure-JAX reference (mirrors the PyTorch eval-mode forward, per-column / per-head
# structure, using the SAME mixed-precision policy: bf16 MXU operands, f32 accum,
# f32 softmax/LayerNorm/ReLU; exact softmax division).
# ---------------------------------------------------------------------------
def reference_scores(params, user, pos_item, neg_item, nhead, num_layers):
    u = params["user_emb"][user]
    pos_emb = params["item_emb"][pos_item]
    neg_emb = params["item_emb"][neg_item]
    B, D = u.shape
    hd = D // nhead

    def encode_col(xn):                                        # one [S, D] column
        for l in range(num_layers):
            qkv = _mm(xn, params["inwT"][l]) + params["inb"][l]
            q, k, v = qkv[:, :D], qkv[:, D:2 * D], qkv[:, 2 * D:]
            heads = []
            for h in range(nhead):
                qh = q[:, h * hd:(h + 1) * hd]
                kh = k[:, h * hd:(h + 1) * hd]
                vh = v[:, h * hd:(h + 1) * hd]
                s = jnp.dot(qh, kh.T, preferred_element_type=jnp.float32) / math.sqrt(hd)
                p = jax.nn.softmax(s, axis=-1)
                heads.append(jnp.dot(p, vh, preferred_element_type=jnp.float32))
            attn = _mm(jnp.concatenate(heads, -1), params["outwT"][l]) + params["outb"][l]
            y = _layernorm(xn + attn, params["ln1w"][l], params["ln1b"][l])
            f = jnp.maximum(_mm(y, params["l1wT"][l]) + params["l1b"][l], 0.0)
            f = _mm(f, params["l2wT"][l]) + params["l2b"][l]
            xn = _layernorm(y + f, params["ln2w"][l], params["ln2b"][l])
        return xn

    out_u, out_p, out_n = encode_col(u), encode_col(pos_emb), encode_col(neg_emb)
    fcw, fcb = params["fcw"], params["fcb"][0, 0]

    def sc(col_out):
        return jnp.sum(u * col_out * fcw, axis=-1, keepdims=True) + fcb

    pos_score = (sc(out_u) + sc(out_p)).reshape(B, 1, 1)
    neg_score = (sc(out_u) + sc(out_n)).reshape(B, 1, 1)
    return pos_score, neg_score


if __name__ == "__main__":
    num_users, num_items = 16, 24
    embedding_dim, nhead, num_layers = 32, 4, 2
    B = 8

    key = jax.random.PRNGKey(0)
    kp, ku, kpi, kni = jax.random.split(key, 4)
    params = init_params(kp, num_users, num_items, embedding_dim, num_layers)

    user = jax.random.randint(ku, (B,), 0, num_users)
    pos_item = jax.random.randint(kpi, (B,), 0, num_items)
    neg_item = jax.random.randint(kni, (B,), 0, num_items)

    pos_score, neg_score, item_cat, u_out = transformer_self_forward(
        params, user, pos_item, neg_item, nhead=nhead, num_layers=num_layers)
    jax.block_until_ready((pos_score, neg_score, item_cat, u_out))

    # shape checks (match PyTorch forward)
    assert pos_score.shape == (B, 1, 1) and neg_score.shape == (B, 1, 1)
    assert item_cat.shape == (B, 1, 2 * embedding_dim)
    assert u_out.shape == (B, 1, embedding_dim)

    # numeric check vs a pure-JAX reference using the same mixed-precision policy
    # (kernel differs only in the EUP approximate-reciprocal softmax and FFN chunking
    #  accumulation order, hence the slightly loose tolerance)
    ref_pos, ref_neg = reference_scores(params, user, pos_item, neg_item, nhead, num_layers)
    assert float(jnp.max(jnp.abs(pos_score - ref_pos))) < 3e-2
    assert float(jnp.max(jnp.abs(neg_score - ref_neg))) < 3e-2

    print("KERNEL_OK")
</pallas_src>

<mosaic_0001>
module attributes {stable_mosaic.version = 11 : i64} {
  func.func @transformer_layer_kernel(%arg0: i32, %arg1: memref<8x32xf32, #tpu.memory_space<vmem>>, %arg2: memref<8x32xf32, #tpu.memory_space<vmem>>, %arg3: memref<8x32xf32, #tpu.memory_space<vmem>>, %arg4: memref<1x32x96xbf16, #tpu.memory_space<vmem>>, %arg5: memref<1x1x96xf32, #tpu.memory_space<vmem>>, %arg6: memref<1x32x32xbf16, #tpu.memory_space<vmem>>, %arg7: memref<1x1x32xf32, #tpu.memory_space<vmem>>, %arg8: memref<1x1x32xf32, #tpu.memory_space<vmem>>, %arg9: memref<1x1x32xf32, #tpu.memory_space<vmem>>, %arg10: memref<1x32x2048xbf16, #tpu.memory_space<vmem>>, %arg11: memref<1x1x2048xf32, #tpu.memory_space<vmem>>, %arg12: memref<1x2048x32xbf16, #tpu.memory_space<vmem>>, %arg13: memref<1x1x32xf32, #tpu.memory_space<vmem>>, %arg14: memref<1x1x32xf32, #tpu.memory_space<vmem>>, %arg15: memref<1x1x32xf32, #tpu.memory_space<vmem>>, %arg16: memref<1x32xf32, #tpu.memory_space<vmem>>, %arg17: memref<1x1xf32, #tpu.memory_space<vmem>>, %arg18: memref<2x8xf32, #tpu.memory_space<vmem>>, %arg19: memref<24x32xf32, #tpu.memory_space<vmem>>) attributes {dimension_semantics = [#tpu.dimension_semantics<arbitrary>], iteration_bounds = array<i64: 2>, scalar_prefetch = 0 : i64, scratch_operands = 1 : i64, tpu.core_type = #tpu.core_type<tc>, window_params = [{pipeline_mode = #tpu.pipeline_mode<synchronous>, transform_indices = @transform_0, window_bounds = array<i64: 8, 32>}, {pipeline_mode = #tpu.pipeline_mode<synchronous>, transform_indices = @transform_1, window_bounds = array<i64: 8, 32>}, {pipeline_mode = #tpu.pipeline_mode<synchronous>, transform_indices = @transform_2, window_bounds = array<i64: 8, 32>}, {transform_indices = @transform_3, window_bounds = array<i64: 1, 32, 96>}, {transform_indices = @transform_4, window_bounds = array<i64: 1, 1, 96>}, {transform_indices = @transform_5, window_bounds = array<i64: 1, 32, 32>}, {transform_indices = @transform_6, window_bounds = array<i64: 1, 1, 32>}, {transform_indices = @transform_7, window_bounds = array<i64: 1, 1, 32>}, {transform_indices = @transform_8, window_bounds = array<i64: 1, 1, 32>}, {transform_indices = @transform_9, window_bounds = array<i64: 1, 32, 2048>}, {transform_indices = @transform_10, window_bounds = array<i64: 1, 1, 2048>}, {transform_indices = @transform_11, window_bounds = array<i64: 1, 2048, 32>}, {transform_indices = @transform_12, window_bounds = array<i64: 1, 1, 32>}, {transform_indices = @transform_13, window_bounds = array<i64: 1, 1, 32>}, {transform_indices = @transform_14, window_bounds = array<i64: 1, 1, 32>}, {pipeline_mode = #tpu.pipeline_mode<synchronous>, transform_indices = @transform_15, window_bounds = array<i64: 1, 32>}, {pipeline_mode = #tpu.pipeline_mode<synchronous>, transform_indices = @transform_16, window_bounds = array<i64: 1, 1>}, {pipeline_mode = #tpu.pipeline_mode<synchronous>, transform_indices = @transform_17, window_bounds = array<i64: 2, 8>}]} {
    %c0_i32 = arith.constant 0 : i32
    %0 = arith.cmpi eq, %arg0, %c0_i32 : i32
    %1 = arith.extui %0 : i1 to i32
    %c0_i32_0 = arith.constant 0 : i32
    %2 = arith.cmpi ne, %1, %c0_i32_0 : i32
    scf.if %2 {
      %c0_94 = arith.constant 0 : index
      %c0_95 = arith.constant 0 : index
      %172 = vector.load %arg1[%c0_94, %c0_95] : memref<8x32xf32, #tpu.memory_space<vmem>>, vector<8x32xf32>
      %c0_96 = arith.constant 0 : index
      %c0_97 = arith.constant 0 : index
      %173 = vector.load %arg19[%c0_96, %c0_97] : memref<24x32xf32, #tpu.memory_space<vmem>>, vector<8x32xf32>
      tpu.vector_store %arg19[%c0_96, %c0_97], %172 {strides = array<i32>} : memref<24x32xf32, #tpu.memory_space<vmem>>, vector<8x32xf32>,
      %c0_98 = arith.constant 0 : index
      %c0_99 = arith.constant 0 : index
      %174 = vector.load %arg2[%c0_98, %c0_99] : memref<8x32xf32, #tpu.memory_space<vmem>>, vector<8x32xf32>
      %c8 = arith.constant 8 : index
      %c0_100 = arith.constant 0 : index
      %175 = vector.load %arg19[%c8, %c0_100] : memref<24x32xf32, #tpu.memory_space<vmem>>, vector<8x32xf32>
      tpu.vector_store %arg19[%c8, %c0_100], %174 {strides = array<i32>} : memref<24x32xf32, #tpu.memory_space<vmem>>, vector<8x32xf32>,
      %c0_101 = arith.constant 0 : index
      %c0_102 = arith.constant 0 : index
      %176 = vector.load %arg3[%c0_101, %c0_102] : memref<8x32xf32, #tpu.memory_space<vmem>>, vector<8x32xf32>
      %c16 = arith.constant 16 : index
      %c0_103 = arith.constant 0 : index
      %177 = vector.load %arg19[%c16, %c0_103] : memref<24x32xf32, #tpu.memory_space<vmem>>, vector<8x32xf32>
      tpu.vector_store %arg19[%c16, %c0_103], %176 {strides = array<i32>} : memref<24x32xf32, #tpu.memory_space<vmem>>, vector<8x32xf32>,
    } else {
    }
    %c0 = arith.constant 0 : index
    %c0_1 = arith.constant 0 : index
    %3 = vector.load %arg19[%c0, %c0_1] : memref<24x32xf32, #tpu.memory_space<vmem>>, vector<24x32xf32>
    %c0_2 = arith.constant 0 : index
    %c0_3 = arith.constant 0 : index
    %c0_4 = arith.constant 0 : index
    %4 = vector.load %arg4[%c0_2, %c0_3, %c0_4] : memref<1x32x96xbf16, #tpu.memory_space<vmem>>, vector<1x32x96xbf16>
    %5 = vector.shape_cast %4 : vector<1x32x96xbf16> to vector<32x96xbf16>
    %c0_5 = arith.constant 0 : index
    %c0_6 = arith.constant 0 : index
    %c0_7 = arith.constant 0 : index
    %6 = vector.load %arg5[%c0_5, %c0_6, %c0_7] : memref<1x1x96xf32, #tpu.memory_space<vmem>>, vector<1x1x96xf32>
    %7 = vector.shape_cast %6 : vector<1x1x96xf32> to vector<1x96xf32>
    %c0_8 = arith.constant 0 : index
    %c0_9 = arith.constant 0 : index
    %c0_10 = arith.constant 0 : index
    %8 = vector.load %arg6[%c0_8, %c0_9, %c0_10] : memref<1x32x32xbf16, #tpu.memory_space<vmem>>, vector<1x32x32xbf16>
    %9 = vector.shape_cast %8 : vector<1x32x32xbf16> to vector<32x32xbf16>
    %c0_11 = arith.constant 0 : index
    %c0_12 = arith.constant 0 : index
    %c0_13 = arith.constant 0 : index
    %10 = vector.load %arg7[%c0_11, %c0_12, %c0_13] : memref<1x1x32xf32, #tpu.memory_space<vmem>>, vector<1x1x32xf32>
    %11 = vector.shape_cast %10 : vector<1x1x32xf32> to vector<1x32xf32>
    %c0_14 = arith.constant 0 : index
    %c0_15 = arith.constant 0 : index
    %c0_16 = arith.constant 0 : index
    %12 = vector.load %arg8[%c0_14, %c0_15, %c0_16] : memref<1x1x32xf32, #tpu.memory_space<vmem>>, vector<1x1x32xf32>
    %13 = vector.shape_cast %12 : vector<1x1x32xf32> to vector<1x32xf32>
    %c0_17 = arith.constant 0 : index
    %c0_18 = arith.constant 0 : index
    %c0_19 = arith.constant 0 : index
    %14 = vector.load %arg9[%c0_17, %c0_18, %c0_19] : memref<1x1x32xf32, #tpu.memory_space<vmem>>, vector<1x1x32xf32>
    %15 = vector.shape_cast %14 : vector<1x1x32xf32> to vector<1x32xf32>
    %c0_20 = arith.constant 0 : index
    %c0_21 = arith.constant 0 : index
    %c0_22 = arith.constant 0 : index
    %16 = vector.load %arg14[%c0_20, %c0_21, %c0_22] : memref<1x1x32xf32, #tpu.memory_space<vmem>>, vector<1x1x32xf32>
    %17 = vector.shape_cast %16 : vector<1x1x32xf32> to vector<1x32xf32>
    %c0_23 = arith.constant 0 : index
    %c0_24 = arith.constant 0 : index
    %c0_25 = arith.constant 0 : index
    %18 = vector.load %arg15[%c0_23, %c0_24, %c0_25] : memref<1x1x32xf32, #tpu.memory_space<vmem>>, vector<1x1x32xf32>
    %19 = vector.shape_cast %18 : vector<1x1x32xf32> to vector<1x32xf32>
    %20 = arith.truncf %3 : vector<24x32xf32> to vector<24x32xbf16>
    %cst = arith.constant dense<0.000000e+00> : vector<24x96xf32>
    %21 = tpu.matmul %20, %5, %cst {dimension_numbers = #tpu.dot_dimension_numbers<[1], [0], [0], [1], [0, 0, 1, 1], [], []>} : vector<24x32xbf16>, vector<32x96xbf16>, vector<24x96xf32> -> vector<24x96xf32>
    %22 = vector.broadcast %7 : vector<1x96xf32> to vector<24x96xf32>
    %23 = arith.addf %21, %22 : vector<24x96xf32>
    %24 = vector.extract_strided_slice %23 {offsets = [0, 0], sizes = [24, 32], strides = [1, 1]} : vector<24x96xf32> to vector<24x32xf32>
    %cst_26 = arith.constant 0.353553385 : f32
    %25 = vector.broadcast %cst_26 : f32 to vector<24x32xf32>
    %26 = arith.mulf %24, %25 : vector<24x32xf32>
    %27 = vector.shape_cast %26 : vector<24x32xf32> to vector<3x8x4x8xf32>
    %28 = tpu.transpose %27, [0, 2, 1, 3] : vector<3x8x4x8xf32> -> vector<3x4x8x8xf32>
    %29 = vector.shape_cast %28 : vector<3x4x8x8xf32> to vector<12x8x8xf32>
    %30 = vector.extract_strided_slice %23 {offsets = [0, 32], sizes = [24, 32], strides = [1, 1]} : vector<24x96xf32> to vector<24x32xf32>
    %31 = vector.shape_cast %30 : vector<24x32xf32> to vector<3x8x4x8xf32>
    %32 = tpu.transpose %31, [0, 2, 1, 3] : vector<3x8x4x8xf32> -> vector<3x4x8x8xf32>
    %33 = vector.shape_cast %32 : vector<3x4x8x8xf32> to vector<12x8x8xf32>
    %34 = vector.extract_strided_slice %23 {offsets = [0, 64], sizes = [24, 32], strides = [1, 1]} : vector<24x96xf32> to vector<24x32xf32>
    %35 = vector.shape_cast %34 : vector<24x32xf32> to vector<3x8x4x8xf32>
    %36 = tpu.transpose %35, [0, 2, 1, 3] : vector<3x8x4x8xf32> -> vector<3x4x8x8xf32>
    %37 = vector.shape_cast %36 : vector<3x4x8x8xf32> to vector<12x8x8xf32>
    "tpu.trace_start"() <{level = 10 : i32, message = "bsk,btk->bst"}> : () -> ()
    %cst_27 = arith.constant dense<0.000000e+00> : vector<12x8x8xf32>
    %38 = tpu.matmul %29, %33, %cst_27 {dimension_numbers = #tpu.dot_dimension_numbers<[2], [2], [1], [1], [0, 0, 0, 1, 1, 1], [0], [0]>} : vector<12x8x8xf32>, vector<12x8x8xf32>, vector<12x8x8xf32> -> vector<12x8x8xf32>
    "tpu.trace_stop"() : () -> ()
    %cst_28 = arith.constant dense<0xFF800000> : vector<12x8xf32>
    %39 = vector.multi_reduction <maximumf>, %38, %cst_28 [2] : vector<12x8x8xf32> to vector<12x8xf32>
    %40 = vector.shape_cast %39 : vector<12x8xf32> to vector<12x8x1xf32>
    %41 = vector.broadcast %40 : vector<12x8x1xf32> to vector<12x8x8xf32>
    %42 = arith.subf %38, %41 : vector<12x8x8xf32>
    %43 = math.exp %42 : vector<12x8x8xf32>
    %cst_29 = arith.constant dense<0.000000e+00> : vector<12x8xf32>
    %44 = vector.multi_reduction <add>, %43, %cst_29 [2] : vector<12x8x8xf32> to vector<12x8xf32>
    %45 = vector.shape_cast %44 : vector<12x8xf32> to vector<12x8x1xf32>
    %46 = tpu.reciprocal %45 {approx = true} : vector<12x8x1xf32> -> vector<12x8x1xf32>
    %47 = vector.broadcast %46 : vector<12x8x1xf32> to vector<12x8x8xf32>
    %48 = arith.mulf %43, %47 : vector<12x8x8xf32>
    "tpu.trace_start"() <{level = 10 : i32, message = "bst,btk->bsk"}> : () -> ()
    %cst_30 = arith.constant dense<0.000000e+00> : vector<12x8x8xf32>
    %49 = tpu.matmul %48, %37, %cst_30 {dimension_numbers = #tpu.dot_dimension_numbers<[2], [1], [1], [2], [0, 0, 0, 1, 1, 2], [0], [0]>} : vector<12x8x8xf32>, vector<12x8x8xf32>, vector<12x8x8xf32> -> vector<12x8x8xf32>
    "tpu.trace_stop"() : () -> ()
    %50 = vector.shape_cast %49 : vector<12x8x8xf32> to vector<3x4x8x8xf32>
    %51 = tpu.transpose %50, [0, 2, 1, 3] : vector<3x4x8x8xf32> -> vector<3x8x4x8xf32>
    %52 = vector.shape_cast %51 : vector<3x8x4x8xf32> to vector<24x32xf32>
    %53 = arith.truncf %52 : vector<24x32xf32> to vector<24x32xbf16>
    %cst_31 = arith.constant dense<0.000000e+00> : vector<24x32xf32>
    %54 = tpu.matmul %53, %9, %cst_31 {dimension_numbers = #tpu.dot_dimension_numbers<[1], [0], [0], [1], [0, 0, 1, 1], [], []>} : vector<24x32xbf16>, vector<32x32xbf16>, vector<24x32xf32> -> vector<24x32xf32>
    %55 = vector.broadcast %11 : vector<1x32xf32> to vector<24x32xf32>
    %56 = arith.addf %54, %55 : vector<24x32xf32>
    %57 = arith.addf %3, %56 : vector<24x32xf32>
    %cst_32 = arith.constant dense<0.000000e+00> : vector<24xf32>
    %58 = vector.multi_reduction <add>, %57, %cst_32 [1] : vector<24x32xf32> to vector<24xf32>
    %59 = vector.shape_cast %58 : vector<24xf32> to vector<24x1xf32>
    %cst_33 = arith.constant 3.200000e+01 : f32
    %60 = vector.broadcast %cst_33 : f32 to vector<24x1xf32>
    %61 = arith.divf %59, %60 : vector<24x1xf32>
    %62 = vector.broadcast %61 : vector<24x1xf32> to vector<24x32xf32>
    %63 = arith.subf %57, %62 : vector<24x32xf32>
    %64 = arith.mulf %63, %63 : vector<24x32xf32>
    %cst_34 = arith.constant dense<0.000000e+00> : vector<24xf32>
    %65 = vector.multi_reduction <add>, %64, %cst_34 [1] : vector<24x32xf32> to vector<24xf32>
    %66 = vector.shape_cast %65 : vector<24xf32> to vector<24x1xf32>
    %cst_35 = arith.constant 3.200000e+01 : f32
    %67 = vector.broadcast %cst_35 : f32 to vector<24x1xf32>
    %68 = arith.divf %66, %67 : vector<24x1xf32>
    %69 = vector.broadcast %61 : vector<24x1xf32> to vector<24x32xf32>
    %70 = arith.subf %57, %69 : vector<24x32xf32>
    %cst_36 = arith.constant 9.99999974E-6 : f32
    %71 = vector.broadcast %cst_36 : f32 to vector<24x1xf32>
    %72 = arith.addf %68, %71 : vector<24x1xf32>
    %73 = math.rsqrt %72 : vector<24x1xf32>
    %74 = vector.broadcast %73 : vector<24x1xf32> to vector<24x32xf32>
    %75 = arith.mulf %70, %74 : vector<24x32xf32>
    %76 = vector.broadcast %13 : vector<1x32xf32> to vector<24x32xf32>
    %77 = arith.mulf %75, %76 : vector<24x32xf32>
    %78 = vector.broadcast %15 : vector<1x32xf32> to vector<24x32xf32>
    %79 = arith.addf %77, %78 : vector<24x32xf32>
    %cst_37 = arith.constant 0.000000e+00 : f32
    %80 = vector.broadcast %cst_37 : f32 to vector<24x32xf32>
    %c0_38 = arith.constant 0 : index
    %c0_39 = arith.constant 0 : index
    %c0_40 = arith.constant 0 : index
    %81 = vector.load %arg10[%c0_38, %c0_39, %c0_40] : memref<1x32x2048xbf16, #tpu.memory_space<vmem>>, vector<1x32x512xbf16>
    %82 = vector.shape_cast %81 : vector<1x32x512xbf16> to vector<32x512xbf16>
    %c0_41 = arith.constant 0 : index
    %c0_42 = arith.constant 0 : index
    %c0_43 = arith.constant 0 : index
    %83 = vector.load %arg11[%c0_41, %c0_42, %c0_43] : memref<1x1x2048xf32, #tpu.memory_space<vmem>>, vector<1x1x512xf32>
    %84 = vector.shape_cast %83 : vector<1x1x512xf32> to vector<1x512xf32>
    %c0_44 = arith.constant 0 : index
    %c0_45 = arith.constant 0 : index
    %c0_46 = arith.constant 0 : index
    %85 = vector.load %arg12[%c0_44, %c0_45, %c0_46] : memref<1x2048x32xbf16, #tpu.memory_space<vmem>>, vector<1x512x32xbf16>
    %86 = vector.shape_cast %85 : vector<1x512x32xbf16> to vector<512x32xbf16>
    %87 = arith.truncf %79 : vector<24x32xf32> to vector<24x32xbf16>
    %cst_47 = arith.constant dense<0.000000e+00> : vector<24x512xf32>
    %88 = tpu.matmul %87, %82, %cst_47 {dimension_numbers = #tpu.dot_dimension_numbers<[1], [0], [0], [1], [0, 0, 1, 1], [], []>} : vector<24x32xbf16>, vector<32x512xbf16>, vector<24x512xf32> -> vector<24x512xf32>
    %89 = vector.broadcast %84 : vector<1x512xf32> to vector<24x512xf32>
    %90 = arith.addf %88, %89 : vector<24x512xf32>
    %cst_48 = arith.constant 0.000000e+00 : f32
    %91 = vector.broadcast %cst_48 : f32 to vector<24x512xf32>
    %92 = arith.maximumf %90, %91 : vector<24x512xf32>
    %93 = arith.truncf %92 : vector<24x512xf32> to vector<24x512xbf16>
    %cst_49 = arith.constant dense<0.000000e+00> : vector<24x32xf32>
    %94 = tpu.matmul %93, %86, %cst_49 {dimension_numbers = #tpu.dot_dimension_numbers<[1], [0], [0], [1], [0, 0, 1, 1], [], []>} : vector<24x512xbf16>, vector<512x32xbf16>, vector<24x32xf32> -> vector<24x32xf32>
    %95 = arith.addf %80, %94 : vector<24x32xf32>
    %c0_50 = arith.constant 0 : index
    %c0_51 = arith.constant 0 : index
    %c512 = arith.constant 512 : index
    %96 = vector.load %arg10[%c0_50, %c0_51, %c512] : memref<1x32x2048xbf16, #tpu.memory_space<vmem>>, vector<1x32x512xbf16>
    %97 = vector.shape_cast %96 : vector<1x32x512xbf16> to vector<32x512xbf16>
    %c0_52 = arith.constant 0 : index
    %c0_53 = arith.constant 0 : index
    %c512_54 = arith.constant 512 : index
    %98 = vector.load %arg11[%c0_52, %c0_53, %c512_54] : memref<1x1x2048xf32, #tpu.memory_space<vmem>>, vector<1x1x512xf32>
    %99 = vector.shape_cast %98 : vector<1x1x512xf32> to vector<1x512xf32>
    %c0_55 = arith.constant 0 : index
    %c512_56 = arith.constant 512 : index
    %c0_57 = arith.constant 0 : index
    %100 = vector.load %arg12[%c0_55, %c512_56, %c0_57] : memref<1x2048x32xbf16, #tpu.memory_space<vmem>>, vector<1x512x32xbf16>
    %101 = vector.shape_cast %100 : vector<1x512x32xbf16> to vector<512x32xbf16>
    %102 = arith.truncf %79 : vector<24x32xf32> to vector<24x32xbf16>
    %cst_58 = arith.constant dense<0.000000e+00> : vector<24x512xf32>
    %103 = tpu.matmul %102, %97, %cst_58 {dimension_numbers = #tpu.dot_dimension_numbers<[1], [0], [0], [1], [0, 0, 1, 1], [], []>} : vector<24x32xbf16>, vector<32x512xbf16>, vector<24x512xf32> -> vector<24x512xf32>
    %104 = vector.broadcast %99 : vector<1x512xf32> to vector<24x512xf32>
    %105 = arith.addf %103, %104 : vector<24x512xf32>
    %cst_59 = arith.constant 0.000000e+00 : f32
    %106 = vector.broadcast %cst_59 : f32 to vector<24x512xf32>
    %107 = arith.maximumf %105, %106 : vector<24x512xf32>
    %108 = arith.truncf %107 : vector<24x512xf32> to vector<24x512xbf16>
    %cst_60 = arith.constant dense<0.000000e+00> : vector<24x32xf32>
    %109 = tpu.matmul %108, %101, %cst_60 {dimension_numbers = #tpu.dot_dimension_numbers<[1], [0], [0], [1], [0, 0, 1, 1], [], []>} : vector<24x512xbf16>, vector<512x32xbf16>, vector<24x32xf32> -> vector<24x32xf32>
    %110 = arith.addf %95, %109 : vector<24x32xf32>
    %c0_61 = arith.constant 0 : index
    %c0_62 = arith.constant 0 : index
    %c1024 = arith.constant 1024 : index
    %111 = vector.load %arg10[%c0_61, %c0_62, %c1024] : memref<1x32x2048xbf16, #tpu.memory_space<vmem>>, vector<1x32x512xbf16>
    %112 = vector.shape_cast %111 : vector<1x32x512xbf16> to vector<32x512xbf16>
    %c0_63 = arith.constant 0 : index
    %c0_64 = arith.constant 0 : index
    %c1024_65 = arith.constant 1024 : index
    %113 = vector.load %arg11[%c0_63, %c0_64, %c1024_65] : memref<1x1x2048xf32, #tpu.memory_space<vmem>>, vector<1x1x512xf32>
    %114 = vector.shape_cast %113 : vector<1x1x512xf32> to vector<1x512xf32>
    %c0_66 = arith.constant 0 : index
    %c1024_67 = arith.constant 1024 : index
    %c0_68 = arith.constant 0 : index
    %115 = vector.load %arg12[%c0_66, %c1024_67, %c0_68] : memref<1x2048x32xbf16, #tpu.memory_space<vmem>>, vector<1x512x32xbf16>
    %116 = vector.shape_cast %115 : vector<1x512x32xbf16> to vector<512x32xbf16>
    %117 = arith.truncf %79 : vector<24x32xf32> to vector<24x32xbf16>
    %cst_69 = arith.constant dense<0.000000e+00> : vector<24x512xf32>
    %118 = tpu.matmul %117, %112, %cst_69 {dimension_numbers = #tpu.dot_dimension_numbers<[1], [0], [0], [1], [0, 0, 1, 1], [], []>} : vector<24x32xbf16>, vector<32x512xbf16>, vector<24x512xf32> -> vector<24x512xf32>
    %119 = vector.broadcast %114 : vector<1x512xf32> to vector<24x512xf32>
    %120 = arith.addf %118, %119 : vector<24x512xf32>
    %cst_70 = arith.constant 0.000000e+00 : f32
    %121 = vector.broadcast %cst_70 : f32 to vector<24x512xf32>
    %122 = arith.maximumf %120, %121 : vector<24x512xf32>
    %123 = arith.truncf %122 : vector<24x512xf32> to vector<24x512xbf16>
    %cst_71 = arith.constant dense<0.000000e+00> : vector<24x32xf32>
    %124 = tpu.matmul %123, %116, %cst_71 {dimension_numbers = #tpu.dot_dimension_numbers<[1], [0], [0], [1], [0, 0, 1, 1], [], []>} : vector<24x512xbf16>, vector<512x32xbf16>, vector<24x32xf32> -> vector<24x32xf32>
    %125 = arith.addf %110, %124 : vector<24x32xf32>
    %c0_72 = arith.constant 0 : index
    %c0_73 = arith.constant 0 : index
    %c1536 = arith.constant 1536 : index
    %126 = vector.load %arg10[%c0_72, %c0_73, %c1536] : memref<1x32x2048xbf16, #tpu.memory_space<vmem>>, vector<1x32x512xbf16>
    %127 = vector.shape_cast %126 : vector<1x32x512xbf16> to vector<32x512xbf16>
    %c0_74 = arith.constant 0 : index
    %c0_75 = arith.constant 0 : index
    %c1536_76 = arith.constant 1536 : index
    %128 = vector.load %arg11[%c0_74, %c0_75, %c1536_76] : memref<1x1x2048xf32, #tpu.memory_space<vmem>>, vector<1x1x512xf32>
    %129 = vector.shape_cast %128 : vector<1x1x512xf32> to vector<1x512xf32>
    %c0_77 = arith.constant 0 : index
    %c1536_78 = arith.constant 1536 : index
    %c0_79 = arith.constant 0 : index
    %130 = vector.load %arg12[%c0_77, %c1536_78, %c0_79] : memref<1x2048x32xbf16, #tpu.memory_space<vmem>>, vector<1x512x32xbf16>
    %131 = vector.shape_cast %130 : vector<1x512x32xbf16> to vector<512x32xbf16>
    %132 = arith.truncf %79 : vector<24x32xf32> to vector<24x32xbf16>
    %cst_80 = arith.constant dense<0.000000e+00> : vector<24x512xf32>
    %133 = tpu.matmul %132, %127, %cst_80 {dimension_numbers = #tpu.dot_dimension_numbers<[1], [0], [0], [1], [0, 0, 1, 1], [], []>} : vector<24x32xbf16>, vector<32x512xbf16>, vector<24x512xf32> -> vector<24x512xf32>
    %134 = vector.broadcast %129 : vector<1x512xf32> to vector<24x512xf32>
    %135 = arith.addf %133, %134 : vector<24x512xf32>
    %cst_81 = arith.constant 0.000000e+00 : f32
    %136 = vector.broadcast %cst_81 : f32 to vector<24x512xf32>
    %137 = arith.maximumf %135, %136 : vector<24x512xf32>
    %138 = arith.truncf %137 : vector<24x512xf32> to vector<24x512xbf16>
    %cst_82 = arith.constant dense<0.000000e+00> : vector<24x32xf32>
    %139 = tpu.matmul %138, %131, %cst_82 {dimension_numbers = #tpu.dot_dimension_numbers<[1], [0], [0], [1], [0, 0, 1, 1], [], []>} : vector<24x512xbf16>, vector<512x32xbf16>, vector<24x32xf32> -> vector<24x32xf32>
    %140 = arith.addf %125, %139 : vector<24x32xf32>
    %c0_83 = arith.constant 0 : index
    %c0_84 = arith.constant 0 : index
    %c0_85 = arith.constant 0 : index
    %141 = vector.load %arg13[%c0_83, %c0_84, %c0_85] : memref<1x1x32xf32, #tpu.memory_space<vmem>>, vector<1x1x32xf32>
    %142 = vector.shape_cast %141 : vector<1x1x32xf32> to vector<1x32xf32>
    %143 = vector.broadcast %142 : vector<1x32xf32> to vector<24x32xf32>
    %144 = arith.addf %140, %143 : vector<24x32xf32>
    %145 = arith.addf %79, %144 : vector<24x32xf32>
    %cst_86 = arith.constant dense<0.000000e+00> : vector<24xf32>
    %146 = vector.multi_reduction <add>, %145, %cst_86 [1] : vector<24x32xf32> to vector<24xf32>
    %147 = vector.shape_cast %146 : vector<24xf32> to vector<24x1xf32>
    %cst_87 = arith.constant 3.200000e+01 : f32
    %148 = vector.broadcast %cst_87 : f32 to vector<24x1xf32>
    %149 = arith.divf %147, %148 : vector<24x1xf32>
    %150 = vector.broadcast %149 : vector<24x1xf32> to vector<24x32xf32>
    %151 = arith.subf %145, %150 : vector<24x32xf32>
    %152 = arith.mulf %151, %151 : vector<24x32xf32>
    %cst_88 = arith.constant dense<0.000000e+00> : vector<24xf32>
    %153 = vector.multi_reduction <add>, %152, %cst_88 [1] : vector<24x32xf32> to vector<24xf32>
    %154 = vector.shape_cast %153 : vector<24xf32> to vector<24x1xf32>
    %cst_89 = arith.constant 3.200000e+01 : f32
    %155 = vector.broadcast %cst_89 : f32 to vector<24x1xf32>
    %156 = arith.divf %154, %155 : vector<24x1xf32>
    %157 = vector.broadcast %149 : vector<24x1xf32> to vector<24x32xf32>
    %158 = arith.subf %145, %157 : vector<24x32xf32>
    %cst_90 = arith.constant 9.99999974E-6 : f32
    %159 = vector.broadcast %cst_90 : f32 to vector<24x1xf32>
    %160 = arith.addf %156, %159 : vector<24x1xf32>
    %161 = math.rsqrt %160 : vector<24x1xf32>
    %162 = vector.broadcast %161 : vector<24x1xf32> to vector<24x32xf32>
    %163 = arith.mulf %158, %162 : vector<24x32xf32>
    %164 = vector.broadcast %17 : vector<1x32xf32> to vector<24x32xf32>
    %165 = arith.mulf %163, %164 : vector<24x32xf32>
    %166 = vector.broadcast %19 : vector<1x32xf32> to vector<24x32xf32>
    %167 = arith.addf %165, %166 : vector<24x32xf32>
    %c0_91 = arith.constant 0 : index
    %c0_92 = arith.constant 0 : index
    %168 = vector.load %arg19[%c0_91, %c0_92] : memref<24x32xf32, #tpu.memory_space<vmem>>, vector<24x32xf32>
    tpu.vector_store %arg19[%c0_91, %c0_92], %167 {strides = array<i32>} : memref<24x32xf32, #tpu.memory_space<vmem>>, vector<24x32xf32>,
    %c1_i32 = arith.constant 1 : i32
    %169 = arith.cmpi eq, %arg0, %c1_i32 : i32
    %170 = arith.extui %169 : i1 to i32
    %c0_i32_93 = arith.constant 0 : i32
    %171 = arith.cmpi ne, %170, %c0_i32_93 : i32
    scf.if %171 {
      %c0_94 = arith.constant 0 : index
      %c0_95 = arith.constant 0 : index
      %172 = vector.load %arg16[%c0_94, %c0_95] : memref<1x32xf32, #tpu.memory_space<vmem>>, vector<1x32xf32>
      %c0_96 = arith.constant 0 : index
      %c0_97 = arith.constant 0 : index
      %173 = vector.load %arg17[%c0_96, %c0_97] : memref<1x1xf32, #tpu.memory_space<vmem>>, vector<1x1xf32>
      %174 = vector.extract %173[0, 0] : f32 from vector<1x1xf32>
      %c0_98 = arith.constant 0 : index
      %c0_99 = arith.constant 0 : index
      %175 = vector.load %arg1[%c0_98, %c0_99] : memref<8x32xf32, #tpu.memory_space<vmem>>, vector<8x32xf32>
      %176 = vector.extract_strided_slice %167 {offsets = [0, 0], sizes = [8, 32], strides = [1, 1]} : vector<24x32xf32> to vector<8x32xf32>
      %177 = vector.extract_strided_slice %167 {offsets = [8, 0], sizes = [8, 32], strides = [1, 1]} : vector<24x32xf32> to vector<8x32xf32>
      %178 = vector.extract_strided_slice %167 {offsets = [16, 0], sizes = [8, 32], strides = [1, 1]} : vector<24x32xf32> to vector<8x32xf32>
      %179 = arith.mulf %175, %176 : vector<8x32xf32>
      %180 = vector.broadcast %172 : vector<1x32xf32> to vector<8x32xf32>
      %181 = arith.mulf %179, %180 : vector<8x32xf32>
      %cst_100 = arith.constant dense<0.000000e+00> : vector<8xf32>
      %182 = vector.multi_reduction <add>, %181, %cst_100 [1] : vector<8x32xf32> to vector<8xf32>
      %183 = vector.shape_cast %182 : vector<8xf32> to vector<8x1xf32>
      %184 = vector.broadcast %174 : f32 to vector<8x1xf32>
      %185 = arith.addf %183, %184 : vector<8x1xf32>
      %186 = arith.mulf %175, %177 : vector<8x32xf32>
      %187 = vector.broadcast %172 : vector<1x32xf32> to vector<8x32xf32>
      %188 = arith.mulf %186, %187 : vector<8x32xf32>
      %cst_101 = arith.constant dense<0.000000e+00> : vector<8xf32>
      %189 = vector.multi_reduction <add>, %188, %cst_101 [1] : vector<8x32xf32> to vector<8xf32>
      %190 = vector.shape_cast %189 : vector<8xf32> to vector<8x1xf32>
      %191 = vector.broadcast %174 : f32 to vector<8x1xf32>
      %192 = arith.addf %190, %191 : vector<8x1xf32>
      %193 = arith.mulf %175, %178 : vector<8x32xf32>
      %194 = vector.broadcast %172 : vector<1x32xf32> to vector<8x32xf32>
      %195 = arith.mulf %193, %194 : vector<8x32xf32>
      %cst_102 = arith.constant dense<0.000000e+00> : vector<8xf32>
      %196 = vector.multi_reduction <add>, %195, %cst_102 [1] : vector<8x32xf32> to vector<8xf32>
      %197 = vector.shape_cast %196 : vector<8xf32> to vector<8x1xf32>
      %198 = vector.broadcast %174 : f32 to vector<8x1xf32>
      %199 = arith.addf %197, %198 : vector<8x1xf32>
      %200 = arith.addf %185, %192 : vector<8x1xf32>
      %201 = vector.shape_cast %200 : vector<8x1xf32> to vector<1x8xf32>
      %202 = arith.addf %185, %199 : vector<8x1xf32>
      %203 = vector.shape_cast %202 : vector<8x1xf32> to vector<1x8xf32>
      %204 = tpu.concatenate %201, %203 in 0 : vector<1x8xf32>, vector<1x8xf32> -> vector<2x8xf32>
      %c0_103 = arith.constant 0 : index
      %c0_104 = arith.constant 0 : index
      %205 = vector.load %arg18[%c0_103, %c0_104] : memref<2x8xf32, #tpu.memory_space<vmem>>, vector<2x8xf32>
      tpu.vector_store %arg18[%c0_103, %c0_104], %204 {strides = array<i32>} : memref<2x8xf32, #tpu.memory_space<vmem>>, vector<2x8xf32>,
    } else {
    }
    return
  }
  func.func @transform_0(%arg0: i32) -> (i32, i32) {
    %c0_i32 = arith.constant 0 : i32
    %c0_i32_0 = arith.constant 0 : i32
    %c0_i32_1 = arith.constant 0 : i32
    return %c0_i32, %c0_i32_0 : i32, i32
  }
  func.func @transform_1(%arg0: i32) -> (i32, i32) {
    %c0_i32 = arith.constant 0 : i32
    %c0_i32_0 = arith.constant 0 : i32
    %c0_i32_1 = arith.constant 0 : i32
    return %c0_i32, %c0_i32_0 : i32, i32
  }
  func.func @transform_2(%arg0: i32) -> (i32, i32) {
    %c0_i32 = arith.constant 0 : i32
    %c0_i32_0 = arith.constant 0 : i32
    %c0_i32_1 = arith.constant 0 : i32
    return %c0_i32, %c0_i32_0 : i32, i32
  }
  func.func @transform_3(%arg0: i32) -> (i32, i32, i32) {
    %c0_i32 = arith.constant 0 : i32
    %c0_i32_0 = arith.constant 0 : i32
    %c0_i32_1 = arith.constant 0 : i32
    return %arg0, %c0_i32, %c0_i32_0 : i32, i32, i32
  }
  func.func @transform_4(%arg0: i32) -> (i32, i32, i32) {
    %c0_i32 = arith.constant 0 : i32
    %c0_i32_0 = arith.constant 0 : i32
    %c0_i32_1 = arith.constant 0 : i32
    return %arg0, %c0_i32, %c0_i32_0 : i32, i32, i32
  }
  func.func @transform_5(%arg0: i32) -> (i32, i32, i32) {
    %c0_i32 = arith.constant 0 : i32
    %c0_i32_0 = arith.constant 0 : i32
    %c0_i32_1 = arith.constant 0 : i32
    return %arg0, %c0_i32, %c0_i32_0 : i32, i32, i32
  }
  func.func @transform_6(%arg0: i32) -> (i32, i32, i32) {
    %c0_i32 = arith.constant 0 : i32
    %c0_i32_0 = arith.constant 0 : i32
    %c0_i32_1 = arith.constant 0 : i32
    return %arg0, %c0_i32, %c0_i32_0 : i32, i32, i32
  }
  func.func @transform_7(%arg0: i32) -> (i32, i32, i32) {
    %c0_i32 = arith.constant 0 : i32
    %c0_i32_0 = arith.constant 0 : i32
    %c0_i32_1 = arith.constant 0 : i32
    return %arg0, %c0_i32, %c0_i32_0 : i32, i32, i32
  }
  func.func @transform_8(%arg0: i32) -> (i32, i32, i32) {
    %c0_i32 = arith.constant 0 : i32
    %c0_i32_0 = arith.constant 0 : i32
    %c0_i32_1 = arith.constant 0 : i32
    return %arg0, %c0_i32, %c0_i32_0 : i32, i32, i32
  }
  func.func @transform_9(%arg0: i32) -> (i32, i32, i32) {
    %c0_i32 = arith.constant 0 : i32
    %c0_i32_0 = arith.constant 0 : i32
    %c0_i32_1 = arith.constant 0 : i32
    return %arg0, %c0_i32, %c0_i32_0 : i32, i32, i32
  }
  func.func @transform_10(%arg0: i32) -> (i32, i32, i32) {
    %c0_i32 = arith.constant 0 : i32
    %c0_i32_0 = arith.constant 0 : i32
    %c0_i32_1 = arith.constant 0 : i32
    return %arg0, %c0_i32, %c0_i32_0 : i32, i32, i32
  }
  func.func @transform_11(%arg0: i32) -> (i32, i32, i32) {
    %c0_i32 = arith.constant 0 : i32
    %c0_i32_0 = arith.constant 0 : i32
    %c0_i32_1 = arith.constant 0 : i32
    return %arg0, %c0_i32, %c0_i32_0 : i32, i32, i32
  }
  func.func @transform_12(%arg0: i32) -> (i32, i32, i32) {
    %c0_i32 = arith.constant 0 : i32
    %c0_i32_0 = arith.constant 0 : i32
    %c0_i32_1 = arith.constant 0 : i32
    return %arg0, %c0_i32, %c0_i32_0 : i32, i32, i32
  }
  func.func @transform_13(%arg0: i32) -> (i32, i32, i32) {
    %c0_i32 = arith.constant 0 : i32
    %c0_i32_0 = arith.constant 0 : i32
    %c0_i32_1 = arith.constant 0 : i32
    return %arg0, %c0_i32, %c0_i32_0 : i32, i32, i32
  }
  func.func @transform_14(%arg0: i32) -> (i32, i32, i32) {
    %c0_i32 = arith.constant 0 : i32
    %c0_i32_0 = arith.constant 0 : i32
    %c0_i32_1 = arith.constant 0 : i32
    return %arg0, %c0_i32, %c0_i32_0 : i32, i32, i32
  }
  func.func @transform_15(%arg0: i32) -> (i32, i32) {
    %c0_i32 = arith.constant 0 : i32
    %c0_i32_0 = arith.constant 0 : i32
    %c0_i32_1 = arith.constant 0 : i32
    return %c0_i32, %c0_i32_0 : i32, i32
  }
  func.func @transform_16(%arg0: i32) -> (i32, i32) {
    %c0_i32 = arith.constant 0 : i32
    %c0_i32_0 = arith.constant 0 : i32
    %c0_i32_1 = arith.constant 0 : i32
    return %c0_i32, %c0_i32_0 : i32, i32
  }
  func.func @transform_17(%arg0: i32) -> (i32, i32) {
    %c0_i32 = arith.constant 0 : i32
    %c0_i32_0 = arith.constant 0 : i32
    %c0_i32_1 = arith.constant 0 : i32
    return %c0_i32, %c0_i32_0 : i32, i32
  }
}

</mosaic_0001>

<bundles_post_ra>
// kernel: tpu_custom_call.1
= control target key start
LH: loop header
LB: loop body
LE: loop exit
PB: predicated region body
PF: predicated region fallthrough
CT: control target
= control target key end

     0   :  { %s8013_s0 = inlined_call_operand.vmem [shape: f32[8,32], index: 0, kind: input, shape index: {}]   ;;  %s8014_s1 = inlined_call_operand.vmem [shape: f32[8,32], index: 1, kind: input, shape index: {}]   ;;  %s8015_s2 = inlined_call_operand.vmem [shape: f32[8,32], index: 2, kind: input, shape index: {}]   ;;  %s8016_s3 = inlined_call_operand.vmem [shape: bf16[2,32,96], index: 3, kind: input, shape index: {}]   ;;  %s8017_s4 = inlined_call_operand.vmem [shape: f32[2,1,96], index: 4, kind: input, shape index: {}]   ;;  %s8018_s5 = inlined_call_operand.vmem [shape: bf16[2,32,32], index: 5, kind: input, shape index: {}]   ;;  %s8019_s6 = inlined_call_operand.vmem [shape: f32[2,1,32], index: 6, kind: input, shape index: {}]   ;;  %s8020_s7 = inlined_call_operand.vmem [shape: f32[2,1,32], index: 7, kind: input, shape index: {}]   ;;  %s8021_s8 = inlined_call_operand.vmem [shape: f32[2,1,32], index: 8, kind: input, shape index: {}]   ;;  %s8022_s9 = inlined_call_operand.vmem [shape: bf16[2,32,2048], index: 9, kind: input, shape index: {}]   ;;  %s8023_s10 = inlined_call_operand.vmem [shape: f32[2,1,2048], index: 10, kind: input, shape index: {}]   ;;  %s8024_s11 = inlined_call_operand.vmem [shape: bf16[2,2048,32], index: 11, kind: input, shape index: {}]   ;;  %s8025_s12 = inlined_call_operand.vmem [shape: f32[2,1,32], index: 12, kind: input, shape index: {}]   ;;  %s8026_s13 = inlined_call_operand.vmem [shape: f32[2,1,32], index: 13, kind: input, shape index: {}]   ;;  %s8027_s14 = inlined_call_operand.vmem [shape: f32[2,1,32], index: 14, kind: input, shape index: {}]   ;;  %s8028_s15 = inlined_call_operand.vmem [shape: f32[1,32], index: 15, kind: input, shape index: {}]   ;;  %s8029_s16 = inlined_call_operand.<no memory space> [shape: f32[1,1], index: 16, kind: input, shape index: {}]   ;;  %s8030_s17 = inlined_call_operand.hbm [shape: f32[2,8], index: 17, kind: output, shape index: {}]  }
   0x1   :  { %8032 = sst [smem:[#allocation8_spill]] %s8013_s0  ;;  %v22_v0 = vstv %s8029_s16 }
   0x2   :  { %8033 = sst [smem:[#allocation9_spill]] %s8014_s1  ;;  %23 = vst [vmem:[#allocation3] sm:$0x1] %v22_v0 }
   0x3   :  { %8034 = sst [smem:[#allocation10_spill]] %s8015_s2 }
   0x4   :  { %8035 = sst [smem:[#allocation11_spill]] %s8016_s3 }
   0x5   :  { %8036 = sst [smem:[#allocation12_spill]] %s8018_s5 }
   0x6   :  { %8037 = sst [smem:[#allocation13_spill]] %s8028_s15 }
   0x7   :  { %8038 = sst [smem:[#allocation14_spill]] %s8030_s17 }
   0x8   :  { %24 = vsyncpa [#allocation5], 0  ;;  %s6555_s26 = smov 0  }
   0x9 LB: > { %8039 = sst [smem:[#allocation7_spill]] %s6448_s26  ;;  %s6561_s27 = sadd.s32 4294967295, %s6448_s26   ;;  %s6448_s26 = sphi %s6555_s26, %s30_s26  }
   0xa   : > { %p5350_p0 = scmp.ge.s32.totalorder %s6448_s26, 1  ;;  %p580_p1 = scmp.lt.s32.totalorder %s6448_s26, 3 }
   0xc   : > { %p581_p2 = pnand %p5350_p0, %p580_p1 }
   0xd   : > { %p667_p3 = scmp.lt.s32.totalorder (!%p581_p2), %s6561_s27, 1  ;;  %s8040_s3 = sld [smem:[#allocation11_spill]] (!%p581_p2) }
   0xe   : > { %584 = sbr.rel (%p581_p2) target bundleno = 2764 (0xacc), region = 88  ;;  %s8041_s5 = sld [smem:[#allocation12_spill]] (!%p581_p2) }
   0xf   : > { %p5360_p4 = scmp.ne.s32.totalorder (!%p581_p2), %s6561_s27, 0 }
  0x13   : > { %s6567_s16 = scalar_select %p667_p3, %s6561_s27, 1 }
  0x14   : > { %s8042_s25 = sld [smem:[#allocation8_spill]] (!%p5360_p4) }
  0x15   : > { %s6094_s28 = sshll.u32 %s6567_s16, 4  ;;  %s6096_s30 = sshll.u32 %s6567_s16, 8 }
  0x16   : > { %s671_s1 = scalar_lea.vmem %s8040_s3, %s6094_s28  ;;  %s6580_s22 = scalar_lea.vmem %s8041_s5, %s6094_s28 }
  0x17   : > { %s6598_s3 = scalar_lea.vmem %s8022_s9, %s6096_s30  ;;  %s6603_s5 = scalar_lea.vmem %s8023_s10, %s6094_s28 }
  0x18   : > { %s6097_s23 = sshll.u32 %s6567_s16, 10  ;;  %s708_s30 = scalar_lea.vmem %s8026_s13, %s6567_s16 }
  0x19   : > { %s6613_s2 = scalar_lea.vmem %s8024_s11, %s6097_s23  ;;  %s711_s20 = scalar_lea.vmem %s8027_s14, %s6567_s16 }
  0x1a   : > { %716 = sbr.rel (%p5360_p4) target bundleno = 35 (0x23), region = 92  ;;  %s8043_s23 = sld [smem:[#allocation9_spill]] (!%p5360_p4) }
  0x1b   : > { %s8044_s0 = sld [smem:[#allocation10_spill]] (!%p5360_p4) }
  0x1f   : > { %v717_v1 = vld [vmem:[%s8042_s25] sm:$0xff]  ;;  %vm718_vm0 = vcmask 261120  }
  0x20   : > { %v720_v2 = vld [vmem:[%s8043_s23] sm:$0xff]  ;;  %719 = vst.msk [vmem:[#allocation2] sm:$0xff] %vm718_vm0, %v717_v1 }
  0x21   : > { %v722_v3 = vld [vmem:[%s8044_s0] sm:$0xff]  ;;  %721 = vst.msk [vmem:[#allocation2 + $0x8] sm:$0xff] %vm718_vm0, %v720_v2 }
  0x22   : > { %723 = vst.msk [vmem:[#allocation2 + $0x10] sm:$0xff] %vm718_vm0, %v722_v3 }
  0x23 PF: > { %v6099_v4 = vld [vmem:[%s671_s1 + $0x8] sm:$0xff]  ;;  %v6098_v5 = vld [vmem:[%s671_s1] sm:$0xff]  ;;  %vm758_vm1 = vcmask 261120   ;;  %s8045_s18 = scalar_lea.vmem %s8017_s4, %s6567_s16  ;;  %s6450_s1 = smov 104   ;;  %v6454_v39 = vmov 1983009808  }
  0x24   : > { %771 = vmatpush.bf16.msra.mxu0 %v6099_v4  ;;  %v6337_v11 = vld [vmem:[%s8045_s18] ss:$0 sm:$0xff]  ;;  %s6451_s19 = smov 120   ;;  %s6452_s28 = smov 112   ;;  %v822_v40 = vunpack.c.l.s4 %v6454_v39  ;;  %vm817_vm2 = vcmask 1047556   ;;  %vm1900_vm3 = vcmask 64512  }
  0x25   : > { %s6453_s21 = smov 96   ;;  %v6455_v47 = vmov 1934713408   ;;  %s6456_s25 = smov 64   ;;  %vm2990_vm4 = vcmask 130048   ;;  %vm2994_vm5 = vcmask 195584  }
  0x26   : > { %v6743_v44 = vunpack.c.0.s8 %v822_v40  ;;  %v846_v48 = vunpack.c.l.s4 %v6455_v47  ;;  %s6457_s24 = smov 16   ;;  %s6458_s15 = smov 8  }
  0x27   : > { %v724_v6 = vld [vmem:[#allocation2] sm:$0xff]  ;;  %s6459_s23 = smov 24   ;;  %s8046_s0 = scalar_lea.vmem %s8019_s6, %s6567_s16 }
  0x28   : > { %v725_v7 = vld [vmem:[#allocation2 + $0x8] sm:$0xff]  ;;  %772 = vmatpush.bf16.msra.mxu0 %v6098_v5  ;;  %v6754_v59 = vunpack.c.0.s8 %v846_v48  ;;  %s8049_s18 = scalar_lea.vmem %s8020_s7, %s6567_s16  ;;  %p6089_p5 = scmp.ne.s32.totalorder %s6561_s27, 1 }
  0x29   : > { %v741_v8 = vpack.c.bf16 %v725_v7, %v724_v6  ;;  %v726_v9 = vld [vmem:[#allocation2 + $0x10] sm:$0xff]  ;;  %s8053_s26 = sld [smem:[#allocation13_spill]] (!%p6089_p5) }
  0x2a   : > { %v742_v10 = vpack.c.bf16 %v726_v9, %v726_v9 }
  0x2b   : > { %5369 = vmatmul.msk.bf16.vlgmr.msra.gmra.mxu0 %vm758_vm1, %v741_v8 }
  0x3b   : > { %5370 = vmatmul.msk.bf16.gmra.mxu0 %vm758_vm1, %v742_v10 }
  0xa8   : > { %v774_v12 = vpop.f32.mrf.mxu0 }
  0xa9   : > { %v6640_v13 = vadd.f32 %v6337_v11, %v774_v12 }
  0xab   : > { %1162 = vrot.lane.b32.xlu1 %v6640_v13, %s6450_s1  ;;  %1150 = vrot.lane.b32.xlu0 %v6640_v13, %s6451_s19  ;;  %v6655_v17 = vmul.f32 0.35355338, %v6640_v13 }
  0xad   : > { %v819_v46 = vrot.slane %v6655_v17, 4 }
  0xb0   : > { %v776_v14 = vpop.f32.mrf.mxu0 }
  0xb1   : > { %v6646_v15 = vadd.f32 %v6337_v11, %v776_v14 }
  0xb3   : > { %1158 = vrot.lane.b32.xlu2 %v6646_v15, %s6452_s28  ;;  %1152 = vrot.lane.b32.xlu1 %v6646_v15, %s6451_s19  ;;  %v6700_v28 = vmul.f32 0.35355338, %v6646_v15 }
  0xb4   : > { %1156 = vrot.lane.b32.xlu0 %v6640_v13, %s6452_s28 }
  0xb5   : > { %v875_v9 = vrot.slane %v6700_v28, 4 }
  0xb8   : > { %v779_v16 = vpop.f32.mrf.mxu0 }
  0xb9   : > { %v6663_v18 = vadd.f32 %v6337_v11, %v779_v16 }
  0xbb   : > { %1164 = vrot.lane.b32.xlu2 %v6646_v15, %s6450_s1  ;;  %789 = vrot.lane.b32.xlu1 %v6655_v17, %s6451_s19  ;;  %v6729_v35 = vmul.f32 0.35355338, %v6663_v18 }
  0xbc   : > { %1168 = vrot.lane.b32.xlu0 %v6640_v13, %s6453_s21 }
  0xbd   : > { %v931_v10 = vrot.slane %v6729_v35, 4 }
  0xc0   : > { %v781_v19 = vpop.f32.mrf.mxu0 }
  0xc3   : > { %798 = vrot.lane.b32.xlu2 %v6655_v17, %s6452_s28  ;;  %1160 = vrot.lane.b32.xlu1 %v6663_v18, %s6452_s28 }
  0xc4   : > { %1154 = vrot.lane.b32.xlu0 %v6663_v18, %s6451_s19 }
  0xcb   : > { %1166 = vrot.lane.b32.xlu2 %v6663_v18, %s6450_s1 }
 0x10d   : > { %v6673_v20 = vpop.permute.xlu2 %1158 }
 0x115   : > { %v6675_v21 = vpop.permute.xlu2 %1164 }
 0x116   : > { %v6307_v22 = vpack.i.bf16 %v6675_v21, %v6673_v20 }
 0x11d   : > { %v6679_v23 = vpop.permute.xlu1 %1162  ;;  %v6681_v24 = vpop.permute.xlu0 %1150 }
 0x11e   : > { %1186 = vrot.lane.b32.xlu0 %v6679_v23, %s6453_s21  ;;  %1174 = vrot.lane.b32.xlu1 %v6681_v24, %s6453_s21  ;;  %v799_v32 = vpop.permute.xlu2 %798 }
 0x11f   : > { %v816_v45 = vrot.slane %v799_v32, 4  ;;  %v820_v49 = vsel %vm817_vm2, %v799_v32, %v819_v46 }
 0x120   : > { %v828_v58 = vperm.slane %v820_v49, %v6743_v44 }
 0x121   : > { %v818_v57 = vsel %vm817_vm2, %v816_v45, %v6655_v17 }
 0x122   : > { %v824_v2 = vperm.slane %v818_v57, %v6743_v44  ;;  %v855_v11 = vrot.slane %v828_v58, 4 }
 0x125   : > { %v6697_v27 = vpop.permute.xlu1 %1152 }
 0x126   : > { %v6687_v25 = vpop.permute.xlu0 %1156  ;;  %807 = vrot.lane.b32.xlu0 %v6655_v17, %s6450_s1  ;;  %1170 = vrot.lane.b32.xlu1 %v6646_v15, %s6453_s21  ;;  %v6726_v34 = vpop.permute.xlu2 %1166 }
 0x127   : > { %v6297_v26 = vpack.i.bf16 %v6679_v23, %v6687_v25  ;;  %1180 = vrot.lane.b32.xlu2 %v6687_v25, %s6453_s21 }
 0x12d   : > { %v6708_v30 = vpop.permute.xlu1 %789 }
 0x12e   : > { %1182 = vrot.lane.b32.xlu0 %v6673_v20, %s6453_s21  ;;  %1188 = vrot.lane.b32.xlu1 %v6675_v21, %s6453_s21  ;;  %v1169_v29 = vpop.permute.xlu0 %1168  ;;  %v831_v12 = vrot.slane %v6708_v30, 4 }
 0x12f   : > { %791 = vrot.lane.b32.xlu2 %v6700_v28, %s6451_s19  ;;  %v1206_v41 = vrot.slane %v1169_v29, 4 }
 0x135   : > { %v6716_v31 = vpop.permute.xlu1 %1160 }
 0x136   : > { %800 = vrot.lane.b32.xlu0 %v6700_v28, %s6452_s28  ;;  %809 = vrot.lane.b32.xlu1 %v6700_v28, %s6450_s1  ;;  %v6718_v33 = vpop.permute.xlu0 %1154 }
 0x137   : > { %1176 = vrot.lane.b32.xlu2 %v6697_v27, %s6453_s21 }
 0x13e   : > { %1178 = vrot.lane.b32.xlu0 %v6718_v33, %s6453_s21  ;;  %1184 = vrot.lane.b32.xlu1 %v6716_v31, %s6453_s21 }
 0x13f   : > { %1172 = vrot.lane.b32.xlu2 %v6663_v18, %s6453_s21 }
 0x146   : > { %793 = vrot.lane.b32.xlu0 %v6729_v35, %s6451_s19  ;;  %802 = vrot.lane.b32.xlu1 %v6729_v35, %s6452_s28  ;;  %s8050_s28 = scalar_lea.vmem %s8021_s8, %s6567_s16 }
 0x147   : > { %1190 = vrot.lane.b32.xlu2 %v6726_v34, %s6453_s21 }
 0x14f   : > { %811 = vrot.lane.b32.xlu2 %v6729_v35, %s6450_s1 }
 0x181   : > { %v1181_v36 = vpop.permute.xlu2 %1180 }
 0x182   : > { %v1204_v37 = vrot.slane %v1181_v36, 4  ;;  %v1207_v43 = vsel %vm817_vm2, %v1181_v36, %v1206_v41 }
 0x183   : > { %v1215_v51 = vperm.slane %v1207_v43, %v6743_v44 }
 0x184   : > { %v1205_v42 = vsel %vm817_vm2, %v1204_v37, %v1169_v29  ;;  %v843_v29 = vrot.slane %v824_v2, 4 }
 0x185   : > { %v1211_v50 = vperm.slane %v1205_v42, %v6743_v44  ;;  %v1242_v63 = vrot.slane %v1215_v51, 4 }
 0x187   : > { %v1230_v62 = vrot.slane %v1211_v50, 4 }
 0x189   : > { %v6739_v38 = vpop.permute.xlu2 %791 }
 0x18a   : > { %v887_v39 = vrot.slane %v6739_v38, 4 }
 0x190   : > { %v1187_v52 = vpop.permute.xlu0 %1186  ;;  %v1175_v53 = vpop.permute.xlu1 %1174 }
 0x191   : > { %v1216_v54 = vrot.slane %v1187_v52, 4  ;;  %v6749_v55 = vpop.permute.xlu2 %1176  ;;  %v1218_v56 = vrot.slane %v1175_v53, 4 }
 0x192   : > { %v1274_v49 = vrot.slane %v6749_v55, 4 }
 0x193   : > { %v1217_v60 = vsel %vm817_vm2, %v1216_v54, %v1175_v53  ;;  %v1219_v61 = vsel %vm817_vm2, %v1187_v52, %v1218_v56 }
 0x194   : > { %v1223_v0 = vperm.slane %v1217_v60, %v6743_v44  ;;  %v1227_v1 = vperm.slane %v1219_v61, %v6743_v44 }
 0x196   : > { %v1228_v3 = vrot.slane %v1223_v0, 4  ;;  %v1231_v4 = vsel %vm817_vm2, %v1223_v0, %v1230_v62  ;;  %v1240_v5 = vrot.slane %v1227_v1, 4  ;;  %v1243_v6 = vsel %vm817_vm2, %v1227_v1, %v1242_v63 }
 0x197   : > { %v1239_v7 = vperm.slane %v1231_v4, %v6754_v59  ;;  %v1251_v8 = vperm.slane %v1243_v6, %v6754_v59 }
 0x198   : > { %v1229_v14 = vsel %vm817_vm2, %v1228_v3, %v1211_v50  ;;  %v1241_v16 = vsel %vm817_vm2, %v1240_v5, %v1215_v51  ;;  %v808_v17 = vpop.permute.xlu0 %807  ;;  %v1171_v19 = vpop.permute.xlu1 %1170 }
 0x199   : > { %v1235_v32 = vperm.slane %v1229_v14, %v6754_v59  ;;  %v1254_v36 = vrot.slane %v1239_v7, 4  ;;  %v1258_v37 = vrot.slane %v1251_v8, 4  ;;  %v1247_v40 = vperm.slane %v1241_v16, %v6754_v59  ;;  %v6774_v43 = vpop.permute.xlu2 %1172 }
 0x19a   : > { %v829_v41 = vrot.slane %v808_v17, 4  ;;  %v832_v42 = vsel %vm817_vm2, %v808_v17, %v831_v12  ;;  %v1318_v57 = vrot.slane %v6774_v43, 4  ;;  %v1262_v61 = vrot.slane %v1171_v19, 4 }
 0x19b   : > { %v1252_v45 = vrot.slane %v1235_v32, 4  ;;  %v1255_v46 = vsel %vm817_vm2, 0.0, %v1254_v36  ;;  %v1259_v47 = vsel %vm817_vm2, 0.0, %v1258_v37  ;;  %v1372_v48 = vsel %vm817_vm2, %v1254_v36, %v1235_v32 }
 0x19c   : > { %v6781_v50 = vperm.slane %v1372_v48, %v6743_v44  ;;  %v1377_v51 = vrot.slane %v1255_v46, 4  ;;  %v830_v52 = vsel %vm817_vm2, %v829_v41, %v6708_v30  ;;  %v840_v56 = vperm.slane %v832_v42, %v6743_v44 }
 0x19d   : > { %v1253_v53 = vsel %vm817_vm2, 0.0, %v1252_v45  ;;  %v836_v54 = vperm.slane %v830_v52, %v6743_v44  ;;  %v1388_v60 = vrot.slane %v1259_v47, 4  ;;  %v1256_v62 = vrot.slane %v1247_v40, 4 }
 0x19e   : > { %v1378_v63 = vsel %vm817_vm2, %v1377_v51, %v1253_v53  ;;  %v853_v3 = vrot.slane %v840_v56, 4  ;;  %v856_v4 = vsel %vm817_vm2, %v840_v56, %v855_v11  ;;  %v1383_v8 = vsel %vm817_vm2, %v1258_v37, %v1247_v40 }
 0x19f   : > { %v841_v0 = vrot.slane %v836_v54, 4  ;;  %v844_v1 = vsel %vm817_vm2, %v836_v54, %v843_v29  ;;  %v864_v5 = vperm.slane %v856_v4, %v6754_v59  ;;  %v1396_v12 = vrot.slane %v6781_v50, 4 }
 0x1a0   : > { %v852_v30 = vperm.slane %v844_v1, %v6754_v59  ;;  %v1183_v6 = vpop.permute.xlu0 %1182  ;;  %v1189_v7 = vpop.permute.xlu1 %1188  ;;  %v854_v16 = vsel %vm817_vm2, %v853_v3, %v828_v58  ;;  %v1382_v48 = vperm.slane %v1378_v63, %v6743_v44 }
 0x1a1   : > { %v842_v14 = vsel %vm817_vm2, %v841_v0, %v824_v2  ;;  %v1260_v17 = vrot.slane %v1183_v6, 4  ;;  %v1263_v29 = vsel %vm817_vm2, %v1183_v6, %v1262_v61  ;;  %v860_v11 = vperm.slane %v854_v16, %v6754_v59  ;;  %v6813_v47 = vpop.permute.xlu2 %1190 }
 0x1a2   : > { %v6800_v32 = vperm.slane %v842_v14, %v6754_v59  ;;  %v6803_v36 = vrot.slane %v852_v30, 4  ;;  %v871_v41 = vrot.slane %v864_v5, 4  ;;  %v1271_v37 = vperm.slane %v1263_v29, %v6743_v44 }
 0x1a3   : > { %v1261_v42 = vsel %vm817_vm2, %v1260_v17, %v1171_v19  ;;  %v1272_v40 = vrot.slane %v1189_v7, 4  ;;  %v1257_v2 = vsel %vm817_vm2, 0.0, %v1256_v62  ;;  %v869_v45 = vrot.slane %v860_v11, 4 }
 0x1a4   : > { %v6810_v58 = vsel %vm817_vm2, 0.0, %v6803_v36  ;;  %v872_v46 = vsel %vm817_vm2, 0.0, %v871_v41  ;;  %v865_v51 = vrot.slane %v6800_v32, 4  ;;  %v1267_v52 = vperm.slane %v1261_v42, %v6743_v44 }
 0x1a5   : > { %v990_v19 = vrot.slane %v6810_v58, 4  ;;  %v1328_v53 = vrot.slane %v6813_v47, 4  ;;  %v6821_v54 = vsel %vm817_vm2, %v871_v41, %v860_v11  ;;  %v1298_v56 = vrot.slane %v1271_v37, 4 }
 0x1a6   : > { %v1273_v61 = vsel %vm817_vm2, %v1272_v40, %v6749_v55  ;;  %v1275_v62 = vsel %vm817_vm2, %v1189_v7, %v1274_v49  ;;  %v1001_v0 = vrot.slane %v872_v46, 4  ;;  %v1286_v1 = vrot.slane %v1267_v52, 4 }
 0x1a7   : > { %v1279_v63 = vperm.slane %v1273_v61, %v6743_v44  ;;  %v1283_v3 = vperm.slane %v1275_v62, %v6743_v44  ;;  %v870_v4 = vsel %vm817_vm2, 0.0, %v869_v45  ;;  %v1387_v30 = vperm.slane %v1383_v8, %v6743_v44 }
 0x1a8   : > { %v1389_v5 = vsel %vm817_vm2, %v1388_v60, %v1257_v2  ;;  %v1397_v6 = vsel %vm817_vm2, %v1382_v48, %v1396_v12  ;;  %v801_v14 = vpop.permute.xlu0 %800 }
 0x1a9   : > { %v1284_v16 = vrot.slane %v1279_v63, 4  ;;  %v1287_v55 = vsel %vm817_vm2, %v1279_v63, %v1286_v1  ;;  %v1296_v49 = vrot.slane %v1283_v3, 4  ;;  %v1299_v7 = vsel %vm817_vm2, %v1283_v3, %v1298_v56  ;;  %v810_v3 = vpop.permute.xlu1 %809 }
 0x1aa   : > { %v1295_v17 = vperm.slane %v1287_v55, %v6754_v59  ;;  %v1307_v29 = vperm.slane %v1299_v7, %v6754_v59  ;;  %v1393_v11 = vperm.slane %v1389_v5, %v6743_v44  ;;  %v6838_v41 = vperm.slane %v1397_v6, %v6754_v59 }
 0x1ab   : > { %v1285_v60 = vsel %vm817_vm2, %v1284_v16, %v1267_v52  ;;  %v1297_v8 = vsel %vm817_vm2, %v1296_v49, %v1271_v37  ;;  %v1408_v12 = vrot.slane %v1387_v30, 4  ;;  %v873_v42 = vrot.slane %v801_v14, 4 }
 0x1ac   : > { %v6843_v40 = vperm.slane %v1285_v60, %v6754_v59  ;;  %v1303_v2 = vperm.slane %v1297_v8, %v6754_v59  ;;  %v6846_v45 = vrot.slane %v1295_v17, 4  ;;  %v1314_v46 = vrot.slane %v1307_v29, 4 }
 0x1ad   : > { %v1409_v56 = vsel %vm817_vm2, %v1393_v11, %v1408_v12  ;;  %v1424_v61 = vrot.slane %v6838_v41, 4  ;;  %v874_v62 = vsel %vm817_vm2, %v873_v42, %v6700_v28  ;;  %v876_v37 = vsel %vm817_vm2, %v801_v14, %v875_v9 }
 0x1ae   : > { %v6857_v52 = vsel %vm817_vm2, 0.0, %v6846_v45  ;;  %v1312_v1 = vrot.slane %v1303_v2, 4  ;;  %v6860_v63 = vsel %vm817_vm2, 0.0, %v1314_v46  ;;  %v1394_v5 = vrot.slane %v1382_v48, 4 }
 0x1af   : > { %v6863_v6 = vsel %vm817_vm2, %v1001_v0, %v870_v4  ;;  %v1308_v16 = vrot.slane %v6843_v40, 4  ;;  %v1431_v55 = vrot.slane %v6857_v52, 4  ;;  %v1417_v28 = vperm.slane %v1409_v56, %v6754_v59 }
 0x1b0   : > { %v1437_v9 = vsel %vm817_vm2, %v1314_v46, %v1303_v2  ;;  %v1442_v14 = vrot.slane %v6860_v63, 4  ;;  %v880_v49 = vperm.slane %v874_v62, %v6743_v44  ;;  %v884_v7 = vperm.slane %v876_v37, %v6743_v44 }
 0x1b1   : > { %v6873_v17 = vsel %vm817_vm2, 0.0, %v1312_v1  ;;  %v1425_v48 = vsel %vm817_vm2, %v1417_v28, %v1424_v61  ;;  %v885_v0 = vrot.slane %v810_v3, 4  ;;  %v888_v4 = vsel %vm817_vm2, %v810_v3, %v887_v39 }
 0x1b2   : > { %5377 = vmatpush.xpose.msk.msra.mxu1 %vm1900_vm3, %v1425_v48  ;;  %v899_v29 = vrot.slane %v880_v49, 4  ;;  %v911_v60 = vrot.slane %v884_v7, 4  ;;  %v896_v8 = vperm.slane %v888_v4, %v6743_v44  ;;  %v1395_v12 = vsel %vm817_vm2, %v1394_v5, %v6781_v50 }
 0x1b3   : > { %v6884_v42 = vperm.slane %v1437_v9, %v6743_v44  ;;  %v886_v2 = vsel %vm817_vm2, %v885_v0, %v6739_v38  ;;  %v1401_v46 = vperm.slane %v1395_v12, %v6754_v59  ;;  %v1406_v56 = vrot.slane %v1393_v11, 4  ;;  %v6899_v0 = vpop.permute.xlu2 %811 }
 0x1b4   : > { %v892_v39 = vperm.slane %v886_v2, %v6743_v44  ;;  %v909_v61 = vrot.slane %v896_v8, 4  ;;  %v912_v62 = vsel %vm817_vm2, %v896_v8, %v911_v60  ;;  %v1422_v37 = vrot.slane %v1417_v28, 4 }
 0x1b5   : > { %v920_v1 = vperm.slane %v912_v62, %v6754_v59  ;;  %v1407_v3 = vsel %vm817_vm2, %v1406_v56, %v1387_v30  ;;  %v1420_v50 = vrot.slane %v1401_v46, 4  ;;  %v866_v5 = vsel %vm817_vm2, 0.0, %v865_v51  ;;  %v1179_v62 = vpop.permute.xlu0 %1178 }
 0x1b6   : > { %v897_v9 = vrot.slane %v892_v39, 4  ;;  %v900_v38 = vsel %vm817_vm2, %v892_v39, %v899_v29  ;;  %v910_v11 = vsel %vm817_vm2, %v909_v61, %v884_v7  ;;  %v1413_v48 = vperm.slane %v1407_v3, %v6754_v59 }
 0x1b7   : > { %v908_v28 = vperm.slane %v900_v38, %v6754_v59  ;;  %v916_v4 = vperm.slane %v910_v11, %v6754_v59  ;;  %v927_v60 = vrot.slane %v920_v1, 4  ;;  %v985_v30 = vsel %vm817_vm2, %v6803_v36, %v6800_v32  ;;  %v1185_v38 = vpop.permute.xlu1 %1184 }
 0x1b8   : > { %v898_v51 = vsel %vm817_vm2, %v897_v9, %v880_v49  ;;  %v1418_v8 = vrot.slane %v1413_v48, 4  ;;  %v1421_v29 = vsel %vm817_vm2, %v1413_v48, %v1420_v50  ;;  %v989_v7 = vperm.slane %v985_v30, %v6743_v44 }
 0x1b9   : > { %v6910_v12 = vperm.slane %v898_v51, %v6754_v59  ;;  %v6912_v2 = vrot.slane %v908_v28, 4  ;;  %v925_v56 = vrot.slane %v916_v4, 4  ;;  %v928_v39 = vsel %vm817_vm2, 0.0, %v927_v60  ;;  %5373 = vmatpush.xpose.msk.msrb.mxu0 %vm1900_vm3, %v1421_v29 }
 0x1ba   : > { %v941_v61 = vrot.slane %v6899_v0, 4  ;;  %v1050_v32 = vsel %vm817_vm2, %v927_v60, %v916_v4  ;;  %v1419_v36 = vsel %vm817_vm2, %v1418_v8, %v1401_v46  ;;  %v991_v49 = vsel %vm817_vm2, %v990_v19, %v866_v5 }
 0x1bb   : > { %v921_v1 = vrot.slane %v6910_v12, 4  ;;  %v6925_v3 = vsel %vm817_vm2, 0.0, %v6912_v2  ;;  %v1055_v50 = vrot.slane %v928_v39, 4  ;;  %5371 = vmatpush.xpose.msk.msra.mxu3 %vm1900_vm3, %v1419_v36  ;;  %v1423_v9 = vsel %vm817_vm2, %v1422_v37, %v6838_v41 }
 0x1bc   : > { %v926_v46 = vsel %vm817_vm2, 0.0, %v925_v56  ;;  %v6932_v58 = vperm.slane %v1050_v32, %v6743_v44  ;;  %v995_v19 = vperm.slane %v991_v49, %v6743_v44  ;;  %v1000_v5 = vperm.slane %v6821_v54, %v6743_v44 }
 0x1bd   : > { %v1006_v11 = vperm.slane %v6863_v6, %v6743_v44  ;;  %v1009_v48 = vrot.slane %v989_v7, 4  ;;  %v1329_v41 = vsel %vm817_vm2, %v1328_v53, %v1179_v62  ;;  %v1330_v37 = vrot.slane %v1179_v62, 4 }
 0x1be   : > { %v1007_v28 = vrot.slane %v995_v19, 4  ;;  %v1021_v4 = vrot.slane %v1000_v5, 4  ;;  %v1335_v60 = vperm.slane %v1329_v41, %v6743_v44  ;;  %v1316_v30 = vrot.slane %v1185_v38, 4 }
 0x1bf   : > { %5375 = vmatpush.xpose.msk.msrb.mxu3 %vm1900_vm3, %v1423_v9  ;;  %v1019_v51 = vrot.slane %v1006_v11, 4  ;;  %v1010_v8 = vsel %vm817_vm2, %v995_v19, %v1009_v48  ;;  %v1331_v54 = vsel %vm817_vm2, %v6813_v47, %v1330_v37  ;;  %v1319_v6 = vsel %vm817_vm2, %v1185_v38, %v1318_v57 }
 0x1c0   : > { %v1008_v29 = vsel %vm817_vm2, %v1007_v28, %v989_v7  ;;  %v1018_v53 = vperm.slane %v1010_v8, %v6754_v59  ;;  %v1022_v56 = vsel %vm817_vm2, %v1006_v11, %v1021_v4  ;;  %v1339_v39 = vperm.slane %v1331_v54, %v6743_v44 }
 0x1c1   : > { %v1014_v32 = vperm.slane %v1008_v29, %v6754_v59  ;;  %v1020_v36 = vsel %vm817_vm2, %v1019_v51, %v1000_v5  ;;  %v1030_v49 = vperm.slane %v1022_v56, %v6754_v59  ;;  %v1340_v62 = vrot.slane %v1335_v60, 4 }
 0x1c2   : > { %v1026_v47 = vperm.slane %v1020_v36, %v6754_v59  ;;  %v1037_v9 = vrot.slane %v1018_v53, 4  ;;  %v1352_v19 = vrot.slane %v1339_v39, 4  ;;  %v1317_v57 = vsel %vm817_vm2, %v1316_v30, %v6774_v43 }
 0x1c3   : > { %v1044_v7 = vrot.slane %v6925_v3, 4  ;;  %v1323_v38 = vperm.slane %v1317_v57, %v6743_v44  ;;  %v1327_v11 = vperm.slane %v1319_v6, %v6743_v44  ;;  %v1033_v48 = vrot.slane %v1014_v32, 4 }
 0x1c4   : > { %v1031_v41 = vrot.slane %v1026_v47, 4  ;;  %v1038_v5 = vsel %vm817_vm2, %v1030_v49, %v1037_v9  ;;  %v1035_v37 = vrot.slane %v1030_v49, 4  ;;  %v1426_v28 = vsel %vm817_vm2, %v6846_v45, %v6843_v40  ;;  %v794_v49 = vpop.permute.xlu0 %793 }
 0x1c5   : > { %5378 = vmatmul.msk.f32.vlgmr.msra.gmra.mxu1 %vm1900_vm3, %v1038_v5  ;;  %v1341_v4 = vsel %vm817_vm2, %v1340_v62, %v1323_v38  ;;  %v1342_v43 = vrot.slane %v1323_v38, 4  ;;  %v1353_v30 = vsel %vm817_vm2, %v1352_v19, %v1327_v11  ;;  %v1354_v51 = vrot.slane %v1327_v11, 4 }
 0x1c6   : > { %v1032_v8 = vsel %vm817_vm2, %v1031_v41, %v1014_v32  ;;  %v1347_v54 = vperm.slane %v1341_v4, %v6754_v59  ;;  %v1359_v6 = vperm.slane %v1353_v30, %v6754_v59  ;;  %v1034_v29 = vsel %vm817_vm2, %v1026_v47, %v1033_v48 }
 0x1c7   : > { %v6975_v56 = vsel %vm817_vm2, %v1055_v50, %v926_v46  ;;  %5372 = vmatmul.msk.f32.vlgmr.msra.gmra.mxu3 %vm1900_vm3, %v1032_v8  ;;  %v1343_v45 = vsel %vm817_vm2, %v1335_v60, %v1342_v43  ;;  %v1355_v36 = vsel %vm817_vm2, %v1339_v39, %v1354_v51  ;;  %5374 = vmatmul.msk.f32.vlgmr.msrb.gmra.mxu0 %vm1900_vm3, %v1034_v29  ;;  %v1309_v32 = vsel %vm817_vm2, 0.0, %v1308_v16 }
 0x1c8   : > { %v1351_v62 = vperm.slane %v1343_v45, %v6754_v59  ;;  %v1363_v47 = vperm.slane %v1355_v36, %v6754_v59  ;;  %v1364_v9 = vrot.slane %v1347_v54, 4  ;;  %v1036_v50 = vsel %vm817_vm2, %v1035_v37, %v1018_v53 }
 0x1c9   : > { %v1368_v46 = vrot.slane %v1359_v6, 4  ;;  %v1430_v19 = vperm.slane %v1426_v28, %v6743_v44  ;;  %v1432_v60 = vsel %vm817_vm2, %v1431_v55, %v1309_v32  ;;  %v1443_v40 = vsel %vm817_vm2, %v1442_v14, %v6873_v17  ;;  %v803_v28 = vpop.permute.xlu1 %802 }
 0x1ca   : > { %v1366_v16 = vrot.slane %v1351_v62, 4  ;;  %v1370_v39 = vrot.slane %v1363_v47, 4  ;;  %v1462_v57 = vrot.slane %v6884_v42, 4  ;;  %v942_v53 = vsel %vm817_vm2, %v941_v61, %v794_v49 }
 0x1cb   : > { %v1436_v38 = vperm.slane %v1432_v60, %v6743_v44  ;;  %v1447_v11 = vperm.slane %v1443_v40, %v6743_v44  ;;  %v1450_v52 = vrot.slane %v1430_v19, 4  ;;  %v943_v48 = vrot.slane %v794_v49, 4 }
 0x1cc   : > { %v7002_v55 = vsel %vm817_vm2, 0.0, %v1364_v9  ;;  %v7005_v63 = vsel %vm817_vm2, 0.0, %v1366_v16  ;;  %v1371_v14 = vsel %vm817_vm2, 0.0, %v1370_v39  ;;  %v1491_v17 = vsel %vm817_vm2, %v1370_v39, %v1359_v6 }
 0x1cd   : > { %v1369_v41 = vsel %vm817_vm2, 0.0, %v1368_v46  ;;  %v7011_v61 = vperm.slane %v1491_v17, %v6743_v44  ;;  %v1496_v5 = vrot.slane %v1371_v14, 4  ;;  %v1451_v37 = vsel %vm817_vm2, %v1436_v38, %v1450_v52 }
 0x1ce   : > { %v1459_v4 = vperm.slane %v1451_v37, %v6754_v59  ;;  %v1463_v43 = vsel %vm817_vm2, %v1447_v11, %v1462_v57  ;;  %v944_v30 = vsel %vm817_vm2, %v6899_v0, %v943_v48  ;;  %v948_v51 = vperm.slane %v942_v53, %v6743_v44 }
 0x1cf   : > { %v7020_v8 = vsel %vm817_vm2, %v1366_v16, %v1347_v54  ;;  %v1485_v6 = vrot.slane %v7005_v63, 4  ;;  %5376 = vmatmul.msk.f32.vlgmr.msrb.gmra.mxu3 %vm1900_vm3, %v1036_v50  ;;  %v1471_v29 = vperm.slane %v1463_v43, %v6754_v59  ;;  %v952_v45 = vperm.slane %v944_v30, %v6743_v44 }
 0x1d0   : > { %v1497_v36 = vsel %vm817_vm2, %v1496_v5, %v1369_v41  ;;  %v953_v32 = vrot.slane %v948_v51, 4  ;;  %v929_v49 = vrot.slane %v803_v28, 4  ;;  %v932_v0 = vsel %vm817_vm2, %v803_v28, %v931_v10 }
 0x1d1   : > { %v1476_v62 = vrot.slane %v1471_v29, 4  ;;  %v965_v47 = vrot.slane %v952_v45, 4  ;;  %v940_v54 = vperm.slane %v932_v0, %v6743_v44  ;;  %v1448_v9 = vrot.slane %v1436_v38, 4 }
 0x1d2   : > { %v1516_v46 = vrot.slane %v7011_v61, 4  ;;  %v930_v50 = vsel %vm817_vm2, %v929_v49, %v6729_v35  ;;  %v1460_v60 = vrot.slane %v1447_v11, 4  ;;  %v1478_v40 = vrot.slane %v1459_v4, 4 }
 0x1d3   : > { %v1477_v16 = vsel %vm817_vm2, %v1476_v62, %v1459_v4  ;;  %v936_v39 = vperm.slane %v930_v50, %v6743_v44  ;;  %v966_v57 = vsel %vm817_vm2, %v965_v47, %v940_v54  ;;  %v967_v53 = vrot.slane %v940_v54, 4 }
 0x1d4   : > { %v7038_v10 = vperm.slane %v1497_v36, %v6743_v44  ;;  %5383 = vmatpush.xpose.msk.msrb.mxu1 %vm1900_vm3, %v1477_v16  ;;  %v972_v38 = vperm.slane %v966_v57, %v6754_v59  ;;  %v1449_v52 = vsel %vm817_vm2, %v1448_v9, %v1430_v19  ;;  %v1461_v35 = vsel %vm817_vm2, %v1460_v60, %v6884_v42 }
 0x1d5   : > { %v954_v11 = vsel %vm817_vm2, %v953_v32, %v936_v39  ;;  %v955_v48 = vrot.slane %v936_v39, 4  ;;  %v968_v14 = vsel %vm817_vm2, %v952_v45, %v967_v53  ;;  %v1455_v17 = vperm.slane %v1449_v52, %v6754_v59 }
 0x1d6   : > { %v7049_v41 = vperm.slane %v954_v11, %v6754_v59  ;;  %v976_v5 = vperm.slane %v968_v14, %v6754_v59  ;;  %v981_v37 = vrot.slane %v972_v38, 4  ;;  %v1467_v28 = vperm.slane %v1461_v35, %v6754_v59 }
 0x1d7   : > { %v956_v19 = vsel %vm817_vm2, %v948_v51, %v955_v48  ;;  %v1474_v4 = vrot.slane %v1455_v17, 4  ;;  %v1479_v42 = vsel %vm817_vm2, %v1471_v29, %v1478_v40  ;;  %v1039_v43 = vsel %vm817_vm2, %v6912_v2, %v6910_v12 }
 0x1d8   : > { %v964_v30 = vperm.slane %v956_v19, %v6754_v59  ;;  %v977_v45 = vrot.slane %v7049_v41, 4  ;;  %v983_v36 = vrot.slane %v976_v5, 4  ;;  %v922_v32 = vsel %vm817_vm2, 0.0, %v921_v1 }
 0x1d9   : > { %v1472_v49 = vrot.slane %v1467_v28, 4  ;;  %v1475_v0 = vsel %vm817_vm2, %v1467_v28, %v1474_v4  ;;  %v1043_v51 = vperm.slane %v1039_v43, %v6743_v44  ;;  %v1045_v29 = vsel %vm817_vm2, %v1044_v7, %v922_v32 }
 0x1da   : > { %v979_v62 = vrot.slane %v964_v30, 4  ;;  %v982_v2 = vsel %vm817_vm2, 0.0, %v981_v37  ;;  %v984_v47 = vsel %vm817_vm2, 0.0, %v983_v36  ;;  %v1104_v54 = vsel %vm817_vm2, %v983_v36, %v972_v38  ;;  %5381 = vmatpush.xpose.msk.msra.mxu3 %vm1900_vm3, %v1475_v0 }
 0x1db   : > { %v1514_v12 = vrot.slane %v7038_v10, 4  ;;  %v1109_v1 = vrot.slane %v984_v47, 4  ;;  %v1473_v9 = vsel %vm817_vm2, %v1472_v49, %v1455_v17  ;;  %v1049_v50 = vperm.slane %v1045_v29, %v6743_v44 }
 0x1dc   : > { %v980_v3 = vsel %vm817_vm2, 0.0, %v979_v62  ;;  %5379 = vmatpush.xpose.msk.msra.mxu2 %vm1900_vm3, %v1473_v9  ;;  %v1060_v7 = vperm.slane %v6975_v56, %v6743_v44  ;;  %v1063_v60 = vrot.slane %v1043_v51, 4  ;;  %v1075_v40 = vrot.slane %v6932_v58, 4 }
 0x1dd   : > { %v978_v16 = vsel %vm817_vm2, 0.0, %v977_v45  ;;  %v1108_v39 = vperm.slane %v1104_v54, %v6743_v44  ;;  %v1110_v57 = vsel %vm817_vm2, %v1109_v1, %v982_v2  ;;  %v1061_v53 = vrot.slane %v1049_v50, 4 }
 0x1de   : > { %v1098_v38 = vrot.slane %v980_v3, 4  ;;  %v1064_v52 = vsel %vm817_vm2, %v1049_v50, %v1063_v60  ;;  %v1076_v35 = vsel %vm817_vm2, %v1060_v7, %v1075_v40  ;;  %v1073_v11 = vrot.slane %v1060_v7, 4 }
 0x1df   : > { %v1072_v56 = vperm.slane %v1064_v52, %v6754_v59  ;;  %v1084_v48 = vperm.slane %v1076_v35, %v6754_v59  ;;  %v1062_v14 = vsel %vm817_vm2, %v1061_v53, %v1043_v51  ;;  %v1484_v17 = vperm.slane %v7020_v8, %v6743_v44 }
 0x1e0   : > { %5385 = vmatpush.xpose.msk.msrb.mxu2 %vm1900_vm3, %v1479_v42  ;;  %v1114_v5 = vperm.slane %v1110_v57, %v6743_v44  ;;  %v1068_v37 = vperm.slane %v1062_v14, %v6754_v59  ;;  %v1074_v28 = vsel %vm817_vm2, %v1073_v11, %v6932_v58  ;;  %v1486_v19 = vsel %vm817_vm2, %v1485_v6, %v7002_v55 }
 0x1e1   : > { %v1089_v4 = vrot.slane %v1084_v48, 4  ;;  %v1080_v42 = vperm.slane %v1074_v28, %v6754_v59  ;;  %v1490_v43 = vperm.slane %v1486_v19, %v6743_v44  ;;  %v1504_v30 = vrot.slane %v1484_v17, 4 }
 0x1e2   : > { %v1129_v45 = vrot.slane %v1108_v39, 4  ;;  %v1087_v8 = vrot.slane %v1068_v37, 4  ;;  %v1517_v36 = vsel %vm817_vm2, %v7038_v10, %v1516_v46  ;;  %v1515_v58 = vsel %vm817_vm2, %v1514_v12, %v7011_v61 }
 0x1e3   : > { %v1090_v63 = vsel %vm817_vm2, %v1089_v4, %v1072_v56  ;;  %v1085_v32 = vrot.slane %v1080_v42, 4  ;;  %v1505_v55 = vsel %vm817_vm2, %v1490_v43, %v1504_v30  ;;  %v1525_v6 = vperm.slane %v1517_v36, %v6754_v59 }
 0x1e4   : > { %v1127_v49 = vrot.slane %v1114_v5, 4  ;;  %5384 = vmatmul.msk.f32.vlgmr.msrb.gmra.mxu1 %vm1900_vm3, %v1090_v63  ;;  %v1088_v0 = vsel %vm817_vm2, %v1080_v42, %v1087_v8  ;;  %v1513_v51 = vperm.slane %v1505_v55, %v6754_v59  ;;  %v1502_v29 = vrot.slane %v1490_v43, 4 }
 0x1e5   : > { %v1086_v46 = vsel %vm817_vm2, %v1085_v32, %v1068_v37  ;;  %5382 = vmatmul.msk.f32.vlgmr.msra.gmra.mxu3 %vm1900_vm3, %v1088_v0  ;;  %v1530_v61 = vrot.slane %v1525_v6, 4  ;;  %v1521_v10 = vperm.slane %v1515_v58, %v6754_v59  ;;  %v1093_v2 = vsel %vm817_vm2, %v979_v62, %v7049_v41 }
 0x1e6   : > { %5380 = vmatmul.msk.f32.vlgmr.msra.gmra.mxu2 %vm1900_vm3, %v1086_v46  ;;  %v1503_v47 = vsel %vm817_vm2, %v1502_v29, %v1484_v17  ;;  %v1532_v54 = vrot.slane %v1513_v51, 4  ;;  %v1097_v12 = vperm.slane %v1093_v2, %v6743_v44  ;;  %v1099_v1 = vsel %vm817_vm2, %v1098_v38, %v978_v16 }
 0x1e7   : > { %v1531_v9 = vsel %vm817_vm2, %v1530_v61, %v1513_v51  ;;  %v1509_v50 = vperm.slane %v1503_v47, %v6754_v59  ;;  %v1526_v3 = vrot.slane %v1521_v10, 4  ;;  %v1103_v7 = vperm.slane %v1099_v1, %v6743_v44 }
 0x1e8   : > { %5391 = vmatpush.xpose.msk.msra.mxu2 %vm1900_vm3, %v1531_v9  ;;  %v1091_v60 = vrot.slane %v1072_v56, 4  ;;  %v1533_v41 = vsel %vm817_vm2, %v1525_v6, %v1532_v54  ;;  %v1128_v62 = vsel %vm817_vm2, %v1127_v49, %v1108_v39  ;;  %v1117_v40 = vrot.slane %v1097_v12, 4 }
 0x1e9   : > { %v1527_v57 = vsel %vm817_vm2, %v1526_v3, %v1509_v50  ;;  %v1528_v53 = vrot.slane %v1509_v50, 4  ;;  %v1115_v52 = vrot.slane %v1103_v7, 4  ;;  %v1134_v16 = vperm.slane %v1128_v62, %v6754_v59 }
 0x1ea   : > { %5387 = vmatpush.xpose.msk.msrb.mxu3 %vm1900_vm3, %v1527_v57  ;;  %v1130_v38 = vsel %vm817_vm2, %v1114_v5, %v1129_v45  ;;  %v1118_v39 = vsel %vm817_vm2, %v1103_v7, %v1117_v40  ;;  %v1092_v17 = vsel %vm817_vm2, %v1084_v48, %v1091_v60  ;;  %v6302_v55 = vpack.i.bf16 %v6697_v27, %v6646_v15 }
 0x1eb   : > { %v1529_v35 = vsel %vm817_vm2, %v1521_v10, %v1528_v53  ;;  %v1116_v11 = vsel %vm817_vm2, %v1115_v52, %v1097_v12  ;;  %v1139_v56 = vrot.slane %v1134_v16, 4  ;;  %v1138_v37 = vperm.slane %v1130_v38, %v6754_v59 }
 0x1ec   : > { %5389 = vmatpush.xpose.msk.msra.mxu1 %vm1900_vm3, %v1529_v35  ;;  %v1122_v14 = vperm.slane %v1116_v11, %v6754_v59  ;;  %v1126_v28 = vperm.slane %v1118_v39, %v6754_v59  ;;  %v6292_v15 = vpack.i.bf16 %v6681_v24, %v6640_v13  ;;  %v6312_v11 = vpack.i.bf16 %v6718_v33, %v6663_v18 }
 0x1ed   : > { %v1143_v42 = vrot.slane %v1138_v37, 4 }
 0x1ee   : > { %5393 = vmatpush.xpose.msk.msra.mxu3 %vm1900_vm3, %v1533_v41  ;;  %5386 = vmatmul.msk.f32.vlgmr.msrb.gmra.mxu2 %vm1900_vm3, %v1092_v17  ;;  %v1140_v5 = vsel %vm817_vm2, %v1139_v56, %v1122_v14  ;;  %v1141_v19 = vrot.slane %v1122_v14, 4  ;;  %v1145_v43 = vrot.slane %v1126_v28, 4 }
 0x1ef   : > { %5388 = vmatmul.msk.f32.vlgmr.msrb.gmra.mxu3 %vm1900_vm3, %v1140_v5  ;;  %v1144_v30 = vsel %vm817_vm2, %v1143_v42, %v1126_v28 }
 0x1f0   : > { %v1142_v4 = vsel %vm817_vm2, %v1134_v16, %v1141_v19  ;;  %v1146_v48 = vsel %vm817_vm2, %v1138_v37, %v1145_v43 }
 0x1f1   : > { %5390 = vmatmul.msk.f32.vlgmr.msra.gmra.mxu1 %vm1900_vm3, %v1142_v4 }
 0x1f6   : > { %5392 = vmatmul.msk.f32.vlgmr.msra.gmra.mxu2 %vm1900_vm3, %v1144_v30 }
 0x1f7   : > { %5394 = vmatmul.msk.f32.vlgmr.msra.gmra.mxu3 %vm1900_vm3, %v1146_v48 }
 0x242   : > { %v2002_v45 = vpop.f32.mrf.mxu1 }
 0x243   : > { %v2222_v8 = vsel %vm1900_vm3, %v2002_v45, -inf }
 0x244   : > { %2223 = vmax.xlane.f32.xlu2 %v2222_v8  ;;  %v1950_v36 = vpop.f32.mrf.mxu0 }
 0x245   : > { %v2216_v58 = vsel %vm1900_vm3, %v1950_v36, -inf }
 0x246   : > { %2217 = vmax.xlane.f32.xlu1 %v2216_v58 }
 0x24a   : > { %v1924_v63 = vpop.f32.mrf.mxu3 }
 0x24b   : > { %v2213_v32 = vsel %vm1900_vm3, %v1924_v63, -inf }
 0x24c   : > { %2214 = vmax.xlane.f32.xlu2 %v2213_v32 }
 0x252   : > { %v1976_v0 = vpop.f32.mrf.mxu3 }
 0x253   : > { %v2219_v46 = vsel %vm1900_vm3, %v1976_v0, -inf }
 0x25f   : > { %6303 = vrot.lane.b32.xlu1 %v6302_v55, %s6456_s25 }
 0x261   : > { %v2080_v6 = vpop.f32.mrf.mxu1 }
 0x262   : > { %v2231_v49 = vsel %vm1900_vm3, %v2080_v6, -inf }
 0x263   : > { %2232 = vmax.xlane.f32.xlu0 %v2231_v49 }
 0x268   : > { %v7168_v27 = vpop.f32.mrf.mxu3 }
 0x269   : > { %v7157_v51 = vpop.f32.mrf.mxu2  ;;  %v2228_v10 = vsel %vm1900_vm3, %v7168_v27, -inf }
 0x26a   : > { %v2225_v29 = vsel %vm1900_vm3, %v7157_v51, -inf }
 0x26b   : > { %2226 = vmax.xlane.f32.xlu2 %v2225_v29  ;;  %2220 = vmax.xlane.f32.xlu0 %v2219_v46 }
 0x26e   : > { %v7189_v20 = vpop.f32.mrf.mxu1 }
 0x26f   : > { %v2240_v21 = vsel %vm1900_vm3, %v7189_v20, -inf }
 0x271   : > { %v7170_v61 = vpop.f32.mrf.mxu2 }
 0x272   : > { %v7179_v23 = vpop.f32.mrf.mxu3 }
 0x273   : > { %v2237_v47 = vsel %vm1900_vm3, %v7179_v23, -inf }
 0x279   : > { %v7181_v25 = vpop.f32.mrf.mxu2 }
 0x27a   : > { %v2243_v13 = vsel %vm1900_vm3, %v7181_v25, -inf  ;;  %v7185_v24 = vpop.f32.mrf.mxu3 }
 0x27f   : > { %6298 = vrot.lane.b32.xlu0 %v6297_v26, %s6456_s25  ;;  %v2246_v26 = vsel %vm1900_vm3, %v7185_v24, -inf }
 0x283   : > { %6293 = vrot.lane.b32.xlu2 %v6292_v15, %s6456_s25 }
 0x287   : > { %6308 = vrot.lane.b32.xlu0 %v6307_v22, %s6456_s25  ;;  %v2234_v22 = vsel %vm1900_vm3, %v7170_v61, -inf }
 0x289   : > { %2229 = vmax.xlane.f32.xlu1 %v2228_v10 }
 0x291   : > { %2244 = vmax.xlane.f32.xlu1 %v2243_v13 }
 0x299   : > { %2247 = vmax.xlane.f32.xlu1 %v2246_v26 }
 0x2ac   : > { %2241 = vmax.xlane.f32.xlu2 %v2240_v21 }
 0x2b1   : > { %2235 = vmax.xlane.f32.xlu0 %v2234_v22 }
 0x2b7   : > { %v2224_v2 = vpop.xlane.xlu2 %2223 }
 0x2b8   : > { %v2252_v54 = vsub.f32 %v2002_v45, %v2224_v2 }
 0x2b9   : > { %2238 = vmax.xlane.f32.xlu0 %v2237_v47  ;;  %v2218_v12 = vpop.xlane.xlu1 %2217  ;;  %v6317_v47 = vpack.i.bf16 %v6726_v34, %v6716_v31 }
 0x2ba   : > { %v2267_v1 = vmul.f32 1.442695, %v2252_v54  ;;  %v2250_v9 = vsub.f32 %v1950_v36, %v2218_v12 }
 0x2bc   : > { %6344 = vpow2.f32 %v2267_v1  ;;  %v2263_v50 = vmul.f32 1.442695, %v2250_v9 }
 0x2be   : > { %6346 = vpow2.f32 %v2263_v50 }
 0x2bf   : > { %v2215_v3 = vpop.xlane.xlu2 %2214 }
 0x2c0   : > { %v2249_v7 = vsub.f32 %v1924_v63, %v2215_v3 }
 0x2c2   : > { %v7197_v60 = vpop.eup %6344  ;;  %v2261_v41 = vmul.f32 1.442695, %v2249_v7 }
 0x2c3   : > { %v2294_v62 = vsel %vm1900_vm3, %v7197_v60, 0.0 }
 0x2c4   : > { %v7201_v40 = vpop.eup %6346  ;;  %6348 = vpow2.f32 %v2261_v41  ;;  %2295 = vadd.xlane.f32.xlu2 %v2294_v62 }
 0x2c5   : > { %v2288_v57 = vsel %vm1900_vm3, %v7201_v40, 0.0 }
 0x2c6   : > { %2289 = vadd.xlane.f32.xlu1 %v2288_v57 }
 0x2ca   : > { %v7205_v53 = vpop.eup %6348 }
 0x2cb   : > { %v2285_v52 = vsel %vm1900_vm3, %v7205_v53, 0.0 }
 0x2cc   : > { %2286 = vadd.xlane.f32.xlu0 %v2285_v52 }
 0x2d1   : > { %v6304_v63 = vpop.permute.xlu1 %6303 }
 0x2d2   : > { %v6306_v46 = vunpack.i.h.bf16 %v6304_v63  ;;  %v6305_v15 = vunpack.i.l.bf16 %v6304_v63 }
 0x2d4   : > { %v1640_v57 = vrot.slane %v6306_v46, 4  ;;  %v1628_v52 = vrot.slane %v6305_v15, 4 }
 0x2d6   : > { %v2233_v16 = vpop.xlane.xlu0 %2232 }
 0x2d7   : > { %v2255_v38 = vsub.f32 %v2080_v6, %v2233_v16 }
 0x2d9   : > { %v2273_v35 = vmul.f32 1.442695, %v2255_v38 }
 0x2db   : > { %6350 = vpow2.f32 %v2273_v35 }
 0x2de   : > { %v2221_v56 = vpop.xlane.xlu0 %2220  ;;  %v2227_v39 = vpop.xlane.xlu2 %2226 }
 0x2df   : > { %v2251_v14 = vsub.f32 %v1976_v0, %v2221_v56  ;;  %v2253_v5 = vsub.f32 %v7157_v51, %v2227_v39 }
 0x2e0   : > { %6313 = vrot.lane.b32.xlu0 %v6312_v11, %s6456_s25 }
 0x2e1   : > { %v7212_v17 = vpop.eup %6350  ;;  %v2265_v37 = vmul.f32 1.442695, %v2251_v14  ;;  %v2269_v19 = vmul.f32 1.442695, %v2253_v5 }
 0x2e2   : > { %v2303_v28 = vsel %vm1900_vm3, %v7212_v17, 0.0 }
 0x2e3   : > { %2304 = vadd.xlane.f32.xlu1 %v2303_v28  ;;  %6352 = vpow2.f32 %v2265_v37 }
 0x2e4   : > { %6354 = vpow2.f32 %v2269_v19 }
 0x2e6   : > { %v6294_v18 = vpop.permute.xlu2 %6293 }
 0x2e7   : > { %v6296_v42 = vunpack.i.h.bf16 %v6294_v18  ;;  %v6295_v43 = vunpack.i.l.bf16 %v6294_v18 }
 0x2e9   : > { %v7217_v4 = vpop.eup %6352  ;;  %v1584_v45 = vrot.slane %v6296_v42, 4  ;;  %v1572_v8 = vrot.slane %v6295_v43, 4 }
 0x2ea   : > { %v2291_v33 = vsel %vm1900_vm3, %v7217_v4, 0.0  ;;  %v7221_v30 = vpop.eup %6354 }
 0x2eb   : > { %2292 = vadd.xlane.f32.xlu2 %v2291_v33  ;;  %v2297_v32 = vsel %vm1900_vm3, %v7221_v30, 0.0 }
 0x2f1   : > { %v6299_v48 = vpop.permute.xlu0 %6298 }
 0x2f2   : > { %v6301_v36 = vunpack.i.h.bf16 %v6299_v48  ;;  %v6300_v58 = vunpack.i.l.bf16 %v6299_v48 }
 0x2f3   : > { %2298 = vadd.xlane.f32.xlu2 %v2297_v32 }
 0x2f4   : > { %v1582_v55 = vrot.slane %v6301_v36, 4  ;;  %v1585_v6 = vsel %vm817_vm2, %v6301_v36, %v1584_v45  ;;  %v1570_v49 = vrot.slane %v6300_v58, 4  ;;  %v1573_v0 = vsel %vm817_vm2, %v6300_v58, %v1572_v8 }
 0x2f5   : > { %v1593_v51 = vperm.slane %v1585_v6, %v6743_v44  ;;  %v1581_v29 = vperm.slane %v1573_v0, %v6743_v44 }
 0x2f6   : > { %v1583_v10 = vsel %vm817_vm2, %v1582_v55, %v6296_v42  ;;  %v1571_v13 = vsel %vm817_vm2, %v1570_v49, %v6295_v43 }
 0x2f7   : > { %v1589_v26 = vperm.slane %v1583_v10, %v6743_v44  ;;  %v1606_v21 = vrot.slane %v1593_v51, 4  ;;  %v1577_v22 = vperm.slane %v1571_v13, %v6743_v44  ;;  %v1608_v2 = vrot.slane %v1581_v29, 4 }
 0x2f9   : > { %v1594_v54 = vrot.slane %v1589_v26, 4  ;;  %v1596_v12 = vrot.slane %v1577_v22, 4  ;;  %v1607_v1 = vsel %vm817_vm2, %v1606_v21, %v1581_v29  ;;  %v1609_v9 = vsel %vm817_vm2, %v1593_v51, %v1608_v2  ;;  %v6309_v50 = vpop.permute.xlu0 %6308 }
 0x2fa   : > { %v1613_v3 = vperm.slane %v1607_v1, %v6754_v59  ;;  %v1617_v7 = vperm.slane %v1609_v9, %v6754_v59  ;;  %v6311_v41 = vunpack.i.h.bf16 %v6309_v50  ;;  %v6310_v62 = vunpack.i.l.bf16 %v6309_v50 }
 0x2fb   : > { %v1595_v16 = vsel %vm817_vm2, %v1594_v54, %v1577_v22  ;;  %v1597_v38 = vsel %vm817_vm2, %v1589_v26, %v1596_v12 }
 0x2fc   : > { %v1601_v31 = vperm.slane %v1595_v16, %v6754_v59  ;;  %v1605_v34 = vperm.slane %v1597_v38, %v6754_v59  ;;  %v1622_v35 = vrot.slane %v1613_v3, 4  ;;  %v1624_v11 = vrot.slane %v1617_v7, 4  ;;  %6318 = vrot.lane.b32.xlu1 %v6317_v47, %s6456_s25 }
 0x2fd   : > { %v1638_v56 = vrot.slane %v6311_v41, 4  ;;  %v1641_v39 = vsel %vm817_vm2, %v6311_v41, %v1640_v57  ;;  %v1626_v14 = vrot.slane %v6310_v62, 4  ;;  %v1629_v37 = vsel %vm817_vm2, %v6310_v62, %v1628_v52 }
 0x2fe   : > { %v1618_v5 = vrot.slane %v1601_v31, 4  ;;  %v1620_v28 = vrot.slane %v1605_v34, 4  ;;  %v1623_v19 = vsel %vm817_vm2, 0.0, %v1622_v35  ;;  %v1625_v18 = vsel %vm817_vm2, 0.0, %v1624_v11 }
 0x2ff   : > { %v1749_v33 = vsel %vm817_vm2, %v1624_v11, %v1613_v3  ;;  %v1754_v42 = vrot.slane %v1625_v18, 4  ;;  %v1639_v43 = vsel %vm817_vm2, %v1638_v56, %v6306_v46  ;;  %v1649_v48 = vperm.slane %v1641_v39, %v6743_v44  ;;  %v2230_v46 = vpop.xlane.xlu1 %2229 }
 0x300   : > { %v1621_v45 = vsel %vm817_vm2, 0.0, %v1620_v28  ;;  %v1645_v8 = vperm.slane %v1639_v43, %v6743_v44  ;;  %v1627_v36 = vsel %vm817_vm2, %v1626_v14, %v6305_v15  ;;  %v1637_v58 = vperm.slane %v1629_v37, %v6743_v44 }
 0x301   : > { %v1743_v63 = vrot.slane %v1621_v45, 4  ;;  %v1662_v32 = vrot.slane %v1649_v48, 4  ;;  %v1633_v55 = vperm.slane %v1627_v36, %v6743_v44  ;;  %v1619_v6 = vsel %vm817_vm2, 0.0, %v1618_v5 }
 0x302   : > { %v1650_v49 = vrot.slane %v1645_v8, 4  ;;  %v1664_v0 = vrot.slane %v1637_v58, 4  ;;  %v1738_v51 = vsel %vm817_vm2, %v1620_v28, %v1601_v31  ;;  %v1753_v29 = vperm.slane %v1749_v33, %v6743_v44 }
 0x303   : > { %v1652_v10 = vrot.slane %v1633_v55, 4  ;;  %v1663_v13 = vsel %vm817_vm2, %v1662_v32, %v1637_v58  ;;  %v1742_v15 = vperm.slane %v1738_v51, %v6743_v44  ;;  %v1744_v26 = vsel %vm817_vm2, %v1743_v63, %v1619_v6 }
 0x304   : > { %v1651_v21 = vsel %vm817_vm2, %v1650_v49, %v1633_v55  ;;  %v1665_v22 = vsel %vm817_vm2, %v1649_v48, %v1664_v0  ;;  %v1669_v2 = vperm.slane %v1663_v13, %v6754_v59  ;;  %v1748_v47 = vperm.slane %v1744_v26, %v6743_v44 }
 0x305   : > { %v1653_v54 = vsel %vm817_vm2, %v1645_v8, %v1652_v10  ;;  %v1657_v12 = vperm.slane %v1651_v21, %v6754_v59  ;;  %v1673_v1 = vperm.slane %v1665_v22, %v6754_v59  ;;  %v1755_v9 = vsel %vm817_vm2, %v1754_v42, %v1623_v19 }
 0x306   : > { %v1661_v50 = vperm.slane %v1653_v54, %v6754_v59  ;;  %v1678_v3 = vrot.slane %v1669_v2, 4  ;;  %v1759_v7 = vperm.slane %v1755_v9, %v6743_v44  ;;  %v1762_v41 = vrot.slane %v1742_v15, 4 }
 0x307   : > { %v1674_v62 = vrot.slane %v1657_v12, 4  ;;  %v1680_v57 = vrot.slane %v1673_v1, 4  ;;  %v1774_v52 = vrot.slane %v1753_v29, 4  ;;  %v2254_v16 = vsub.f32 %v7168_v27, %v2230_v46  ;;  %v2245_v8 = vpop.xlane.xlu1 %2244 }
 0x308   : > { %v1676_v38 = vrot.slane %v1661_v50, 4  ;;  %v1679_v31 = vsel %vm817_vm2, 0.0, %v1678_v3  ;;  %v1763_v34 = vsel %vm817_vm2, %v1748_v47, %v1762_v41  ;;  %v1760_v35 = vrot.slane %v1748_v47, 4 }
 0x309   : > { %v1681_v11 = vsel %vm817_vm2, 0.0, %v1680_v57  ;;  %v1803_v56 = vsel %vm817_vm2, %v1680_v57, %v1669_v2  ;;  %v1771_v39 = vperm.slane %v1763_v34, %v6754_v59  ;;  %v1775_v14 = vsel %vm817_vm2, %v1759_v7, %v1774_v52 }
 0x30a   : > { %v1677_v37 = vsel %vm817_vm2, 0.0, %v1676_v38  ;;  %v1808_v5 = vrot.slane %v1681_v11, 4  ;;  %v1783_v28 = vperm.slane %v1775_v14, %v6754_v59  ;;  %v2271_v27 = vmul.f32 1.442695, %v2254_v16 }
 0x30b   : > { %v1797_v19 = vrot.slane %v1677_v37, 4  ;;  %v1761_v18 = vsel %vm817_vm2, %v1760_v35, %v1742_v15  ;;  %v1772_v33 = vrot.slane %v1759_v7, 4  ;;  %v1790_v42 = vrot.slane %v1771_v39, 4 }
 0x30c   : > { %v1788_v43 = vrot.slane %v1783_v28, 4  ;;  %6356 = vpow2.f32 %v2271_v27  ;;  %v1767_v48 = vperm.slane %v1761_v18, %v6754_v59  ;;  %v1675_v45 = vsel %vm817_vm2, 0.0, %v1674_v62 }
 0x30d   : > { %v1773_v36 = vsel %vm817_vm2, %v1772_v33, %v1753_v29  ;;  %v1791_v58 = vsel %vm817_vm2, %v1783_v28, %v1790_v42  ;;  %v1792_v63 = vsel %vm817_vm2, %v1676_v38, %v1657_v12  ;;  %v1798_v32 = vsel %vm817_vm2, %v1797_v19, %v1675_v45 }
 0x30e   : > { %v1789_v55 = vsel %vm817_vm2, %v1788_v43, %v1771_v39  ;;  %v1779_v6 = vperm.slane %v1773_v36, %v6754_v59  ;;  %2432 = vmatpush.msra.mxu0 %v1791_v58  ;;  %v1786_v49 = vrot.slane %v1767_v48, 4  ;;  %v1796_v0 = vperm.slane %v1792_v63, %v6743_v44 }
 0x30f   : > { %2409 = vmatpush.msrb.mxu3 %v1789_v55  ;;  %v1802_v51 = vperm.slane %v1798_v32, %v6743_v44  ;;  %v1807_v46 = vperm.slane %v1803_v56, %v6743_v44  ;;  %v1809_v29 = vsel %vm817_vm2, %v1808_v5, %v1679_v31  ;;  %v2259_v10 = vsub.f32 %v7181_v25, %v2245_v8  ;;  %v2248_v42 = vpop.xlane.xlu1 %2247 }
 0x310   : > { %v1784_v13 = vrot.slane %v1779_v6, 4  ;;  %v1787_v15 = vsel %vm817_vm2, %v1779_v6, %v1786_v49  ;;  %v1813_v26 = vperm.slane %v1809_v29, %v6743_v44  ;;  %v1816_v21 = vrot.slane %v1796_v0, 4 }
 0x311   : > { %2386 = vmatpush.msrb.mxu2 %v1787_v15  ;;  %v1828_v22 = vrot.slane %v1807_v46, 4  ;;  %v2281_v2 = vmul.f32 1.442695, %v2259_v10  ;;  %v1814_v47 = vrot.slane %v1802_v51, 4  ;;  %v2260_v8 = vsub.f32 %v7185_v24, %v2248_v42 }
 0x312   : > { %v7297_v54 = vpop.eup %6356  ;;  %v1785_v12 = vsel %vm817_vm2, %v1784_v13, %v1767_v48  ;;  %v1817_v1 = vsel %vm817_vm2, %v1802_v51, %v1816_v21  ;;  %v1826_v9 = vrot.slane %v1813_v26, 4 }
 0x313   : > { %2363 = vmatpush.msrb.mxu1 %v1785_v12  ;;  %v1825_v25 = vperm.slane %v1817_v1, %v6754_v59  ;;  %v1829_v50 = vsel %vm817_vm2, %v1813_v26, %v1828_v22  ;;  %6358 = vpow2.f32 %v2281_v2  ;;  %v1815_v3 = vsel %vm817_vm2, %v1814_v47, %v1796_v0 }
 0x314   : > { %v1837_v7 = vperm.slane %v1829_v50, %v6754_v59  ;;  %v1821_v41 = vperm.slane %v1815_v3, %v6754_v59  ;;  %v1827_v62 = vsel %vm817_vm2, %v1826_v9, %v1807_v46  ;;  %v2300_v57 = vsel %vm1900_vm3, %v7297_v54, 0.0 }
 0x315   : > { %v1833_v52 = vperm.slane %v1827_v62, %v6754_v59  ;;  %v1844_v16 = vrot.slane %v1825_v25, 4  ;;  %2301 = vadd.xlane.f32.xlu2 %v2300_v57 }
 0x316   : > { %v1842_v38 = vrot.slane %v1837_v7, 4  ;;  %v1840_v31 = vrot.slane %v1821_v41, 4 }
 0x317   : > { %v1838_v34 = vrot.slane %v1833_v52, 4  ;;  %v1845_v35 = vsel %vm817_vm2, %v1837_v7, %v1844_v16 }
 0x318   : > { %v1843_v11 = vsel %vm817_vm2, %v1842_v38, %v1825_v25  ;;  %2524 = vmatpush.msrb.mxu0 %v1845_v35  ;;  %v1841_v56 = vsel %vm817_vm2, %v1833_v52, %v1840_v31 }
 0x319   : > { %v7313_v39 = vpop.eup %6358  ;;  %2501 = vmatpush.msra.mxu3 %v1843_v11  ;;  %v1839_v14 = vsel %vm817_vm2, %v1838_v34, %v1821_v41  ;;  %2478 = vmatpush.msra.mxu2 %v1841_v56 }
 0x31a   : > { %2455 = vmatpush.msra.mxu1 %v1839_v14  ;;  %v2315_v37 = vsel %vm1900_vm3, %v7313_v39, 0.0 }
 0x31b   : > { %2316 = vadd.xlane.f32.xlu0 %v2315_v37 }
 0x31f   : > { %v2242_v5 = vpop.xlane.xlu2 %2241 }
 0x320   : > { %v2258_v19 = vsub.f32 %v7189_v20, %v2242_v5 }
 0x322   : > { %v2279_v33 = vmul.f32 1.442695, %v2258_v19 }
 0x324   : > { %v2236_v28 = vpop.xlane.xlu0 %2235 }
 0x325   : > { %v2256_v27 = vsub.f32 %v7170_v61, %v2236_v28  ;;  %v2283_v61 = vmul.f32 1.442695, %v2260_v8 }
 0x327   : > { %v2275_v18 = vmul.f32 1.442695, %v2256_v27 }
 0x329   : > { %6360 = vpow2.f32 %v2275_v18 }
 0x32a   : > { %6362 = vpow2.f32 %v2279_v33 }
 0x32c   : > { %v2239_v43 = vpop.xlane.xlu0 %2238 }
 0x32d   : > { %v2257_v48 = vsub.f32 %v7179_v23, %v2239_v43 }
 0x32f   : > { %v7321_v45 = vpop.eup %6360  ;;  %v2277_v36 = vmul.f32 1.442695, %v2257_v48 }
 0x330   : > { %v2306_v58 = vsel %vm1900_vm3, %v7321_v45, 0.0  ;;  %v7326_v20 = vpop.eup %6362 }
 0x331   : > { %6364 = vpow2.f32 %v2277_v36  ;;  %2307 = vadd.xlane.f32.xlu2 %v2306_v58  ;;  %v2312_v23 = vsel %vm1900_vm3, %v7326_v20, 0.0 }
 0x332   : > { %6366 = vpow2.f32 %v2283_v61 }
 0x337   : > { %v7328_v63 = vpop.eup %6364  ;;  %v2296_v32 = vpop.xlane.xlu2 %2295 }
 0x338   : > { %v2309_v24 = vsel %vm1900_vm3, %v7328_v63, 0.0  ;;  %6368 = vrcp.f32 %v2296_v32  ;;  %v7334_v6 = vpop.eup %6366 }
 0x339   : > { %2313 = vadd.xlane.f32.xlu2 %v2312_v23  ;;  %2310 = vadd.xlane.f32.xlu1 %v2309_v24  ;;  %v2290_v55 = vpop.xlane.xlu1 %2289  ;;  %v2318_v29 = vsel %vm1900_vm3, %v7334_v6, 0.0 }
 0x33a   : > { %6370 = vrcp.f32 %v2290_v55 }
 0x33e   : > { %v6369_v49 = vpop.eup %6368 }
 0x33f   : > { %v2336_v0 = vmul.f32 %v6369_v49, %v7197_v60  ;;  %v2287_v51 = vpop.xlane.xlu0 %2286 }
 0x340   : > { %v6371_v46 = vpop.eup %6370  ;;  %6372 = vrcp.f32 %v2287_v51 }
 0x341   : > { %2319 = vadd.xlane.f32.xlu2 %v2318_v29  ;;  %v2334_v10 = vmul.f32 %v6371_v46, %v7201_v40  ;;  %5398 = vmatmul.msk.f32.vlgmr.msra.gmra.mxu0 %vm1900_vm3, %v2336_v0 }
 0x343   : > { %5396 = vmatmul.msk.f32.vlgmr.msrb.gmra.mxu2 %vm1900_vm3, %v2334_v10 }
 0x346   : > { %v6373_v13 = vpop.eup %6372 }
 0x347   : > { %v2333_v15 = vmul.f32 %v6373_v13, %v7205_v53 }
 0x349   : > { %5395 = vmatmul.msk.f32.vlgmr.msrb.gmra.mxu1 %vm1900_vm3, %v2333_v15 }
 0x352   : > { %v6314_v2 = vpop.permute.xlu0 %6313 }
 0x353   : > { %v6316_v40 = vunpack.i.h.bf16 %v6314_v2  ;;  %v6315_v12 = vunpack.i.l.bf16 %v6314_v2 }
 0x355   : > { %v1696_v25 = vrot.slane %v6316_v40, 4  ;;  %v1684_v53 = vrot.slane %v6315_v12, 4 }
 0x356   : > { %v2305_v60 = vpop.xlane.xlu1 %2304 }
 0x35e   : > { %v2293_v26 = vpop.xlane.xlu2 %2292 }
 0x35f   : > { %6374 = vrcp.f32 %v2293_v26 }
 0x360   : > { %6376 = vrcp.f32 %v2305_v60 }
 0x365   : > { %v6375_v21 = vpop.eup %6374 }
 0x366   : > { %v2335_v22 = vmul.f32 %v6375_v21, %v7217_v4  ;;  %v2299_v47 = vpop.xlane.xlu2 %2298  ;;  %v6377_v1 = vpop.eup %6376 }
 0x367   : > { %6378 = vrcp.f32 %v2299_v47  ;;  %v2339_v3 = vmul.f32 %v6377_v1, %v7212_v17 }
 0x368   : > { %5397 = vmatmul.msk.f32.vlgmr.msrb.gmra.mxu3 %vm1900_vm3, %v2335_v22 }
 0x36d   : > { %v6379_v9 = vpop.eup %6378 }
 0x36e   : > { %v6319_v50 = vpop.permute.xlu1 %6318  ;;  %v2337_v7 = vmul.f32 %v6379_v9, %v7221_v30 }
 0x36f   : > { %v6321_v41 = vunpack.i.h.bf16 %v6319_v50  ;;  %v6320_v62 = vunpack.i.l.bf16 %v6319_v50 }
 0x370   : > { %5399 = vmatmul.msk.f32.vlgmr.msra.gmra.mxu1 %vm1900_vm3, %v2337_v7  ;;  %5401 = vmatmul.msk.f32.vlgmr.msra.gmra.mxu3 %vm1900_vm3, %v2339_v3 }
 0x371   : > { %v1694_v57 = vrot.slane %v6321_v41, 4  ;;  %v1697_v4 = vsel %vm817_vm2, %v6321_v41, %v1696_v25  ;;  %v1682_v52 = vrot.slane %v6320_v62, 4  ;;  %v1685_v16 = vsel %vm817_vm2, %v6320_v62, %v1684_v53 }
 0x372   : > { %v1705_v38 = vperm.slane %v1697_v4, %v6743_v44  ;;  %v1693_v31 = vperm.slane %v1685_v16, %v6743_v44 }
 0x373   : > { %v1695_v17 = vsel %vm817_vm2, %v1694_v57, %v6316_v40  ;;  %v1683_v30 = vsel %vm817_vm2, %v1682_v52, %v6315_v12 }
 0x374   : > { %v1701_v34 = vperm.slane %v1695_v17, %v6743_v44  ;;  %v1718_v35 = vrot.slane %v1705_v38, 4  ;;  %v1689_v11 = vperm.slane %v1683_v30, %v6743_v44  ;;  %v1720_v56 = vrot.slane %v1693_v31, 4 }
 0x376   : > { %v1706_v14 = vrot.slane %v1701_v34, 4  ;;  %v1708_v37 = vrot.slane %v1689_v11, 4  ;;  %v1719_v5 = vsel %vm817_vm2, %v1718_v35, %v1693_v31  ;;  %v1721_v28 = vsel %vm817_vm2, %v1705_v38, %v1720_v56 }
 0x377   : > { %v1725_v27 = vperm.slane %v1719_v5, %v6754_v59  ;;  %v1729_v19 = vperm.slane %v1721_v28, %v6754_v59 }
 0x378   : > { %v1707_v18 = vsel %vm817_vm2, %v1706_v14, %v1689_v11  ;;  %v1709_v33 = vsel %vm817_vm2, %v1701_v34, %v1708_v37 }
 0x379   : > { %v1713_v42 = vperm.slane %v1707_v18, %v6754_v59  ;;  %v1717_v43 = vperm.slane %v1709_v33, %v6754_v59  ;;  %v1734_v48 = vrot.slane %v1725_v27, 4  ;;  %v1736_v8 = vrot.slane %v1729_v19, 4 }
 0x37b   : > { %v1730_v36 = vrot.slane %v1713_v42, 4  ;;  %v1732_v58 = vrot.slane %v1717_v43, 4  ;;  %v1737_v61 = vsel %vm817_vm2, 0.0, %v1736_v8  ;;  %v1857_v32 = vsel %vm817_vm2, %v1736_v8, %v1725_v27 }
 0x37c   : > { %v1862_v23 = vrot.slane %v1737_v61, 4  ;;  %v1735_v55 = vsel %vm817_vm2, 0.0, %v1734_v48  ;;  %v1861_v0 = vperm.slane %v1857_v32, %v6743_v44 }
 0x37d   : > { %v1733_v24 = vsel %vm817_vm2, 0.0, %v1732_v58  ;;  %v1846_v49 = vsel %vm817_vm2, %v1732_v58, %v1713_v42  ;;  %v1731_v10 = vsel %vm817_vm2, 0.0, %v1730_v36 }
 0x37e   : > { %v1851_v51 = vrot.slane %v1733_v24, 4  ;;  %v1850_v46 = vperm.slane %v1846_v49, %v6743_v44  ;;  %v1863_v29 = vsel %vm817_vm2, %v1862_v23, %v1735_v55  ;;  %v1882_v15 = vrot.slane %v1861_v0, 4 }
 0x37f   : > { %v1867_v13 = vperm.slane %v1863_v29, %v6743_v44 }
 0x380   : > { %v1852_v26 = vsel %vm817_vm2, %v1851_v51, %v1731_v10  ;;  %v1870_v60 = vrot.slane %v1850_v46, 4 }
 0x381   : > { %v1856_v21 = vperm.slane %v1852_v26, %v6743_v44  ;;  %v1883_v22 = vsel %vm817_vm2, %v1867_v13, %v1882_v15  ;;  %v1880_v2 = vrot.slane %v1867_v13, 4 }
 0x382   : > { %v1891_v47 = vperm.slane %v1883_v22, %v6754_v59 }
 0x383   : > { %v1871_v40 = vsel %vm817_vm2, %v1856_v21, %v1870_v60  ;;  %v1868_v12 = vrot.slane %v1856_v21, 4  ;;  %v1881_v1 = vsel %vm817_vm2, %v1880_v2, %v1861_v0 }
 0x384   : > { %v1879_v9 = vperm.slane %v1871_v40, %v6754_v59  ;;  %v1896_v25 = vrot.slane %v1891_v47, 4  ;;  %v1887_v53 = vperm.slane %v1881_v1, %v6754_v59 }
 0x385   : > { %v1869_v50 = vsel %vm817_vm2, %v1868_v12, %v1850_v46 }
 0x386   : > { %v1897_v3 = vsel %vm817_vm2, %v1896_v25, %v1879_v9  ;;  %v1875_v7 = vperm.slane %v1869_v50, %v6754_v59  ;;  %v1892_v41 = vrot.slane %v1887_v53, 4  ;;  %v1898_v62 = vrot.slane %v1879_v9, 4 }
 0x387   : > { %2593 = vmatpush.msrb.mxu3 %v1897_v3 }
 0x388   : > { %v1893_v57 = vsel %vm817_vm2, %v1892_v41, %v1875_v7  ;;  %v1899_v4 = vsel %vm817_vm2, %v1891_v47, %v1898_v62  ;;  %v2302_v52 = vpop.xlane.xlu2 %2301  ;;  %v1894_v16 = vrot.slane %v1875_v7, 4 }
 0x389   : > { %2547 = vmatpush.msrb.mxu1 %v1893_v57  ;;  %2616 = vmatpush.msra.mxu0 %v1899_v4  ;;  %6380 = vrcp.f32 %v2302_v52 }
 0x38a   : > { %v1895_v38 = vsel %vm817_vm2, %v1887_v53, %v1894_v16 }
 0x38b   : > { %2570 = vmatpush.msrb.mxu2 %v1895_v38 }
 0x38e   : > { %v2317_v31 = vpop.xlane.xlu0 %2316 }
 0x38f   : > { %v6381_v17 = vpop.eup %6380  ;;  %6382 = vrcp.f32 %v2317_v31 }
 0x390   : > { %v2338_v30 = vmul.f32 %v6381_v17, %v7297_v54 }
 0x392   : > { %5400 = vmatmul.msk.f32.vlgmr.msra.gmra.mxu2 %vm1900_vm3, %v2338_v30 }
 0x395   : > { %v6383_v34 = vpop.eup %6382 }
 0x396   : > { %v2343_v35 = vmul.f32 %v6383_v34, %v7313_v39 }
 0x398   : > { %5405 = vmatmul.msk.f32.vlgmr.msrb.gmra.mxu3 %vm1900_vm3, %v2343_v35 }
 0x3a4   : > { %v2308_v11 = vpop.xlane.xlu2 %2307 }
 0x3a5   : > { %6384 = vrcp.f32 %v2308_v11 }
 0x3ab   : > { %v6385_v56 = vpop.eup %6384 }
 0x3ac   : > { %v2340_v14 = vmul.f32 %v6385_v56, %v7321_v45  ;;  %v2314_v37 = vpop.xlane.xlu2 %2313  ;;  %v2311_v5 = vpop.xlane.xlu1 %2310 }
 0x3ad   : > { %6386 = vrcp.f32 %v2314_v37 }
 0x3ae   : > { %6388 = vrcp.f32 %v2311_v5  ;;  %5402 = vmatmul.msk.f32.vlgmr.msrb.gmra.mxu0 %vm1900_vm3, %v2340_v14 }
 0x3b3   : > { %v6387_v28 = vpop.eup %6386 }
 0x3b4   : > { %v6389_v54 = vpop.eup %6388  ;;  %v2342_v27 = vmul.f32 %v6387_v28, %v7326_v20  ;;  %v2320_v19 = vpop.xlane.xlu2 %2319 }
 0x3b5   : > { %v2341_v39 = vmul.f32 %v6389_v54, %v7328_v63  ;;  %6390 = vrcp.f32 %v2320_v19 }
 0x3b6   : > { %5404 = vmatmul.msk.f32.vlgmr.msrb.gmra.mxu2 %vm1900_vm3, %v2342_v27 }
 0x3b7   : > { %5403 = vmatmul.msk.f32.vlgmr.msrb.gmra.mxu1 %vm1900_vm3, %v2341_v39 }
 0x3bb   : > { %v6391_v18 = vpop.eup %6390 }
 0x3bc   : > { %v2344_v45 = vmul.f32 %v6391_v18, %v7334_v6 }
 0x3be   : > { %5406 = vmatmul.msk.f32.vlgmr.msra.gmra.mxu0 %vm1900_vm3, %v2344_v45  ;;  %v2434_v43 = vpop.f32.mrf.mxu0 }
 0x3bf   : > { %v2633_v48 = vrot.slane %v2434_v43, 4 }
 0x3c6   : > { %v2388_v33 = vpop.f32.mrf.mxu2  ;;  %v2365_v20 = vpop.f32.mrf.mxu1 }
 0x3c7   : > { %v2635_v42 = vrot.slane %v2388_v33, 4  ;;  %v2634_v36 = vsel %vm817_vm2, %v2633_v48, %v2388_v33  ;;  %v2623_v58 = vrot.slane %v2365_v20, 4 }
 0x3c8   : > { %v2640_v61 = vperm.slane %v2634_v36, %v6743_v44 }
 0x3c9   : > { %v2636_v8 = vsel %vm817_vm2, %v2434_v43, %v2635_v42 }
 0x3ca   : > { %v2644_v63 = vperm.slane %v2636_v8, %v6743_v44  ;;  %v2645_v0 = vrot.slane %v2640_v61, 4 }
 0x3cc   : > { %v2657_v24 = vrot.slane %v2644_v63, 4 }
 0x3eb   : > { %v2411_v32 = vpop.f32.mrf.mxu3 }
 0x3ec   : > { %v2621_v23 = vrot.slane %v2411_v32, 4  ;;  %v2624_v6 = vsel %vm817_vm2, %v2411_v32, %v2623_v58 }
 0x3ed   : > { %v2632_v55 = vperm.slane %v2624_v6, %v6743_v44  ;;  %v2457_v28 = vpop.f32.mrf.mxu1 }
 0x3ee   : > { %v2622_v49 = vsel %vm817_vm2, %v2621_v23, %v2365_v20  ;;  %v2679_v27 = vrot.slane %v2457_v28, 4 }
 0x3ef   : > { %v2628_v51 = vperm.slane %v2622_v49, %v6743_v44  ;;  %v2658_v46 = vsel %vm817_vm2, %v2657_v24, %v2632_v55  ;;  %v2659_v29 = vrot.slane %v2632_v55, 4 }
 0x3f0   : > { %v2664_v10 = vperm.slane %v2658_v46, %v6754_v59 }
 0x3f1   : > { %v2646_v13 = vsel %vm817_vm2, %v2645_v0, %v2628_v51  ;;  %v2647_v15 = vrot.slane %v2628_v51, 4  ;;  %v2660_v26 = vsel %vm817_vm2, %v2644_v63, %v2659_v29 }
 0x3f2   : > { %v2652_v60 = vperm.slane %v2646_v13, %v6754_v59  ;;  %v2668_v21 = vperm.slane %v2660_v26, %v6754_v59  ;;  %v2673_v47 = vrot.slane %v2664_v10, 4 }
 0x3f3   : > { %v2648_v22 = vsel %vm817_vm2, %v2640_v61, %v2647_v15  ;;  %v2503_v5 = vpop.f32.mrf.mxu3 }
 0x3f4   : > { %v2656_v2 = vperm.slane %v2648_v22, %v6754_v59  ;;  %v2675_v40 = vrot.slane %v2668_v21, 4  ;;  %v2669_v12 = vrot.slane %v2652_v60, 4  ;;  %v2674_v50 = vsel %vm817_vm2, 0.0, %v2673_v47 }
 0x3f5   : > { %v2677_v54 = vrot.slane %v2503_v5, 4  ;;  %v2680_v19 = vsel %vm817_vm2, %v2503_v5, %v2679_v27 }
 0x3f6   : > { %v2671_v1 = vrot.slane %v2656_v2, 4  ;;  %v2676_v9 = vsel %vm817_vm2, 0.0, %v2675_v40  ;;  %v2800_v7 = vsel %vm817_vm2, %v2675_v40, %v2664_v10  ;;  %v2670_v62 = vsel %vm817_vm2, 0.0, %v2669_v12 }
 0x3f7   : > { %v2805_v25 = vrot.slane %v2676_v9, 4  ;;  %v2804_v16 = vperm.slane %v2800_v7, %v6743_v44  ;;  %v2678_v39 = vsel %vm817_vm2, %v2677_v54, %v2457_v28  ;;  %v2688_v45 = vperm.slane %v2680_v19, %v6743_v44 }
 0x3f8   : > { %v2672_v53 = vsel %vm817_vm2, 0.0, %v2671_v1  ;;  %v2789_v4 = vsel %vm817_vm2, %v2671_v1, %v2652_v60  ;;  %v2684_v33 = vperm.slane %v2678_v39, %v6743_v44 }
 0x3f9   : > { %v2794_v3 = vrot.slane %v2672_v53, 4  ;;  %v2806_v41 = vsel %vm817_vm2, %v2805_v25, %v2674_v50  ;;  %v2793_v17 = vperm.slane %v2789_v4, %v6743_v44  ;;  %v2825_v20 = vrot.slane %v2804_v16, 4 }
 0x3fa   : > { %v2810_v57 = vperm.slane %v2806_v41, %v6743_v44  ;;  %v2715_v36 = vrot.slane %v2688_v45, 4  ;;  %v2703_v58 = vrot.slane %v2684_v33, 4 }
 0x3fb   : > { %v2795_v52 = vsel %vm817_vm2, %v2794_v3, %v2670_v62  ;;  %v2813_v24 = vrot.slane %v2793_v17, 4 }
 0x3fc   : > { %v2799_v38 = vperm.slane %v2795_v52, %v6743_v44  ;;  %v2823_v31 = vrot.slane %v2810_v57, 4  ;;  %v2826_v0 = vsel %vm817_vm2, %v2810_v57, %v2825_v20 }
 0x3fd   : > { %v7461_v22 = vperm.slane %v2826_v0, %v6754_v59 }
 0x3fe   : > { %v2811_v30 = vrot.slane %v2799_v38, 4  ;;  %v2824_v34 = vsel %vm817_vm2, %v2823_v31, %v2804_v16  ;;  %v2814_v21 = vsel %vm817_vm2, %v2799_v38, %v2813_v24 }
 0x3ff   : > { %v7432_v35 = vperm.slane %v2824_v34, %v6754_v59  ;;  %v2839_v27 = vrot.slane %v7461_v22, 4 }
 0x400   : > { %v2812_v11 = vsel %vm817_vm2, %v2811_v30, %v2793_v17  ;;  %v7477_v30 = vperm.slane %v2814_v21, %v6754_v59 }
 0x401   : > { %v7436_v56 = vperm.slane %v2812_v11, %v6754_v59  ;;  %v2835_v14 = vrot.slane %v7432_v35, 4 }
 0x403   : > { %v7441_v37 = vsel %vm817_vm2, %v2835_v14, %v7436_v56  ;;  %v2837_v39 = vrot.slane %v7436_v56, 4 }
 0x415   : > { %v2480_v18 = vpop.f32.mrf.mxu2 }
 0x416   : > { %v2691_v42 = vrot.slane %v2480_v18, 4 }
 0x41b   : > { %v2595_v55 = vpop.f32.mrf.mxu3 }
 0x41c   : > { %v2733_v26 = vrot.slane %v2595_v55, 4 }
 0x42b   : > { %v2526_v43 = vpop.f32.mrf.mxu0 }
 0x42c   : > { %v2689_v48 = vrot.slane %v2526_v43, 4  ;;  %v2692_v8 = vsel %vm817_vm2, %v2526_v43, %v2691_v42 }
 0x42d   : > { %v2700_v63 = vperm.slane %v2692_v8, %v6743_v44 }
 0x42e   : > { %v2690_v61 = vsel %vm817_vm2, %v2689_v48, %v2480_v18 }
 0x42f   : > { %v2696_v32 = vperm.slane %v2690_v61, %v6743_v44  ;;  %v2713_v23 = vrot.slane %v2700_v63, 4  ;;  %v2716_v6 = vsel %vm817_vm2, %v2700_v63, %v2715_v36 }
 0x430   : > { %v2724_v49 = vperm.slane %v2716_v6, %v6754_v59 }
 0x431   : > { %v2701_v51 = vrot.slane %v2696_v32, 4  ;;  %v2704_v46 = vsel %vm817_vm2, %v2696_v32, %v2703_v58  ;;  %v2714_v29 = vsel %vm817_vm2, %v2713_v23, %v2688_v45 }
 0x432   : > { %v2712_v10 = vperm.slane %v2704_v46, %v6754_v59  ;;  %v2720_v13 = vperm.slane %v2714_v29, %v6754_v59  ;;  %v2731_v15 = vrot.slane %v2724_v49, 4  ;;  %v2840_v29 = vsel %vm817_vm2, %v2839_v27, %v7477_v30 }
 0x433   : > { %v2702_v60 = vsel %vm817_vm2, %v2701_v51, %v2684_v33  ;;  %v2841_v27 = vrot.slane %v7477_v30, 4 }
 0x434   : > { %v2708_v2 = vperm.slane %v2702_v60, %v6754_v59  ;;  %v2727_v47 = vrot.slane %v2712_v10, 4  ;;  %v2729_v40 = vrot.slane %v2720_v13, 4  ;;  %v2732_v12 = vsel %vm817_vm2, 0.0, %v2731_v15  ;;  %v2549_v1 = vpop.f32.mrf.mxu1 }
 0x435   : > { %v2854_v9 = vsel %vm817_vm2, %v2731_v15, %v2720_v13  ;;  %v2859_v25 = vrot.slane %v2732_v12, 4  ;;  %v2734_v53 = vsel %vm817_vm2, %v2733_v26, %v2549_v1  ;;  %v2735_v50 = vrot.slane %v2549_v1, 4 }
 0x436   : > { %v2725_v3 = vrot.slane %v2708_v2, 4  ;;  %v2728_v7 = vsel %vm817_vm2, 0.0, %v2727_v47  ;;  %v2730_v41 = vsel %vm817_vm2, 0.0, %v2729_v40  ;;  %v2843_v62 = vsel %vm817_vm2, %v2727_v47, %v2708_v2 }
 0x437   : > { %v2848_v57 = vrot.slane %v2728_v7, 4  ;;  %v2858_v4 = vperm.slane %v2854_v9, %v6743_v44  ;;  %v2860_v52 = vsel %vm817_vm2, %v2859_v25, %v2730_v41  ;;  %v2736_v16 = vsel %vm817_vm2, %v2595_v55, %v2735_v50 }
 0x438   : > { %v2864_v38 = vperm.slane %v2860_v52, %v6743_v44  ;;  %v2740_v31 = vperm.slane %v2734_v53, %v6743_v44  ;;  %v2726_v17 = vsel %vm817_vm2, 0.0, %v2725_v3  ;;  %v2744_v11 = vperm.slane %v2736_v16, %v6743_v44 }
 0x439   : > { %v2879_v34 = vrot.slane %v2858_v4, 4  ;;  %v2572_v14 = vpop.f32.mrf.mxu2  ;;  %v2847_v5 = vperm.slane %v2843_v62, %v6743_v44  ;;  %v2849_v28 = vsel %vm817_vm2, %v2848_v57, %v2726_v17  ;;  %v2838_v1 = vsel %vm817_vm2, %v7432_v35, %v2837_v39 }
 0x43a   : > { %v2747_v54 = vrot.slane %v2572_v14, 4  ;;  %v2853_v19 = vperm.slane %v2849_v28, %v6743_v44  ;;  %v2759_v18 = vrot.slane %v2740_v31, 4  ;;  %v2877_v43 = vrot.slane %v2864_v38, 4 }
 0x43b   : > { %v2618_v45 = vpop.f32.mrf.mxu0  ;;  %v2867_v33 = vrot.slane %v2847_v5, 4  ;;  %v2880_v42 = vsel %vm817_vm2, %v2864_v38, %v2879_v34  ;;  %v2771_v63 = vrot.slane %v2744_v11, 4 }
 0x43c   : > { %v2745_v48 = vrot.slane %v2618_v45, 4  ;;  %v2748_v8 = vsel %vm817_vm2, %v2618_v45, %v2747_v54  ;;  %v2888_v20 = vperm.slane %v2880_v42, %v6754_v59  ;;  %v2865_v36 = vrot.slane %v2853_v19, 4 }
 0x43d   : > { %v2756_v58 = vperm.slane %v2748_v8, %v6743_v44  ;;  %v2868_v61 = vsel %vm817_vm2, %v2853_v19, %v2867_v33  ;;  %v2878_v32 = vsel %vm817_vm2, %v2877_v43, %v2858_v4 }
 0x43e   : > { %v2746_v56 = vsel %vm817_vm2, %v2745_v48, %v2572_v14  ;;  %v2876_v23 = vperm.slane %v2868_v61, %v6754_v59  ;;  %v2893_v6 = vrot.slane %v2888_v20, 4  ;;  %v2866_v24 = vsel %vm817_vm2, %v2865_v36, %v2847_v5 }
 0x43f   : > { %v2752_v55 = vperm.slane %v2746_v56, %v6743_v44  ;;  %v2769_v49 = vrot.slane %v2756_v58, 4  ;;  %v2772_v0 = vsel %vm817_vm2, %v2756_v58, %v2771_v63  ;;  %v2872_v51 = vperm.slane %v2866_v24, %v6754_v59 }
 0x440   : > { %v2780_v46 = vperm.slane %v2772_v0, %v6754_v59  ;;  %v2894_v10 = vsel %vm817_vm2, %v2893_v6, %v2876_v23  ;;  %v2884_v13 = vperm.slane %v2878_v32, %v6754_v59  ;;  %v2895_v57 = vrot.slane %v2876_v23, 4 }
 0x441   : > { %v2757_v15 = vrot.slane %v2752_v55, 4  ;;  %v2760_v26 = vsel %vm817_vm2, %v2752_v55, %v2759_v18  ;;  %v2770_v60 = vsel %vm817_vm2, %v2769_v49, %v2744_v11  ;;  %v6322_v21 = vpack.i.bf16 %v2894_v10, %v2840_v29 }
 0x442   : > { %v2768_v2 = vperm.slane %v2760_v26, %v6754_v59  ;;  %v2776_v47 = vperm.slane %v2770_v60, %v6754_v59  ;;  %v2787_v40 = vrot.slane %v2780_v46, 4  ;;  %v2889_v9 = vrot.slane %v2884_v13, 4 }
 0x443   : > { %v2758_v12 = vsel %vm817_vm2, %v2757_v15, %v2740_v31  ;;  %6323 = vrot.lane.b32.xlu0 %v6322_v21, %s6457_s24  ;;  %v2891_v25 = vrot.slane %v2872_v51, 4  ;;  %v2896_v42 = vsel %vm817_vm2, %v2888_v20, %v2895_v57  ;;  %v2842_v63 = vsel %vm817_vm2, %v7461_v22, %v2841_v27  ;;  %v6408_v27 = vld [vmem:[#allocation2 + $0x10] sm:$0xff] }
 0x444   : > { %v2764_v53 = vperm.slane %v2758_v12, %v6754_v59  ;;  %v2783_v50 = vrot.slane %v2768_v2, 4  ;;  %v2785_v3 = vrot.slane %v2776_v47, 4  ;;  %v2788_v7 = vsel %vm817_vm2, 0.0, %v2787_v40 }
 0x445   : > { %v2913_v41 = vrot.slane %v2788_v7, 4  ;;  %v2892_v62 = vsel %vm817_vm2, %v2884_v13, %v2891_v25  ;;  %v2908_v4 = vsel %vm817_vm2, %v2787_v40, %v2776_v47  ;;  %v2890_v54 = vsel %vm817_vm2, %v2889_v9, %v2872_v51  ;;  %v6101_v51 = vld [vmem:[%s6580_s22 + $0x8] sm:$0xff] }
 0x446   : > { %v2781_v52 = vrot.slane %v2764_v53, 4  ;;  %v2784_v16 = vsel %vm817_vm2, 0.0, %v2783_v50  ;;  %v6327_v38 = vpack.i.bf16 %v2892_v62, %v2838_v1  ;;  %v2786_v35 = vsel %vm817_vm2, 0.0, %v2785_v3  ;;  %3027 = vmatpush.bf16.msra.mxu1 %v6101_v51  ;;  %6262 = vmatpush.bf16.msra.mxu2 %v6101_v51 }
 0x447   : > { %v2902_v31 = vrot.slane %v2784_v16, 4  ;;  %v2897_v17 = vsel %vm817_vm2, %v2783_v50, %v2764_v53  ;;  %v2912_v34 = vperm.slane %v2908_v4, %v6743_v44  ;;  %v2914_v11 = vsel %vm817_vm2, %v2913_v41, %v2786_v35  ;;  %v6338_v4 = vld [vmem:[%s8046_s0] ss:$0 sm:$0xff] }
 0x448   : > { %6328 = vrot.lane.b32.xlu2 %v6327_v38, %s6458_s15  ;;  %v2782_v14 = vsel %vm817_vm2, 0.0, %v2781_v52  ;;  %v2901_v5 = vperm.slane %v2897_v17, %v6743_v44  ;;  %v2918_v28 = vperm.slane %v2914_v11, %v6743_v44  ;;  %v6332_v61 = vpack.i.bf16 %v2896_v42, %v2842_v63  ;;  %v6406_v38 = vld [vmem:[#allocation2] sm:$0xff]  ;;  %v6407_v11 = vld [vmem:[#allocation2 + $0x8] sm:$0xff] }
 0x449   : > { %v2903_v19 = vsel %vm817_vm2, %v2902_v31, %v2782_v14  ;;  %v2933_v39 = vrot.slane %v2912_v34, 4 }
 0x44a   : > { %v2907_v18 = vperm.slane %v2903_v19, %v6743_v44  ;;  %v2921_v45 = vrot.slane %v2901_v5, 4  ;;  %v2931_v33 = vrot.slane %v2918_v28, 4 }
 0x44b   : > { %v2934_v48 = vsel %vm817_vm2, %v2918_v28, %v2933_v39 }
 0x44c   : > { %v2922_v43 = vsel %vm817_vm2, %v2907_v18, %v2921_v45  ;;  %v2919_v8 = vrot.slane %v2907_v18, 4  ;;  %v2932_v36 = vsel %vm817_vm2, %v2931_v33, %v2912_v34  ;;  %v2942_v20 = vperm.slane %v2934_v48, %v6754_v59 }
 0x44d   : > { %v2930_v30 = vperm.slane %v2922_v43, %v6754_v59  ;;  %v2938_v58 = vperm.slane %v2932_v36, %v6754_v59  ;;  %v6460_v45 = vmov 32.0  }
 0x44e   : > { %v2920_v44 = vsel %vm817_vm2, %v2919_v8, %v2901_v5  ;;  %v2947_v49 = vrot.slane %v2942_v20, 4  ;;  %6392 = vrcp.f32 %v6460_v45  ;;  %v5477_v45 = vld [vmem:[%s6598_s3 + $0xd0] sm:$0xf0] }
 0x44f   : > { %v2949_v32 = vrot.slane %v2930_v30, 4  ;;  %v2926_v56 = vperm.slane %v2920_v44, %v6754_v59  ;;  %v2943_v23 = vrot.slane %v2938_v58, 4  ;;  %v6100_v59 = vld [vmem:[%s6580_s22] sm:$0xff] }
 0x450   : > { %6333 = vrot.lane.b32.xlu2 %v6332_v61, %s6459_s23  ;;  %v2948_v0 = vsel %vm817_vm2, %v2947_v49, %v2930_v30  ;;  %3028 = vmatpush.bf16.msra.mxu1 %v6100_v59 }
 0x451   : > { %v2950_v6 = vsel %vm817_vm2, %v2942_v20, %v2949_v32  ;;  %v2945_v22 = vrot.slane %v2926_v56, 4  ;;  %v2944_v24 = vsel %vm817_vm2, %v2943_v23, %v2926_v56  ;;  %6263 = vmatpush.bf16.msra.mxu2 %v6100_v59 }
 0x452   : > { %2982 = vrot.lane.b32.xlu0 %v2950_v6, %s6459_s23 }
 0x453   : > { %v2946_v55 = vsel %vm817_vm2, %v2938_v58, %v2945_v22 }
 0x454   : > { %2958 = vrot.lane.b32.xlu1 %v2946_v55, %s6458_s15  ;;  %v6393_v33 = vpop.eup %6392 }
 0x455   : > { %v3052_v42 = vmul.f32 32.0, %v6393_v33  ;;  %vm3056_vm6 = vweird.f32 %v6393_v33 }
 0x457   : > { %v3053_v43 = vsub.f32 1.0, %v3052_v42 }
 0x458   : > { %2970 = vrot.lane.b32.xlu2 %v2948_v0, %s6457_s24 }
 0x459   : > { %v3054_v48 = vmul.f32 %v6393_v33, %v3053_v43 }
 0x45b   : > { %v3055_v8 = vadd.f32 %v6393_v33, %v3054_v48  ;;  %v6177_v48 = vld [vmem:[%s6613_s2 + $0x1d8] sm:$0xff] }
 0x45d   : > { %v7566_v36 = vsel %vm3056_vm6, %v6393_v33, %v3055_v8 }
 0x4a2   : > { %v6329_v46 = vpop.permute.xlu2 %6328 }
 0x4a3   : > { %v6331_v29 = vunpack.i.h.bf16 %v6329_v46  ;;  %v6330_v10 = vunpack.i.l.bf16 %v6329_v46 }
 0x4a5   : > { %v2987_v21 = vsel %vm1900_vm3, %v7441_v37, %v6330_v10  ;;  %v2988_v2 = vsel %vm1900_vm3, %v2890_v54, %v6331_v29  ;;  %v5435_v29 = vld [vmem:[%s6598_s3 + $0x80] sm:$0xf] }
 0x4a6   : > { %v6108_v10 = vld [vmem:[%s6598_s3 + $0xbc] sm:$0xf0] }
 0x4aa   : > { %v6334_v13 = vpop.permute.xlu2 %6333 }
 0x4ab   : > { %v6336_v47 = vunpack.i.h.bf16 %v6334_v13  ;;  %v6335_v40 = vunpack.i.l.bf16 %v6334_v13  ;;  %v6106_v13 = vld [vmem:[%s6598_s3 + $0x84] sm:$0xf] }
 0x4b2   : > { %v2971_v3 = vpop.permute.xlu2 %2970 }
 0x4b5   : > { %v6324_v15 = vpop.permute.xlu0 %6323 }
 0x4b6   : > { %v6326_v26 = vunpack.i.h.bf16 %v6324_v15  ;;  %v6325_v60 = vunpack.i.l.bf16 %v6324_v15  ;;  %v5436_v15 = vor.u32 %v6108_v10, %v5435_v29  ;;  %v6147_v29 = vld [vmem:[%s6598_s3 + $0x9c] sm:$0xf] }
 0x4b7   : > { %v5485_v10 = vld [vmem:[%s6598_s3 + $0xd8] sm:$0xf0] }
 0x4b8   : > { %v2991_v12 = vsel %vm2990_vm4, %v2987_v21, %v6325_v60  ;;  %v2992_v1 = vsel %vm2990_vm4, %v2988_v2, %v6326_v26  ;;  %v5437_v26 = vld [vmem:[%s6598_s3 + $0xc0] sm:$0xf0]  ;;  %v5443_v60 = vld [vmem:[%s6598_s3 + $0x88] sm:$0xf]  ;;  %3263 = vmatpush.bf16.msrb.mxu2 %v5436_v15 }
 0x4b9   : > { %v2995_v9 = vsel %vm2994_vm5, %v2991_v12, %v6335_v40  ;;  %v2996_v25 = vsel %vm2994_vm5, %v2992_v1, %v6336_v47  ;;  %v6109_v21 = vld [vmem:[%s6598_s3 + $0xc4] sm:$0xf0]  ;;  %v5440_v2 = vor.u32 %v6106_v13, %v5437_v26  ;;  %v6107_v40 = vld [vmem:[%s6598_s3 + $0x8c] sm:$0xf]  ;;  %v5467_v13 = vld [vmem:[%s6598_s3 + $0x18] sm:$0xf]  ;;  %v5488_v26 = vor.u32 %v6147_v29, %v5485_v10 }
 0x4ba   : > { %v2998_v53 = vpack.c.bf16 %v2996_v25, %v2995_v9  ;;  %v5444_v47 = vor.u32 %v6109_v21, %v5443_v60  ;;  %v5445_v12 = vld [vmem:[%s6598_s3 + $0xc8] sm:$0xf0]  ;;  %v5419_v25 = vld [vmem:[%s6598_s3] sm:$0xf]  ;;  %v6145_v60 = vld [vmem:[%s6598_s3 + $0x54] sm:$0xf0] }
 0x4bb   : > { %v5448_v1 = vor.u32 %v6107_v40, %v5445_v12  ;;  %3281 = vmatpush.bf16.msra.mxu3 %v5440_v2  ;;  %v6143_v21 = vld [vmem:[%s6598_s3 + $0x1c] sm:$0xf]  ;;  %v6340_v12 = vld [vmem:[%s8050_s28] ss:$0 sm:$0xff] }
 0x4bc   : > { %5415 = vmatmul.msk.bf16.vlgmr.msra.gmra.mxu1 %vm758_vm1, %v2998_v53  ;;  %3299 = vmatpush.bf16.msrb.mxu0 %v5444_v47  ;;  %v6104_v53 = vld [vmem:[%s6598_s3 + $0x3c] sm:$0xf0]  ;;  %v5469_v2 = vld [vmem:[%s6598_s3 + $0x58] sm:$0xf0]  ;;  %v5468_v47 = vor.u32 %v6145_v60, %v5467_v13  ;;  %v6159_v60 = vld [vmem:[%s6613_s2 + $0x148] sm:$0xff] }
 0x4bd   : > { %3317 = vmatpush.bf16.msrb.mxu1 %v5448_v1  ;;  %v6166_v29 = vld [vmem:[%s6613_s2 + $0x180] sm:$0xff] }
 0x4be   : > { %v6174_v10 = vld [vmem:[%s6613_s2 + $0x1c0] sm:$0xff] }
 0x4c4   : > { %v2983_v7 = vpop.permute.xlu0 %2982 }
 0x4c6   : > { %v2959_v50 = vpop.permute.xlu1 %2958 }
 0x4c7   : > { %v2989_v37 = vsel %vm1900_vm3, %v2944_v24, %v2959_v50  ;;  %v6102_v50 = vld [vmem:[%s6598_s3 + $0x4] sm:$0xf] }
 0x4c8   : > { %v2993_v41 = vsel %vm2990_vm4, %v2989_v37, %v2971_v3  ;;  %v5420_v37 = vor.u32 %v6104_v53, %v5419_v25 }
 0x4c9   : > { %v2997_v62 = vsel %vm2994_vm5, %v2993_v41, %v2983_v7  ;;  %v5421_v7 = vld [vmem:[%s6598_s3 + $0x40] sm:$0xf0]  ;;  %v5427_v41 = vld [vmem:[%s6598_s3 + $0x8] sm:$0xf] }
 0x4ca   : > { %v2999_v57 = vpack.c.bf16 %v2997_v62, %v2997_v62  ;;  %v6105_v62 = vld [vmem:[%s6598_s3 + $0x44] sm:$0xf0]  ;;  %3264 = vmatpush.bf16.msrb.mxu2 %v5420_v37 }
 0x4cc   : > { %5416 = vmatmul.msk.bf16.vlgmr.msra.gmra.mxu2 %vm758_vm1, %v2999_v57  ;;  %v5424_v57 = vor.u32 %v6102_v50, %v5421_v7 }
 0x4ce   : > { %3282 = vmatpush.bf16.msra.mxu3 %v5424_v57 }
 0x539   : > { %v3030_v52 = vpop.f32.mrf.mxu1 }
 0x53a   : > { %v3031_v16 = vadd.f32 %v6338_v4, %v3030_v52  ;;  %v6103_v52 = vld [vmem:[%s6598_s3 + $0xc] sm:$0xf] }
 0x53c   : > { %v3039_v35 = vadd.f32 %v6406_v38, %v3031_v16  ;;  %v5429_v16 = vld [vmem:[%s6598_s3 + $0x48] sm:$0xf0] }
 0x53e   : > { %v3042_v31 = vsel %vm758_vm1, %v3039_v35, 0.0 }
 0x53f   : > { %3043 = vadd.xlane.f32.xlu2 %v3042_v31  ;;  %v5432_v31 = vor.u32 %v6103_v52, %v5429_v16 }
 0x541   : > { %v3032_v17 = vpop.f32.mrf.mxu1  ;;  %3318 = vmatpush.bf16.msrb.mxu1 %v5432_v31  ;;  %v6181_v31 = vld [vmem:[%s6613_s2 + $0x1f8] sm:$0xff] }
 0x542   : > { %v3033_v34 = vadd.f32 %v6338_v4, %v3032_v17 }
 0x544   : > { %v3040_v14 = vadd.f32 %v6407_v11, %v3033_v34 }
 0x545   : > { %3531 = vmatpush.bf16.msra.mxu1 %v5488_v26  ;;  %v6151_v26 = vld [vmem:[%s6613_s2 + $0x108] sm:$0xff] }
 0x546   : > { %v3045_v5 = vsel %vm758_vm1, %v3040_v14, 0.0 }
 0x547   : > { %3046 = vadd.xlane.f32.xlu0 %v3045_v5 }
 0x54f   : > { %v3035_v28 = vpop.f32.mrf.mxu2 }
 0x550   : > { %v3036_v54 = vadd.f32 %v6338_v4, %v3035_v28  ;;  %v5428_v4 = vor.u32 %v6105_v62, %v5427_v41  ;;  %v5475_v28 = vld [vmem:[%s6598_s3 + $0x90] sm:$0xf] }
 0x552   : > { %v3041_v19 = vadd.f32 %v6408_v27, %v3036_v54  ;;  %3300 = vmatpush.bf16.msrb.mxu0 %v5428_v4  ;;  %v6148_v54 = vld [vmem:[%s6598_s3 + $0xcc] sm:$0xf0]  ;;  %v6146_v27 = vld [vmem:[%s6598_s3 + $0x94] sm:$0xf] }
 0x553   : > { %v5480_v33 = vor.u32 %v6146_v27, %v5477_v45  ;;  %v6164_v27 = vld [vmem:[%s6613_s2 + $0x170] sm:$0xff]  ;;  %v6163_v45 = vld [vmem:[%s6613_s2 + $0x168] sm:$0xff] }
 0x554   : > { %v3048_v39 = vsel %vm758_vm1, %v3041_v19, 0.0 }
 0x555   : > { %3049 = vadd.xlane.f32.xlu1 %v3048_v39  ;;  %3495 = vmatpush.bf16.msrb.mxu3 %v5480_v33 }
 0x557   : > { %v3037_v18 = vpop.f32.mrf.mxu2 }
 0x558   : > { %v5476_v18 = vor.u32 %v6148_v54, %v5475_v28  ;;  %v6179_v28 = vld [vmem:[%s6613_s2 + $0x1e8] sm:$0xff]  ;;  %v6156_v54 = vld [vmem:[%s6613_s2 + $0x130] sm:$0xff] }
 0x55a   : > { %3477 = vmatpush.bf16.msra.mxu2 %v5476_v18  ;;  %v6155_v18 = vld [vmem:[%s6613_s2 + $0x128] sm:$0xff] }
 0x5b2   : > { %v3044_v63 = vpop.xlane.xlu2 %3043 }
 0x5b3   : > { %v3058_v30 = vmul.f32 %v7566_v36, %v3044_v63 }
 0x5b5   : > { %v7569_v58 = vsub.f32 %v3039_v35, %v3058_v30 }
 0x5b7   : > { %v3064_v61 = vmul.f32 %v7569_v58, %v7569_v58 }
 0x5b9   : > { %v3067_v44 = vsel %vm758_vm1, %v3064_v61, 0.0  ;;  %v5459_v61 = vld [vmem:[%s6598_s3 + $0x10] sm:$0xf] }
 0x5ba   : > { %v3047_v20 = vpop.xlane.xlu0 %3046  ;;  %3068 = vadd.xlane.f32.xlu2 %v3067_v44  ;;  %v6144_v44 = vld [vmem:[%s6598_s3 + $0x4c] sm:$0xf0] }
 0x5bb   : > { %v3059_v32 = vmul.f32 %v7566_v36, %v3047_v20  ;;  %v6339_v20 = vld [vmem:[%s8049_s18] ss:$0 sm:$0xff] }
 0x5bd   : > { %v7575_v56 = vsub.f32 %v3040_v14, %v3059_v32 }
 0x5bf   : > { %v3065_v23 = vmul.f32 %v7575_v56, %v7575_v56 }
 0x5c1   : > { %v3070_v6 = vsel %vm758_vm1, %v3065_v23, 0.0  ;;  %v5460_v23 = vor.u32 %v6144_v44, %v5459_v61  ;;  %v6168_v44 = vld [vmem:[%s6613_s2 + $0x190] sm:$0xff] }
 0x5c2   : > { %3071 = vadd.xlane.f32.xlu2 %v3070_v6  ;;  %v6142_v6 = vld [vmem:[%s6598_s3 + $0x14] sm:$0xf] }
 0x5c3   : > { %3478 = vmatpush.bf16.msra.mxu2 %v5460_v23 }
 0x5c8   : > { %v3050_v22 = vpop.xlane.xlu1 %3049 }
 0x5c9   : > { %v3060_v24 = vmul.f32 %v7566_v36, %v3050_v22  ;;  %v5461_v22 = vld [vmem:[%s6598_s3 + $0x50] sm:$0xf0] }
 0x5cb   : > { %v7581_v55 = vsub.f32 %v3041_v19, %v3060_v24 }
 0x5cd   : > { %v3066_v49 = vmul.f32 %v7581_v55, %v7581_v55 }
 0x5cf   : > { %v3073_v0 = vsel %vm758_vm1, %v3066_v49, 0.0  ;;  %v5464_v49 = vor.u32 %v6142_v6, %v5461_v22  ;;  %v6153_v6 = vld [vmem:[%s6613_s2 + $0x118] sm:$0xff] }
 0x5d0   : > { %3074 = vadd.xlane.f32.xlu0 %v3073_v0  ;;  %v5483_v0 = vld [vmem:[%s6598_s3 + $0x98] sm:$0xf] }
 0x5d1   : > { %3496 = vmatpush.bf16.msrb.mxu3 %v5464_v49  ;;  %v6161_v22 = vld [vmem:[%s6613_s2 + $0x158] sm:$0xff]  ;;  %v6175_v49 = vld [vmem:[%s6613_s2 + $0x1c8] sm:$0xff] }
 0x62d   : > { %v3069_v51 = vpop.xlane.xlu2 %3068 }
 0x62e   : > { %v3076_v59 = vmul.f32 %v3069_v51, %v7566_v36  ;;  %v6149_v51 = vld [vmem:[%s6598_s3 + $0xd4] sm:$0xf0] }
 0x630   : > { %v3079_v46 = vadd.f32 1e-05, %v3076_v59 }
 0x632   : > { %6394 = vrsqrt.f32 %v3079_v46  ;;  %vm3088_vm8 = vweird.f32 %v3079_v46 }
 0x635   : > { %v3072_v9 = vpop.xlane.xlu2 %3071 }
 0x636   : > { %v3077_v3 = vmul.f32 %v3072_v9, %v7566_v36 }
 0x638   : > { %v6395_v38 = vpop.eup %6394  ;;  %v3080_v35 = vadd.f32 1e-05, %v3077_v3 }
 0x639   : > { %v3083_v17 = vmul.f32 %v6395_v38, %v3079_v46  ;;  %vm3089_vm7 = vweird.f32 %v6395_v38  ;;  %v5484_v46 = vor.u32 %v6149_v51, %v5483_v0 }
 0x63a   : > { %6396 = vrsqrt.f32 %v3080_v35  ;;  %vm7608_vm9 = vmor %vm3088_vm8, %vm3089_vm7  ;;  %vm3098_vm11 = vweird.f32 %v3080_v35 }
 0x63b   : > { %v3084_v34 = vmul.f32 %v6395_v38, %v3083_v17  ;;  %3513 = vmatpush.bf16.msra.mxu0 %v5484_v46  ;;  %v6172_v17 = vld [vmem:[%s6613_s2 + $0x1b0] sm:$0xff] }
 0x63c   : > { %v6160_v46 = vld [vmem:[%s6613_s2 + $0x150] sm:$0xff] }
 0x63d   : > { %v3085_v11 = vmul.f32 0.5, %v3084_v34  ;;  %v6180_v34 = vld [vmem:[%s6613_s2 + $0x1f0] sm:$0xff] }
 0x63f   : > { %v3086_v14 = vsub.f32 1.5, %v3085_v11  ;;  %3514 = vmatpush.bf16.msra.mxu0 %v5468_v47  ;;  %v6157_v11 = vld [vmem:[%s6613_s2 + $0x138] sm:$0xff]  ;;  %v6150_v47 = vld [vmem:[%s6613_s2 + $0x100] sm:$0xff] }
 0x640   : > { %v6397_v5 = vpop.eup %6396 }
 0x641   : > { %v3087_v19 = vmul.f32 %v6395_v38, %v3086_v14  ;;  %v3093_v39 = vmul.f32 %v6397_v5, %v3080_v35  ;;  %vm3099_vm10 = vweird.f32 %v6397_v5  ;;  %v6165_v14 = vld [vmem:[%s6613_s2 + $0x178] sm:$0xff] }
 0x642   : > { %vm3100_vm12 = vmor %vm3098_vm11, %vm3099_vm10 }
 0x643   : > { %v3094_v42 = vmul.f32 %v6397_v5, %v3093_v39  ;;  %v3075_v43 = vpop.xlane.xlu0 %3074  ;;  %v3091_v63 = vsel %vm7608_vm9, %v6395_v38, %v3087_v19  ;;  %v6170_v19 = vld [vmem:[%s6613_s2 + $0x1a0] sm:$0xff] }
 0x644   : > { %v3078_v8 = vmul.f32 %v3075_v43, %v7566_v36  ;;  %v3112_v59 = vmul.f32 %v3091_v63, %v7569_v58  ;;  %v5472_v58 = vor.u32 %v6143_v21, %v5469_v2  ;;  %v6178_v39 = vld [vmem:[%s6613_s2 + $0x1e0] sm:$0xff]  ;;  %v6169_v43 = vld [vmem:[%s6613_s2 + $0x198] sm:$0xff] }
 0x645   : > { %v3095_v30 = vmul.f32 0.5, %v3094_v42  ;;  %v6162_v63 = vld [vmem:[%s6613_s2 + $0x160] sm:$0xff]  ;;  %v6133_v21 = vld [vmem:[%s6613_s2 + $0xb8] sm:$0xff] }
 0x646   : > { %v3081_v32 = vadd.f32 1e-05, %v3078_v8  ;;  %v3118_v1 = vmul.f32 %v6339_v20, %v3112_v59  ;;  %3532 = vmatpush.bf16.msra.mxu1 %v5472_v58  ;;  %v6154_v8 = vld [vmem:[%s6613_s2 + $0x120] sm:$0xff]  ;;  %v6152_v59 = vld [vmem:[%s6613_s2 + $0x110] sm:$0xff]  ;;  %v6141_v2 = vld [vmem:[%s6613_s2 + $0xf8] sm:$0xff] }
 0x647   : > { %v3096_v24 = vsub.f32 1.5, %v3095_v30 }
 0x648   : > { %6398 = vrsqrt.f32 %v3081_v32  ;;  %v7640_v3 = vadd.f32 %v6340_v12, %v3118_v1  ;;  %vm3108_vm14 = vweird.f32 %v3081_v32  ;;  %v6132_v1 = vld [vmem:[%s6613_s2 + $0xb0] sm:$0xff] }
 0x649   : > { %v3097_v15 = vmul.f32 %v6397_v5, %v3096_v24  ;;  %v6167_v24 = vld [vmem:[%s6613_s2 + $0x188] sm:$0xff] }
 0x64b   : > { %v3101_v40 = vsel %vm3100_vm12, %v6397_v5, %v3097_v15  ;;  %v6171_v5 = vld [vmem:[%s6613_s2 + $0x1a8] sm:$0xff] }
 0x64c   : > { %v3113_v9 = vmul.f32 %v3101_v40, %v7575_v56  ;;  %v6158_v40 = vld [vmem:[%s6613_s2 + $0x140] sm:$0xff] }
 0x64e   : > { %v6399_v25 = vpop.eup %6398  ;;  %v3119_v53 = vmul.f32 %v6339_v20, %v3113_v9  ;;  %v6140_v9 = vld [vmem:[%s6613_s2 + $0xf0] sm:$0xff] }
 0x64f   : > { %v3103_v50 = vmul.f32 %v6399_v25, %v3081_v32  ;;  %vm3109_vm13 = vweird.f32 %v6399_v25 }
 0x650   : > { %v7642_v37 = vadd.f32 %v6340_v12, %v3119_v53  ;;  %vm3110_vm15 = vmor %vm3108_vm14, %vm3109_vm13 }
 0x651   : > { %v3104_v7 = vmul.f32 %v6399_v25, %v3103_v50  ;;  %v6117_v50 = vld [vmem:[%s6613_s2 + $0x38] sm:$0xff] }
 0x652   : > { %v7646_v41 = vpack.c.bf16 %v7642_v37, %v7640_v3 }
 0x653   : > { %v3105_v62 = vmul.f32 0.5, %v3104_v7  ;;  %v6125_v7 = vld [vmem:[%s6613_s2 + $0x78] sm:$0xff] }
 0x654   : > { %5449 = vmatmul.msk.bf16.vlgmr.msrb.gmra.mxu2 %vm758_vm1, %v7646_v41  ;;  %5451 = vmatmul.msk.bf16.vlgmr.msra.gmra.mxu3 %vm758_vm1, %v7646_v41 }
 0x655   : > { %v3106_v56 = vsub.f32 1.5, %v3105_v62  ;;  %5453 = vmatmul.msk.bf16.vlgmr.msrb.gmra.mxu0 %vm758_vm1, %v7646_v41  ;;  %5455 = vmatmul.msk.bf16.vlgmr.msrb.gmra.mxu1 %vm758_vm1, %v7646_v41  ;;  %v6131_v62 = vld [vmem:[%s6613_s2 + $0xa8] sm:$0xff] }
 0x656   : > { %3809 = vmatpush.bf16.msrb.mxu1 %v6181_v31  ;;  %3755 = vmatpush.bf16.msrb.mxu2 %v6157_v11  ;;  %v6138_v31 = vld [vmem:[%s6613_s2 + $0xe0] sm:$0xff] }
 0x657   : > { %v3107_v57 = vmul.f32 %v6399_v25, %v3106_v56  ;;  %3773 = vmatpush.bf16.msra.mxu3 %v6165_v14  ;;  %v6139_v56 = vld [vmem:[%s6613_s2 + $0xe8] sm:$0xff]  ;;  %v3357_v11 = vld [vmem:[%s6603_s5 + $0x4] sm:$0xf] }
 0x659   : > { %v3111_v4 = vsel %vm3110_vm15, %v6399_v25, %v3107_v57  ;;  %v6116_v57 = vld [vmem:[%s6613_s2 + $0x30] sm:$0xff] }
 0x65a   : > { %v3114_v52 = vmul.f32 %v3111_v4, %v7581_v55  ;;  %v6173_v55 = vld [vmem:[%s6613_s2 + $0x1b8] sm:$0xff]  ;;  %3810 = vmatpush.bf16.msrb.mxu1 %v6180_v34  ;;  %3756 = vmatpush.bf16.msrb.mxu2 %v6156_v54  ;;  %v6124_v4 = vld [vmem:[%s6613_s2 + $0x70] sm:$0xff]  ;;  %v6123_v34 = vld [vmem:[%s6613_s2 + $0x68] sm:$0xff] }
 0x65b   : > { %3791 = vmatpush.bf16.msrb.mxu0 %v6173_v55  ;;  %3774 = vmatpush.bf16.msra.mxu3 %v6164_v27  ;;  %v6130_v55 = vld [vmem:[%s6613_s2 + $0xa0] sm:$0xff]  ;;  %v6137_v54 = vld [vmem:[%s6613_s2 + $0xd8] sm:$0xff] }
 0x65c   : > { %v3120_v16 = vmul.f32 %v6339_v20, %v3114_v52  ;;  %v6176_v20 = vld [vmem:[%s6613_s2 + $0x1d0] sm:$0xff]  ;;  %v6114_v27 = vld [vmem:[%s6613_s2 + $0x20] sm:$0xff] }
 0x65e   : > { %v7657_v38 = vadd.f32 %v6340_v12, %v3120_v16  ;;  %3811 = vmatpush.bf16.msrb.mxu1 %v6179_v28  ;;  %3757 = vmatpush.bf16.msrb.mxu2 %v6155_v18  ;;  %v6129_v28 = vld [vmem:[%s6613_s2 + $0x98] sm:$0xff]  ;;  %v7764_v18 = vperm.slane %v3357_v11, 3 }
 0x65f   : > { %3792 = vmatpush.bf16.msrb.mxu0 %v6172_v17  ;;  %3775 = vmatpush.bf16.msra.mxu3 %v6163_v45  ;;  %v6115_v17 = vld [vmem:[%s6613_s2 + $0x28] sm:$0xff] }
 0x660   : > { %v7661_v35 = vpack.c.bf16 %v7657_v38, %v7657_v38 }
 0x662   : > { %3812 = vmatpush.bf16.msrb.mxu1 %v6178_v39  ;;  %3758 = vmatpush.bf16.msrb.mxu2 %v6154_v8  ;;  %v7762_v39 = vperm.slane %v3357_v11, 2  ;;  %v6136_v8 = vld [vmem:[%s6613_s2 + $0xd0] sm:$0xff] }
 0x663   : > { %3793 = vmatpush.bf16.msrb.mxu0 %v6171_v5  ;;  %3776 = vmatpush.bf16.msra.mxu3 %v6162_v63  ;;  %v6113_v63 = vld [vmem:[%s6613_s2 + $0x18] sm:$0xff] }
 0x664   : > { %5450 = vmatmul.msk.bf16.gmra.mxu2 %vm758_vm1, %v7661_v35  ;;  %5452 = vmatmul.msk.bf16.gmra.mxu3 %vm758_vm1, %v7661_v35 }
 0x665   : > { %5454 = vmatmul.msk.bf16.gmra.mxu0 %vm758_vm1, %v7661_v35  ;;  %5456 = vmatmul.msk.bf16.gmra.mxu1 %vm758_vm1, %v7661_v35 }
 0x666   : > { %3813 = vmatpush.bf16.msrb.mxu1 %v6177_v48  ;;  %3759 = vmatpush.bf16.msrb.mxu2 %v6153_v6  ;;  %v6128_v48 = vld [vmem:[%s6613_s2 + $0x90] sm:$0xff] }
 0x667   : > { %3794 = vmatpush.bf16.msrb.mxu0 %v6170_v19  ;;  %3777 = vmatpush.bf16.msra.mxu3 %v6161_v22  ;;  %v6122_v19 = vld [vmem:[%s6613_s2 + $0x60] sm:$0xff]  ;;  %v7772_v22 = vperm.slane %v3357_v11, 0 }
 0x66a   : > { %3814 = vmatpush.bf16.msrb.mxu1 %v6176_v20  ;;  %3760 = vmatpush.bf16.msrb.mxu2 %v6152_v59 }
 0x66b   : > { %3795 = vmatpush.bf16.msrb.mxu0 %v6169_v43  ;;  %3778 = vmatpush.bf16.msra.mxu3 %v6160_v46 }
 0x66e   : > { %3815 = vmatpush.bf16.msrb.mxu1 %v6175_v49  ;;  %3761 = vmatpush.bf16.msrb.mxu2 %v6151_v26  ;;  %v6135_v26 = vld [vmem:[%s6613_s2 + $0xc8] sm:$0xff] }
 0x66f   : > { %3796 = vmatpush.bf16.msrb.mxu0 %v6168_v44  ;;  %3779 = vmatpush.bf16.msra.mxu3 %v6159_v60  ;;  %v6121_v44 = vld [vmem:[%s6613_s2 + $0x58] sm:$0xff]  ;;  %v6112_v60 = vld [vmem:[%s6613_s2 + $0x10] sm:$0xff] }
 0x672   : > { %3816 = vmatpush.bf16.msrb.mxu1 %v6174_v10  ;;  %3762 = vmatpush.bf16.msrb.mxu2 %v6150_v47  ;;  %v6127_v10 = vld [vmem:[%s6613_s2 + $0x88] sm:$0xff] }
 0x673   : > { %3797 = vmatpush.bf16.msrb.mxu0 %v6167_v24  ;;  %3780 = vmatpush.bf16.msra.mxu3 %v6158_v40  ;;  %v7774_v24 = vperm.slane %v3357_v11, 1 }
 0x674   : > { %5489 = vmatmul.msk.bf16.vlgmr.msra.gmra.mxu2 %vm758_vm1, %v7646_v41  ;;  %5491 = vmatmul.msk.bf16.vlgmr.msrb.gmra.mxu3 %vm758_vm1, %v7646_v41 }
 0x675   : > { %5493 = vmatmul.msk.bf16.vlgmr.msra.gmra.mxu0 %vm758_vm1, %v7646_v41  ;;  %5495 = vmatmul.msk.bf16.vlgmr.msra.gmra.mxu1 %vm758_vm1, %v7646_v41 }
 0x676   : > { %4073 = vmatpush.bf16.msra.mxu1 %v6141_v2  ;;  %4019 = vmatpush.bf16.msra.mxu2 %v6117_v50 }
 0x677   : > { %3798 = vmatpush.bf16.msrb.mxu0 %v6166_v29  ;;  %4037 = vmatpush.bf16.msrb.mxu3 %v6125_v7 }
 0x67a   : > { %4074 = vmatpush.bf16.msra.mxu1 %v6140_v9  ;;  %4020 = vmatpush.bf16.msra.mxu2 %v6116_v57  ;;  %v6134_v57 = vld [vmem:[%s6613_s2 + $0xc0] sm:$0xff] }
 0x67b   : > { %4055 = vmatpush.bf16.msra.mxu0 %v6133_v21  ;;  %4038 = vmatpush.bf16.msrb.mxu3 %v6124_v4  ;;  %v6120_v21 = vld [vmem:[%s6613_s2 + $0x50] sm:$0xff] }
 0x67e   : > { %4075 = vmatpush.bf16.msra.mxu1 %v6139_v56  ;;  %4021 = vmatpush.bf16.msra.mxu2 %v6115_v17  ;;  %v6126_v56 = vld [vmem:[%s6613_s2 + $0x80] sm:$0xff] }
 0x67f   : > { %4056 = vmatpush.bf16.msra.mxu0 %v6132_v1  ;;  %4039 = vmatpush.bf16.msrb.mxu3 %v6123_v34 }
 0x682   : > { %4076 = vmatpush.bf16.msra.mxu1 %v6138_v31  ;;  %4022 = vmatpush.bf16.msra.mxu2 %v6114_v27  ;;  %v6110_v27 = vld [vmem:[%s6613_s2] sm:$0xff] }
 0x683   : > { %4057 = vmatpush.bf16.msra.mxu0 %v6131_v62  ;;  %4040 = vmatpush.bf16.msrb.mxu3 %v6122_v19  ;;  %v6118_v19 = vld [vmem:[%s6613_s2 + $0x40] sm:$0xff] }
 0x684   : > { %5490 = vmatmul.msk.bf16.gmra.mxu2 %vm758_vm1, %v7661_v35  ;;  %5492 = vmatmul.msk.bf16.gmra.mxu3 %vm758_vm1, %v7661_v35 }
 0x685   : > { %5494 = vmatmul.msk.bf16.gmra.mxu0 %vm758_vm1, %v7661_v35  ;;  %5496 = vmatmul.msk.bf16.gmra.mxu1 %vm758_vm1, %v7661_v35 }
 0x686   : > { %4077 = vmatpush.bf16.msra.mxu1 %v6137_v54  ;;  %4023 = vmatpush.bf16.msra.mxu2 %v6113_v63 }
 0x687   : > { %4058 = vmatpush.bf16.msra.mxu0 %v6130_v55  ;;  %4041 = vmatpush.bf16.msrb.mxu3 %v6121_v44  ;;  %v6119_v55 = vld [vmem:[%s6613_s2 + $0x48] sm:$0xff] }
 0x68a   : > { %4078 = vmatpush.bf16.msra.mxu1 %v6136_v8  ;;  %4024 = vmatpush.bf16.msra.mxu2 %v6112_v60 }
 0x68b   : > { %4059 = vmatpush.bf16.msra.mxu0 %v6129_v28  ;;  %4042 = vmatpush.bf16.msrb.mxu3 %v6120_v21 }
 0x68e   : > { %4079 = vmatpush.bf16.msra.mxu1 %v6135_v26 }
 0x68f   : > { %4060 = vmatpush.bf16.msra.mxu0 %v6128_v48  ;;  %4043 = vmatpush.bf16.msrb.mxu3 %v6119_v55  ;;  %v6186_v48 = vld [vmem:[%s6598_s3 + $0xa4] sm:$0xf]  ;;  %v6184_v55 = vld [vmem:[%s6598_s3 + $0x5c] sm:$0xf0] }
 0x692   : > { %4080 = vmatpush.bf16.msra.mxu1 %v6134_v57 }
 0x693   : > { %4061 = vmatpush.bf16.msra.mxu0 %v6127_v10  ;;  %4044 = vmatpush.bf16.msrb.mxu3 %v6118_v19  ;;  %v5765_v19 = vld [vmem:[%s6598_s3 + $0x68] sm:$0xf0] }
 0x697   : > { %4062 = vmatpush.bf16.msra.mxu0 %v6126_v56 }
 0x6d2   : > { %v7701_v33 = vpop.f32.mrf.mxu0  ;;  %v7703_v42 = vpop.f32.mrf.mxu1 }
 0x6d7   : > { %v7709_v30 = vpop.f32.mrf.mxu2  ;;  %v7711_v61 = vpop.f32.mrf.mxu3 }
 0x6da   : > { %v7715_v32 = vpop.f32.mrf.mxu0  ;;  %v7717_v23 = vpop.f32.mrf.mxu1 }
 0x6df   : > { %v7723_v0 = vpop.f32.mrf.mxu2  ;;  %v7725_v51 = vpop.f32.mrf.mxu3 }
 0x6e2   : > { %v7731_v13 = vpop.f32.mrf.mxu0  ;;  %v7733_v15 = vpop.f32.mrf.mxu1 }
 0x6e7   : > { %v7741_v58 = vpop.f32.mrf.mxu2  ;;  %v7743_v12 = vpop.f32.mrf.mxu3 }
 0x6ea   : > { %v3309_v25 = vpop.f32.mrf.mxu0  ;;  %v3327_v53 = vpop.f32.mrf.mxu1 }
 0x6ef   : > { %v3273_v52 = vpop.f32.mrf.mxu2  ;;  %v3291_v16 = vpop.f32.mrf.mxu3 }
 0x6f0   : > { %v6111_v16 = vld [vmem:[%s6613_s2 + $0x8] sm:$0xff] }
 0x6f1   : > { %4025 = vmatpush.bf16.msra.mxu2 %v6111_v16  ;;  %v5755_v16 = vld [vmem:[%s6598_s3 + $0x20] sm:$0xf] }
 0x6f2   : > { %v3516_v14 = vpop.f32.mrf.mxu0  ;;  %v3534_v5 = vpop.f32.mrf.mxu1 }
 0x6f3   : > { %v3517_v20 = vadd.f32 %v3516_v14, %v7762_v39  ;;  %v3535_v6 = vadd.f32 %v3534_v5, %v7764_v18 }
 0x6f5   : > { %v3545_v2 = vmax.f32 %v3517_v20, 0.0  ;;  %v3546_v47 = vmax.f32 %v3535_v6, 0.0  ;;  %4026 = vmatpush.bf16.msra.mxu2 %v6110_v27  ;;  %v6183_v27 = vld [vmem:[%s6598_s3 + $0x2c] sm:$0xf] }
 0x6f7   : > { %v3480_v45 = vpop.f32.mrf.mxu2  ;;  %v3498_v43 = vpop.f32.mrf.mxu3 }
 0x6f8   : > { %v3481_v9 = vadd.f32 %v3480_v45, %v7772_v22  ;;  %v3499_v25 = vadd.f32 %v3498_v43, %v7774_v24  ;;  %v5771_v45 = vld [vmem:[%s6598_s3 + $0xa0] sm:$0xf] }
 0x6f9   : > { %v6188_v43 = vld [vmem:[%s6598_s3 + $0xdc] sm:$0xf0] }
 0x6fa   : > { %v3518_v49 = vpop.f32.mrf.mxu0  ;;  %v3536_v59 = vpop.f32.mrf.mxu1  ;;  %v3543_v31 = vmax.f32 %v3481_v9, 0.0  ;;  %v3544_v17 = vmax.f32 %v3499_v25, 0.0  ;;  %v5772_v6 = vor.u32 %v6188_v43, %v5771_v45  ;;  %v3135_v9 = vld [vmem:[%s6603_s5] sm:$0xf] }
 0x6fb   : > { %v3519_v46 = vadd.f32 %v3518_v49, %v7762_v39  ;;  %v3537_v29 = vadd.f32 %v3536_v59, %v7764_v18  ;;  %v5773_v49 = vld [vmem:[%s6598_s3 + $0xe0] sm:$0xf0]  ;;  %v3204_v45 = vperm.slane %v3135_v9, 1 }
 0x6fc   : > { %v5776_v59 = vor.u32 %v6186_v48, %v5773_v49  ;;  %v5768_v48 = vor.u32 %v6183_v27, %v5765_v19 }
 0x6fd   : > { %v3549_v40 = vmax.f32 %v3519_v46, 0.0  ;;  %v3550_v1 = vmax.f32 %v3537_v29, 0.0  ;;  %v3285_v49 = vadd.f32 %v7711_v61, %v3204_v45 }
 0x6ff   : > { %v3557_v53 = vpack.c.bf16 %v3549_v40, %v3545_v2  ;;  %v3558_v50 = vpack.c.bf16 %v3550_v1, %v3546_v47  ;;  %v3482_v7 = vpop.f32.mrf.mxu2  ;;  %v3500_v62 = vpop.f32.mrf.mxu3 }
 0x700   : > { %v3483_v4 = vadd.f32 %v3482_v7, %v7772_v22  ;;  %v3501_v52 = vadd.f32 %v3500_v62, %v7774_v24  ;;  %v6189_v7 = vld [vmem:[%s6598_s3 + $0xe4] sm:$0xf0]  ;;  %v6187_v62 = vld [vmem:[%s6598_s3 + $0xac] sm:$0xf] }
 0x701   : > { %3799 = vmatmul.bf16.vlgmr.msrb.gmra.mxu0 %v3557_v53  ;;  %3817 = vmatmul.bf16.vlgmr.msrb.gmra.mxu1 %v3558_v50  ;;  %v5779_v50 = vld [vmem:[%s6598_s3 + $0xa8] sm:$0xf] }
 0x702   : > { %v3547_v34 = vmax.f32 %v3483_v4, 0.0  ;;  %v3548_v11 = vmax.f32 %v3501_v52, 0.0  ;;  %v3521_v14 = vpop.f32.mrf.mxu0  ;;  %v3539_v5 = vpop.f32.mrf.mxu1  ;;  %v5780_v4 = vor.u32 %v6189_v7, %v5779_v50  ;;  %v5781_v52 = vld [vmem:[%s6598_s3 + $0xe8] sm:$0xf0] }
 0x703   : > { %v3522_v8 = vadd.f32 %v3521_v14, %v7762_v39  ;;  %v3540_v63 = vadd.f32 %v3539_v5, %v7764_v18  ;;  %v5763_v14 = vld [vmem:[%s6598_s3 + $0x28] sm:$0xf] }
 0x704   : > { %v3555_v28 = vpack.c.bf16 %v3547_v34, %v3543_v31  ;;  %v3556_v54 = vpack.c.bf16 %v3548_v11, %v3544_v17  ;;  %v5784_v31 = vor.u32 %v6187_v62, %v5781_v52  ;;  %v5756_v17 = vor.u32 %v6184_v55, %v5755_v16  ;;  %v6182_v34 = vld [vmem:[%s6598_s3 + $0x24] sm:$0xf]  ;;  %4255 = vmatpush.bf16.msrb.mxu0 %v5780_v4  ;;  %v6213_v4 = vld [vmem:[%s6613_s2 + $0x2b8] sm:$0xff] }
 0x705   : > { %v3553_v10 = vmax.f32 %v3522_v8, 0.0  ;;  %v3554_v26 = vmax.f32 %v3540_v63, 0.0  ;;  %v5757_v11 = vld [vmem:[%s6598_s3 + $0x60] sm:$0xf0]  ;;  %v6221_v52 = vld [vmem:[%s6613_s2 + $0x2f8] sm:$0xff] }
 0x706   : > { %3763 = vmatmul.bf16.vlgmr.msrb.gmra.mxu2 %v3555_v28  ;;  %3781 = vmatmul.bf16.vlgmr.msra.gmra.mxu3 %v3556_v54  ;;  %v5760_v54 = vor.u32 %v6182_v34, %v5757_v11 }
 0x707   : > { %v3485_v44 = vpop.f32.mrf.mxu2  ;;  %v3503_v20 = vpop.f32.mrf.mxu3  ;;  %4219 = vmatpush.bf16.msrb.mxu2 %v5772_v6  ;;  %4237 = vmatpush.bf16.msra.mxu3 %v5776_v59  ;;  %v3561_v2 = vpack.c.bf16 %v3553_v10, %v3553_v10  ;;  %v3562_v47 = vpack.c.bf16 %v3554_v26, %v3554_v26 }
 0x708   : > { %v3486_v60 = vadd.f32 %v3485_v44, %v7772_v22  ;;  %v3504_v39 = vadd.f32 %v3503_v20, %v7774_v24  ;;  %v3205_v22 = vperm.slane %v3135_v9, 2  ;;  %v3206_v24 = vperm.slane %v3135_v9, 3  ;;  %4273 = vmatpush.bf16.msrb.mxu1 %v5784_v31 }
 0x70a   : > { %v3523_v46 = vpop.f32.mrf.mxu0  ;;  %v3541_v29 = vpop.f32.mrf.mxu1  ;;  %v3551_v40 = vmax.f32 %v3486_v60, 0.0  ;;  %v3552_v1 = vmax.f32 %v3504_v39, 0.0  ;;  %v3305_v56 = vadd.f32 %v7715_v32, %v3205_v22  ;;  %v3323_v57 = vadd.f32 %v7717_v23, %v3206_v24  ;;  %v6185_v32 = vld [vmem:[%s6598_s3 + $0x64] sm:$0xf0] }
 0x70b   : > { %v3303_v5 = vadd.f32 %v7701_v33, %v3205_v22  ;;  %v3321_v28 = vadd.f32 %v7703_v42, %v3206_v24  ;;  %v3203_v23 = vperm.slane %v3135_v9, 0  ;;  %4220 = vmatpush.bf16.msrb.mxu2 %v5756_v17  ;;  %v5764_v43 = vor.u32 %v6185_v32, %v5763_v14  ;;  %4238 = vmatpush.bf16.msra.mxu3 %v5760_v54  ;;  %v6211_v54 = vld [vmem:[%s6613_s2 + $0x2a8] sm:$0xff] }
 0x70c   : > { %v3559_v25 = vpack.c.bf16 %v3551_v40, %v3551_v40  ;;  %v3560_v53 = vpack.c.bf16 %v3552_v1, %v3552_v1  ;;  %v3335_v8 = vmax.f32 %v3305_v56, 0.0  ;;  %v3336_v63 = vmax.f32 %v3323_v57, 0.0  ;;  %4274 = vmatpush.bf16.msrb.mxu1 %v5768_v48  ;;  %v6219_v32 = vld [vmem:[%s6613_s2 + $0x2e8] sm:$0xff] }
 0x70d   : > { %v3269_v44 = vadd.f32 %v7723_v0, %v3203_v23  ;;  %v3287_v33 = vadd.f32 %v7725_v51, %v3204_v45  ;;  %v3331_v20 = vmax.f32 %v3303_v5, 0.0  ;;  %v3332_v42 = vmax.f32 %v3321_v28, 0.0  ;;  %4256 = vmatpush.bf16.msrb.mxu0 %v5764_v43  ;;  %v6212_v5 = vld [vmem:[%s6613_s2 + $0x2b0] sm:$0xff] }
 0x70e   : > { %v3267_v6 = vadd.f32 %v7709_v30, %v3203_v23  ;;  %v3330_v60 = vmax.f32 %v3285_v49, 0.0  ;;  %v3308_v51 = vadd.f32 %v7731_v13, %v3205_v22  ;;  %v3272_v61 = vadd.f32 %v7741_v58, %v3203_v23  ;;  %v6220_v28 = vld [vmem:[%s6613_s2 + $0x2f0] sm:$0xff] }
 0x70f   : > { %v3487_v18 = vpop.f32.mrf.mxu2  ;;  %v3505_v21 = vpop.f32.mrf.mxu3  ;;  %v3343_v59 = vpack.c.bf16 %v3335_v8, %v3331_v20  ;;  %v3344_v46 = vpack.c.bf16 %v3336_v63, %v3332_v42  ;;  %v3333_v29 = vmax.f32 %v3269_v44, 0.0  ;;  %v3334_v10 = vmax.f32 %v3287_v33, 0.0  ;;  %v6197_v63 = vld [vmem:[%s6613_s2 + $0x238] sm:$0xff]  ;;  %v6210_v33 = vld [vmem:[%s6613_s2 + $0x2a0] sm:$0xff]  ;;  %v6196_v49 = vld [vmem:[%s6613_s2 + $0x230] sm:$0xff] }
 0x710   : > { %v3329_v26 = vmax.f32 %v3267_v6, 0.0  ;;  %v3326_v18 = vadd.f32 %v7733_v15, %v3206_v24  ;;  %v3339_v30 = vmax.f32 %v3308_v51, 0.0  ;;  %v3337_v1 = vmax.f32 %v3272_v61, 0.0  ;;  %v6205_v44 = vld [vmem:[%s6613_s2 + $0x278] sm:$0xff]  ;;  %v6218_v20 = vld [vmem:[%s6613_s2 + $0x2e0] sm:$0xff] }
 0x711   : > { %3804 = vmatmul.bf16.gmra.mxu0 %v3561_v2  ;;  %3822 = vmatmul.bf16.gmra.mxu1 %v3562_v47  ;;  %v3342_v0 = vpack.c.bf16 %v3334_v10, %v3330_v60  ;;  %v3290_v2 = vadd.f32 %v7743_v12, %v3204_v45  ;;  %v6195_v10 = vld [vmem:[%s6613_s2 + $0x228] sm:$0xff]  ;;  %v6208_v60 = vld [vmem:[%s6613_s2 + $0x290] sm:$0xff]  ;;  %v6194_v61 = vld [vmem:[%s6613_s2 + $0x220] sm:$0xff] }
 0x712   : > { %v3341_v39 = vpack.c.bf16 %v3333_v29, %v3329_v26  ;;  %v3340_v21 = vmax.f32 %v3326_v18, 0.0  ;;  %v3347_v47 = vpack.c.bf16 %v3339_v30, %v3339_v30  ;;  %v6217_v29 = vld [vmem:[%s6613_s2 + $0x2d8] sm:$0xff]  ;;  %v6203_v26 = vld [vmem:[%s6613_s2 + $0x268] sm:$0xff] }
 0x713   : > { %v3338_v9 = vmax.f32 %v3290_v2, 0.0  ;;  %v6202_v2 = vld [vmem:[%s6613_s2 + $0x260] sm:$0xff] }
 0x714   : > { %v3348_v40 = vpack.c.bf16 %v3340_v21, %v3340_v21 }
 0x716   : > { %3768 = vmatmul.bf16.gmra.mxu2 %v3559_v25  ;;  %3786 = vmatmul.bf16.gmra.mxu3 %v3560_v53  ;;  %v3345_v25 = vpack.c.bf16 %v3337_v1, %v3337_v1  ;;  %v3346_v53 = vpack.c.bf16 %v3338_v9, %v3338_v9  ;;  %v6193_v9 = vld [vmem:[%s6613_s2 + $0x218] sm:$0xff] }
 0x721   : > { %4063 = vmatmul.bf16.vlgmr.msra.gmra.mxu0 %v3343_v59  ;;  %4081 = vmatmul.bf16.vlgmr.msra.gmra.mxu1 %v3344_v46  ;;  %v6204_v59 = vld [vmem:[%s6613_s2 + $0x270] sm:$0xff]  ;;  %v6209_v46 = vld [vmem:[%s6613_s2 + $0x298] sm:$0xff] }
 0x722   : > { %4533 = vmatpush.bf16.msra.mxu0 %v6213_v4  ;;  %4551 = vmatpush.bf16.msra.mxu1 %v6221_v52 }
 0x726   : > { %4027 = vmatmul.bf16.vlgmr.msra.gmra.mxu2 %v3341_v39  ;;  %4045 = vmatmul.bf16.vlgmr.msrb.gmra.mxu3 %v3342_v0  ;;  %v6216_v39 = vld [vmem:[%s6613_s2 + $0x2d0] sm:$0xff] }
 0x727   : > { %4534 = vmatpush.bf16.msra.mxu0 %v6212_v5  ;;  %4552 = vmatpush.bf16.msra.mxu1 %v6220_v28 }
 0x728   : > { %4497 = vmatpush.bf16.msra.mxu2 %v6197_v63  ;;  %4515 = vmatpush.bf16.msrb.mxu3 %v6205_v44 }
 0x72b   : > { %4535 = vmatpush.bf16.msra.mxu0 %v6211_v54  ;;  %4553 = vmatpush.bf16.msra.mxu1 %v6219_v32  ;;  %v4099_v32 = vld [vmem:[%s6603_s5 + $0x8] sm:$0xf] }
 0x72c   : > { %4498 = vmatpush.bf16.msra.mxu2 %v6196_v49  ;;  %4516 = vmatpush.bf16.msrb.mxu3 %v6204_v59  ;;  %v4167_v63 = vperm.slane %v4099_v32, 2  ;;  %v5947_v59 = vld [vmem:[%s6598_s3 + $0xb8] sm:$0xf] }
 0x72f   : > { %4536 = vmatpush.bf16.msra.mxu0 %v6210_v33  ;;  %4554 = vmatpush.bf16.msra.mxu1 %v6218_v20  ;;  %v5941_v33 = vld [vmem:[%s6598_s3 + $0xf0] sm:$0xf0] }
 0x730   : > { %4499 = vmatpush.bf16.msra.mxu2 %v6195_v10  ;;  %4517 = vmatpush.bf16.msrb.mxu3 %v6203_v26  ;;  %v6227_v10 = vld [vmem:[%s6598_s3 + $0xbc] sm:$0xf] }
 0x731   : > { %4068 = vmatmul.bf16.gmra.mxu0 %v3347_v47  ;;  %4086 = vmatmul.bf16.gmra.mxu1 %v3348_v40  ;;  %v6207_v47 = vld [vmem:[%s6613_s2 + $0x288] sm:$0xff]  ;;  %v5949_v26 = vld [vmem:[%s6598_s3 + $0xf8] sm:$0xf0] }
 0x732   : > { %v6215_v40 = vld [vmem:[%s6613_s2 + $0x2c8] sm:$0xff] }
 0x733   : > { %4537 = vmatpush.bf16.msra.mxu0 %v6209_v46  ;;  %4555 = vmatpush.bf16.msra.mxu1 %v6217_v29  ;;  %v6229_v46 = vld [vmem:[%s6598_s3 + $0xf4] sm:$0xf0] }
 0x734   : > { %4500 = vmatpush.bf16.msra.mxu2 %v6194_v61  ;;  %4518 = vmatpush.bf16.msrb.mxu3 %v6202_v2  ;;  %v5948_v29 = vor.u32 %v6229_v46, %v5947_v59  ;;  %v5931_v2 = vld [vmem:[%s6598_s3 + $0x38] sm:$0xf] }
 0x736   : > { %4032 = vmatmul.bf16.gmra.mxu2 %v3345_v25  ;;  %4050 = vmatmul.bf16.gmra.mxu3 %v3346_v53  ;;  %v6201_v25 = vld [vmem:[%s6613_s2 + $0x258] sm:$0xff]  ;;  %v6206_v53 = vld [vmem:[%s6613_s2 + $0x280] sm:$0xff] }
 0x737   : > { %4538 = vmatpush.bf16.msra.mxu0 %v6208_v60  ;;  %4556 = vmatpush.bf16.msra.mxu1 %v6216_v39  ;;  %v5952_v39 = vor.u32 %v6227_v10, %v5949_v26 }
 0x738   : > { %4501 = vmatpush.bf16.msra.mxu2 %v6193_v9  ;;  %4519 = vmatpush.bf16.msrb.mxu3 %v6201_v25 }
 0x73b   : > { %4539 = vmatpush.bf16.msra.mxu0 %v6207_v47  ;;  %4557 = vmatpush.bf16.msra.mxu1 %v6215_v40  ;;  %v6225_v47 = vld [vmem:[%s6598_s3 + $0x74] sm:$0xf0]  ;;  %v6223_v40 = vld [vmem:[%s6598_s3 + $0x3c] sm:$0xf] }
 0x73f   : > { %4540 = vmatpush.bf16.msra.mxu0 %v6206_v53 }
 0x741   : > { %5789 = vmatmul.msk.bf16.vlgmr.msrb.gmra.mxu0 %vm758_vm1, %v7646_v41  ;;  %5791 = vmatmul.msk.bf16.vlgmr.msrb.gmra.mxu1 %vm758_vm1, %v7646_v41 }
 0x743   : > { %4736 = vmatpush.bf16.msrb.mxu0 %v5948_v29 }
 0x746   : > { %5785 = vmatmul.msk.bf16.vlgmr.msrb.gmra.mxu2 %vm758_vm1, %v7646_v41  ;;  %5787 = vmatmul.msk.bf16.vlgmr.msra.gmra.mxu3 %vm758_vm1, %v7646_v41 }
 0x751   : > { %5790 = vmatmul.msk.bf16.gmra.mxu0 %vm758_vm1, %v7661_v35  ;;  %5792 = vmatmul.msk.bf16.gmra.mxu1 %vm758_vm1, %v7661_v35 }
 0x756   : > { %5786 = vmatmul.msk.bf16.gmra.mxu2 %vm758_vm1, %v7661_v35  ;;  %5788 = vmatmul.msk.bf16.gmra.mxu3 %vm758_vm1, %v7661_v35 }
 0x77e   : > { %v3800_v13 = vpop.f32.mrf.mxu0  ;;  %v3818_v15 = vpop.f32.mrf.mxu1 }
 0x786   : > { %v3802_v58 = vpop.f32.mrf.mxu0  ;;  %v3820_v12 = vpop.f32.mrf.mxu1 }
 0x789   : > { %v3764_v22 = vpop.f32.mrf.mxu2  ;;  %v3782_v24 = vpop.f32.mrf.mxu3 }
 0x78a   : > { %v3783_v50 = vadd.f32 %v3782_v24, %v3764_v22 }
 0x78c   : > { %v3801_v7 = vadd.f32 %v3800_v13, %v3783_v50  ;;  %v6214_v13 = vld [vmem:[%s6613_s2 + $0x2c0] sm:$0xff] }
 0x78d   : > { %4558 = vmatpush.bf16.msra.mxu1 %v6214_v13 }
 0x78e   : > { %v3805_v62 = vpop.f32.mrf.mxu0  ;;  %v3823_v56 = vpop.f32.mrf.mxu1  ;;  %v3819_v57 = vadd.f32 %v3818_v15, %v3801_v7 }
 0x791   : > { %v3766_v16 = vpop.f32.mrf.mxu2  ;;  %v3784_v55 = vpop.f32.mrf.mxu3  ;;  %4754 = vmatpush.bf16.msrb.mxu1 %v5952_v39 }
 0x792   : > { %v3785_v31 = vadd.f32 %v3784_v55, %v3766_v16  ;;  %v6191_v55 = vld [vmem:[%s6613_s2 + $0x208] sm:$0xff] }
 0x794   : > { %v3803_v17 = vadd.f32 %v3802_v58, %v3785_v31  ;;  %v6199_v31 = vld [vmem:[%s6613_s2 + $0x248] sm:$0xff] }
 0x796   : > { %v3807_v34 = vpop.f32.mrf.mxu0  ;;  %v3825_v11 = vpop.f32.mrf.mxu1  ;;  %v7843_v14 = vadd.f32 %v3820_v12, %v3803_v17 }
 0x797   : > { %v6190_v34 = vld [vmem:[%s6613_s2 + $0x200] sm:$0xff] }
 0x798   : > { %v6198_v11 = vld [vmem:[%s6613_s2 + $0x240] sm:$0xff] }
 0x799   : > { %v3769_v27 = vpop.f32.mrf.mxu2  ;;  %v3787_v19 = vpop.f32.mrf.mxu3 }
 0x79a   : > { %v3788_v23 = vadd.f32 %v3787_v19, %v3769_v27 }
 0x79c   : > { %v3806_v45 = vadd.f32 %v3805_v62, %v3788_v23  ;;  %v6192_v62 = vld [vmem:[%s6613_s2 + $0x210] sm:$0xff] }
 0x79d   : > { %4502 = vmatpush.bf16.msra.mxu2 %v6192_v62  ;;  %v4166_v62 = vperm.slane %v4099_v32, 1 }
 0x79e   : > { %v4064_v43 = vpop.f32.mrf.mxu0  ;;  %v4082_v48 = vpop.f32.mrf.mxu1  ;;  %v7849_v8 = vadd.f32 %v3823_v56, %v3806_v45  ;;  %v6200_v56 = vld [vmem:[%s6613_s2 + $0x250] sm:$0xff] }
 0x79f   : > { %4520 = vmatpush.bf16.msrb.mxu3 %v6200_v56  ;;  %v5939_v45 = vld [vmem:[%s6598_s3 + $0xb0] sm:$0xf] }
 0x7a0   : > { %v5923_v56 = vld [vmem:[%s6598_s3 + $0x30] sm:$0xf] }
 0x7a1   : > { %v3771_v42 = vpop.f32.mrf.mxu2  ;;  %v3789_v6 = vpop.f32.mrf.mxu3  ;;  %4503 = vmatpush.bf16.msra.mxu2 %v6191_v55 }
 0x7a2   : > { %v4168_v42 = vperm.slane %v4099_v32, 3 }
 0x7a3   : > { %4521 = vmatpush.bf16.msrb.mxu3 %v6199_v31  ;;  %v5925_v31 = vld [vmem:[%s6598_s3 + $0x70] sm:$0xf0] }
 0x7a5   : > { %4504 = vmatpush.bf16.msra.mxu2 %v6190_v34 }
 0x7a6   : > { %v4066_v0 = vpop.f32.mrf.mxu0  ;;  %v4084_v51 = vpop.f32.mrf.mxu1 }
 0x7a7   : > { %4522 = vmatpush.bf16.msrb.mxu3 %v6198_v11 }
 0x7a9   : > { %v4028_v18 = vpop.f32.mrf.mxu2  ;;  %v4046_v30 = vpop.f32.mrf.mxu3 }
 0x7aa   : > { %v4029_v21 = vadd.f32 %v4028_v18, %v3819_v57 }
 0x7ac   : > { %v4047_v1 = vadd.f32 %v4046_v30, %v4029_v21 }
 0x7ae   : > { %v4065_v15 = vadd.f32 %v4064_v43, %v4047_v1  ;;  %v4069_v58 = vpop.f32.mrf.mxu0  ;;  %v4087_v12 = vpop.f32.mrf.mxu1  ;;  %v6228_v43 = vld [vmem:[%s6598_s3 + $0xec] sm:$0xf0] }
 0x7af   : > { %v5940_v44 = vor.u32 %v6228_v43, %v5939_v45 }
 0x7b0   : > { %v7871_v22 = vadd.f32 %v4082_v48, %v4065_v15  ;;  %v6226_v48 = vld [vmem:[%s6598_s3 + $0xb4] sm:$0xf]  ;;  %v5932_v15 = vor.u32 %v6225_v47, %v5931_v2  ;;  %v6251_v47 = vld [vmem:[%s6613_s2 + $0x3a8] sm:$0xff] }
 0x7b1   : > { %v4030_v24 = vpop.f32.mrf.mxu2  ;;  %v4048_v50 = vpop.f32.mrf.mxu3  ;;  %4700 = vmatpush.bf16.msrb.mxu2 %v5940_v44  ;;  %v6260_v2 = vld [vmem:[%s6613_s2 + $0x3f0] sm:$0xff] }
 0x7b2   : > { %v4031_v7 = vadd.f32 %v4030_v24, %v7843_v14  ;;  %4737 = vmatpush.bf16.msrb.mxu0 %v5932_v15  ;;  %v6237_v15 = vld [vmem:[%s6613_s2 + $0x338] sm:$0xff] }
 0x7b4   : > { %v4049_v57 = vadd.f32 %v4048_v50, %v4031_v7  ;;  %v4165_v7 = vperm.slane %v4099_v32, 0 }
 0x7b6   : > { %v4067_v4 = vadd.f32 %v4066_v0, %v4049_v57  ;;  %v4071_v52 = vpop.f32.mrf.mxu0  ;;  %v4089_v16 = vpop.f32.mrf.mxu1  ;;  %v6224_v57 = vld [vmem:[%s6598_s3 + $0x6c] sm:$0xf0] }
 0x7b7   : > { %v5924_v55 = vor.u32 %v6224_v57, %v5923_v56  ;;  %v6244_v56 = vld [vmem:[%s6613_s2 + $0x370] sm:$0xff]  ;;  %v6247_v57 = vld [vmem:[%s6613_s2 + $0x388] sm:$0xff] }
 0x7b8   : > { %v7878_v17 = vadd.f32 %v4084_v51, %v4067_v4  ;;  %v6222_v4 = vld [vmem:[%s6598_s3 + $0x34] sm:$0xf] }
 0x7b9   : > { %v4033_v14 = vpop.f32.mrf.mxu2  ;;  %v4051_v5 = vpop.f32.mrf.mxu3  ;;  %v5928_v34 = vor.u32 %v6222_v4, %v5925_v31  ;;  %4701 = vmatpush.bf16.msrb.mxu2 %v5924_v55  ;;  %v6255_v4 = vld [vmem:[%s6613_s2 + $0x3c8] sm:$0xff]  ;;  %v6246_v55 = vld [vmem:[%s6613_s2 + $0x380] sm:$0xff] }
 0x7ba   : > { %v4034_v28 = vadd.f32 %v4033_v14, %v7849_v8  ;;  %v5944_v8 = vor.u32 %v6226_v48, %v5941_v33  ;;  %v6254_v31 = vld [vmem:[%s6613_s2 + $0x3c0] sm:$0xff] }
 0x7bc   : > { %v4052_v54 = vadd.f32 %v4051_v5, %v4034_v28  ;;  %4718 = vmatpush.bf16.msra.mxu3 %v5944_v8 }
 0x7be   : > { %v4070_v27 = vadd.f32 %v4069_v58, %v4052_v54  ;;  %v4258_v19 = vpop.f32.mrf.mxu0  ;;  %v4276_v23 = vpop.f32.mrf.mxu1  ;;  %v5933_v58 = vld [vmem:[%s6598_s3 + $0x78] sm:$0xf0] }
 0x7bf   : > { %v4259_v60 = vadd.f32 %v4258_v19, %v4167_v63  ;;  %v4277_v0 = vadd.f32 %v4276_v23, %v4168_v42 }
 0x7c0   : > { %v7888_v20 = vadd.f32 %v4087_v12, %v4070_v27  ;;  %v5936_v12 = vor.u32 %v6223_v40, %v5933_v58  ;;  %4719 = vmatpush.bf16.msra.mxu3 %v5928_v34  ;;  %v6259_v40 = vld [vmem:[%s6613_s2 + $0x3e8] sm:$0xff]  ;;  %v6245_v58 = vld [vmem:[%s6613_s2 + $0x378] sm:$0xff] }
 0x7c1   : > { %v4035_v6 = vpop.f32.mrf.mxu2  ;;  %v4053_v49 = vpop.f32.mrf.mxu3  ;;  %v4287_v30 = vmax.f32 %v4259_v60, 0.0  ;;  %v4288_v1 = vmax.f32 %v4277_v0, 0.0 }
 0x7c2   : > { %4755 = vmatpush.bf16.msrb.mxu1 %v5936_v12 }
 0x7c6   : > { %v4260_v51 = vpop.f32.mrf.mxu0  ;;  %v4278_v18 = vpop.f32.mrf.mxu1 }
 0x7c7   : > { %v4261_v21 = vadd.f32 %v4260_v51, %v4167_v63  ;;  %v4279_v61 = vadd.f32 %v4278_v18, %v4168_v42 }
 0x7c9   : > { %v4291_v9 = vmax.f32 %v4261_v21, 0.0  ;;  %v4292_v25 = vmax.f32 %v4279_v61, 0.0  ;;  %v4222_v53 = vpop.f32.mrf.mxu2  ;;  %v4240_v13 = vpop.f32.mrf.mxu3  ;;  %v6253_v21 = vld [vmem:[%s6613_s2 + $0x3b8] sm:$0xff] }
 0x7ca   : > { %v4223_v11 = vadd.f32 %v4222_v53, %v4165_v7  ;;  %v4241_v14 = vadd.f32 %v4240_v13, %v4166_v62  ;;  %v6261_v61 = vld [vmem:[%s6613_s2 + $0x3f8] sm:$0xff] }
 0x7cb   : > { %v4299_v24 = vpack.c.bf16 %v4291_v9, %v4287_v30  ;;  %v4300_v50 = vpack.c.bf16 %v4292_v25, %v4288_v1  ;;  %v6250_v9 = vld [vmem:[%s6613_s2 + $0x3a0] sm:$0xff]  ;;  %v6249_v53 = vld [vmem:[%s6613_s2 + $0x398] sm:$0xff] }
 0x7cc   : > { %v4285_v23 = vmax.f32 %v4223_v11, 0.0  ;;  %v4286_v45 = vmax.f32 %v4241_v14, 0.0  ;;  %v6258_v25 = vld [vmem:[%s6613_s2 + $0x3e0] sm:$0xff]  ;;  %v6257_v13 = vld [vmem:[%s6613_s2 + $0x3d8] sm:$0xff] }
 0x7cd   : > { %4541 = vmatmul.bf16.vlgmr.msra.gmra.mxu0 %v4299_v24  ;;  %4559 = vmatmul.bf16.vlgmr.msra.gmra.mxu1 %v4300_v50  ;;  %v6248_v50 = vld [vmem:[%s6613_s2 + $0x390] sm:$0xff]  ;;  %v6234_v14 = vld [vmem:[%s6613_s2 + $0x320] sm:$0xff] }
 0x7ce   : > { %v4263_v52 = vpop.f32.mrf.mxu0  ;;  %v4281_v16 = vpop.f32.mrf.mxu1  ;;  %5014 = vmatpush.bf16.msra.mxu0 %v6253_v21  ;;  %5032 = vmatpush.bf16.msra.mxu1 %v6261_v61 }
 0x7cf   : > { %v4264_v32 = vadd.f32 %v4263_v52, %v4167_v63  ;;  %v4282_v19 = vadd.f32 %v4281_v16, %v4168_v42  ;;  %v6235_v52 = vld [vmem:[%s6613_s2 + $0x328] sm:$0xff] }
 0x7d0   : > { %v6243_v16 = vld [vmem:[%s6613_s2 + $0x368] sm:$0xff] }
 0x7d1   : > { %v4224_v5 = vpop.f32.mrf.mxu2  ;;  %v4242_v28 = vpop.f32.mrf.mxu3  ;;  %v4295_v49 = vmax.f32 %v4264_v32, 0.0  ;;  %v4296_v59 = vmax.f32 %v4282_v19, 0.0  ;;  %v6233_v19 = vld [vmem:[%s6613_s2 + $0x318] sm:$0xff] }
 0x7d2   : > { %v4225_v54 = vadd.f32 %v4224_v5, %v4165_v7  ;;  %v4243_v27 = vadd.f32 %v4242_v28, %v4166_v62  ;;  %5033 = vmatpush.bf16.msra.mxu1 %v6260_v2  ;;  %v6242_v5 = vld [vmem:[%s6613_s2 + $0x360] sm:$0xff] }
 0x7d3   : > { %v4303_v10 = vpack.c.bf16 %v4295_v49, %v4295_v49  ;;  %v4304_v26 = vpack.c.bf16 %v4296_v59, %v4296_v59 }
 0x7d4   : > { %v4289_v43 = vmax.f32 %v4225_v54, 0.0  ;;  %v4290_v48 = vmax.f32 %v4243_v27, 0.0 }
 0x7d6   : > { %v4297_v44 = vpack.c.bf16 %v4289_v43, %v4285_v23  ;;  %v4298_v33 = vpack.c.bf16 %v4290_v48, %v4286_v45  ;;  %v4265_v8 = vpop.f32.mrf.mxu0  ;;  %v4283_v6 = vpop.f32.mrf.mxu1  ;;  %5034 = vmatpush.bf16.msra.mxu1 %v6259_v40  ;;  %v6241_v23 = vld [vmem:[%s6613_s2 + $0x358] sm:$0xff] }
 0x7d7   : > { %v6240_v8 = vld [vmem:[%s6613_s2 + $0x350] sm:$0xff] }
 0x7d8   : > { %4505 = vmatmul.bf16.vlgmr.msra.gmra.mxu2 %v4297_v44  ;;  %4523 = vmatmul.bf16.vlgmr.msrb.gmra.mxu3 %v4298_v33  ;;  %v6232_v33 = vld [vmem:[%s6613_s2 + $0x310] sm:$0xff] }
 0x7d9   : > { %v4227_v46 = vpop.f32.mrf.mxu2  ;;  %v4245_v29 = vpop.f32.mrf.mxu3  ;;  %4978 = vmatpush.bf16.msra.mxu2 %v6237_v15  ;;  %4996 = vmatpush.bf16.msrb.mxu3 %v6245_v58 }
 0x7da   : > { %v4228_v63 = vadd.f32 %v4227_v46, %v4165_v7  ;;  %v4246_v42 = vadd.f32 %v4245_v29, %v4166_v62  ;;  %5035 = vmatpush.bf16.msra.mxu1 %v6258_v25  ;;  %v6256_v7 = vld [vmem:[%s6613_s2 + $0x3d0] sm:$0xff] }
 0x7db   : > { %v6236_v62 = vld [vmem:[%s6613_s2 + $0x330] sm:$0xff] }
 0x7dc   : > { %v4293_v0 = vmax.f32 %v4228_v63, 0.0  ;;  %v4294_v51 = vmax.f32 %v4246_v42, 0.0  ;;  %v4580_v63 = vld [vmem:[%s6603_s5 + $0xc] sm:$0xf] }
 0x7dd   : > { %4546 = vmatmul.bf16.gmra.mxu0 %v4303_v10  ;;  %4564 = vmatmul.bf16.gmra.mxu1 %v4304_v26  ;;  %v6231_v10 = vld [vmem:[%s6613_s2 + $0x308] sm:$0xff]  ;;  %v4648_v21 = vperm.slane %v4580_v63, 2  ;;  %v4649_v61 = vperm.slane %v4580_v63, 3 }
 0x7de   : > { %v4301_v18 = vpack.c.bf16 %v4293_v0, %v4293_v0  ;;  %v4302_v30 = vpack.c.bf16 %v4294_v51, %v4294_v51  ;;  %5036 = vmatpush.bf16.msra.mxu1 %v6257_v13  ;;  %4979 = vmatpush.bf16.msra.mxu2 %v6236_v62  ;;  %v6239_v26 = vld [vmem:[%s6613_s2 + $0x348] sm:$0xff]  ;;  %v6238_v0 = vld [vmem:[%s6613_s2 + $0x340] sm:$0xff] }
 0x7df   : > { %4997 = vmatpush.bf16.msrb.mxu3 %v6244_v56 }
 0x7e1   : > { %v4229_v60 = vpop.f32.mrf.mxu2  ;;  %v4247_v39 = vpop.f32.mrf.mxu3 }
 0x7e2   : > { %5037 = vmatpush.bf16.msra.mxu1 %v6256_v7  ;;  %4980 = vmatpush.bf16.msra.mxu2 %v6235_v52  ;;  %v6230_v39 = vld [vmem:[%s6613_s2 + $0x300] sm:$0xff]  ;;  %v4647_v52 = vperm.slane %v4580_v63, 1 }
 0x7e3   : > { %4998 = vmatpush.bf16.msrb.mxu3 %v6243_v16 }
 0x7e6   : > { %5038 = vmatpush.bf16.msra.mxu1 %v6255_v4  ;;  %4981 = vmatpush.bf16.msra.mxu2 %v6234_v14 }
 0x7e7   : > { %4999 = vmatpush.bf16.msrb.mxu3 %v6242_v5 }
 0x7e8   : > { %4510 = vmatmul.bf16.gmra.mxu2 %v4301_v18  ;;  %4528 = vmatmul.bf16.gmra.mxu3 %v4302_v30 }
 0x7ea   : > { %5039 = vmatpush.bf16.msra.mxu1 %v6254_v31  ;;  %4982 = vmatpush.bf16.msra.mxu2 %v6233_v19 }
 0x7eb   : > { %5000 = vmatpush.bf16.msrb.mxu3 %v6241_v23 }
 0x7ed   : > { %5957 = vmatmul.msk.bf16.vlgmr.msrb.gmra.mxu0 %vm758_vm1, %v7646_v41  ;;  %5959 = vmatmul.msk.bf16.vlgmr.msrb.gmra.mxu1 %vm758_vm1, %v7646_v41 }
 0x7ee   : > { %4983 = vmatpush.bf16.msra.mxu2 %v6232_v33 }
 0x7ef   : > { %5001 = vmatpush.bf16.msrb.mxu3 %v6240_v8 }
 0x7f2   : > { %4984 = vmatpush.bf16.msra.mxu2 %v6231_v10 }
 0x7f3   : > { %5002 = vmatpush.bf16.msrb.mxu3 %v6239_v26 }
 0x7f6   : > { %4985 = vmatpush.bf16.msra.mxu2 %v6230_v39 }
 0x7f7   : > { %5003 = vmatpush.bf16.msrb.mxu3 %v6238_v0 }
 0x7f8   : > { %5953 = vmatmul.msk.bf16.vlgmr.msrb.gmra.mxu2 %vm758_vm1, %v7646_v41  ;;  %5955 = vmatmul.msk.bf16.vlgmr.msra.gmra.mxu3 %vm758_vm1, %v7646_v41  ;;  %v6252_v41 = vld [vmem:[%s6613_s2 + $0x3b0] sm:$0xff]  ;;  %s8051_s2 = scalar_lea.vmem %s8025_s12, %s6567_s16 }
 0x7f9   : > { %5015 = vmatpush.bf16.msra.mxu0 %v6252_v41 }
 0x7fd   : > { %5958 = vmatmul.msk.bf16.gmra.mxu0 %vm758_vm1, %v7661_v35  ;;  %5960 = vmatmul.msk.bf16.gmra.mxu1 %vm758_vm1, %v7661_v35 }
 0x7fe   : > { %5016 = vmatpush.bf16.msra.mxu0 %v6251_v47 }
 0x802   : > { %5017 = vmatpush.bf16.msra.mxu0 %v6250_v9 }
 0x806   : > { %5018 = vmatpush.bf16.msra.mxu0 %v6249_v53 }
 0x808   : > { %5954 = vmatmul.msk.bf16.gmra.mxu2 %vm758_vm1, %v7661_v35  ;;  %5956 = vmatmul.msk.bf16.gmra.mxu3 %vm758_vm1, %v7661_v35 }
 0x80a   : > { %5019 = vmatpush.bf16.msra.mxu0 %v6248_v50 }
 0x80e   : > { %5020 = vmatpush.bf16.msra.mxu0 %v6247_v57 }
 0x812   : > { %5021 = vmatpush.bf16.msra.mxu0 %v6246_v55 }
 0x84a   : > { %v4542_v1 = vpop.f32.mrf.mxu0  ;;  %v4560_v35 = vpop.f32.mrf.mxu1 }
 0x852   : > { %v4544_v12 = vpop.f32.mrf.mxu0  ;;  %v4562_v24 = vpop.f32.mrf.mxu1 }
 0x85a   : > { %v4547_v34 = vpop.f32.mrf.mxu0  ;;  %v4565_v11 = vpop.f32.mrf.mxu1 }
 0x85b   : > { %v4506_v28 = vpop.f32.mrf.mxu2  ;;  %v4524_v54 = vpop.f32.mrf.mxu3 }
 0x85c   : > { %v4525_v27 = vadd.f32 %v4524_v54, %v4506_v28 }
 0x85e   : > { %v4543_v32 = vadd.f32 %v4542_v1, %v4525_v27 }
 0x860   : > { %v4561_v45 = vadd.f32 %v4560_v35, %v4543_v32 }
 0x862   : > { %v7945_v43 = vadd.f32 %v4561_v45, %v7871_v22  ;;  %v4549_v48 = vpop.f32.mrf.mxu0  ;;  %v4567_v44 = vpop.f32.mrf.mxu1 }
 0x863   : > { %v4508_v6 = vpop.f32.mrf.mxu2  ;;  %v4526_v49 = vpop.f32.mrf.mxu3 }
 0x864   : > { %v4527_v59 = vadd.f32 %v4526_v49, %v4508_v6 }
 0x866   : > { %v4545_v46 = vadd.f32 %v4544_v12, %v4527_v59 }
 0x868   : > { %v4563_v29 = vadd.f32 %v4562_v24, %v4545_v46 }
 0x86a   : > { %v7952_v22 = vadd.f32 %v4563_v29, %v7878_v17  ;;  %v4739_v42 = vpop.f32.mrf.mxu0  ;;  %v4757_v60 = vpop.f32.mrf.mxu1 }
 0x86b   : > { %v4511_v51 = vpop.f32.mrf.mxu2  ;;  %v4529_v18 = vpop.f32.mrf.mxu3  ;;  %v4740_v47 = vadd.f32 %v4739_v42, %v4648_v21  ;;  %v4758_v40 = vadd.f32 %v4757_v60, %v4649_v61 }
 0x86c   : > { %v4530_v30 = vadd.f32 %v4529_v18, %v4511_v51 }
 0x86d   : > { %v4768_v15 = vmax.f32 %v4740_v47, 0.0  ;;  %v4769_v58 = vmax.f32 %v4758_v40, 0.0 }
 0x86e   : > { %v4548_v41 = vadd.f32 %v4547_v34, %v4530_v30 }
 0x870   : > { %v4566_v2 = vadd.f32 %v4565_v11, %v4548_v41 }
 0x872   : > { %v7958_v17 = vadd.f32 %v4566_v2, %v7888_v20  ;;  %v4741_v1 = vpop.f32.mrf.mxu0  ;;  %v4759_v35 = vpop.f32.mrf.mxu1  ;;  %v4646_v20 = vperm.slane %v4580_v63, 0 }
 0x873   : > { %v4742_v9 = vadd.f32 %v4741_v1, %v4648_v21  ;;  %v4760_v25 = vadd.f32 %v4759_v35, %v4649_v61  ;;  %v4513_v53 = vpop.f32.mrf.mxu2  ;;  %v4531_v13 = vpop.f32.mrf.mxu3 }
 0x874   : > { %v6341_v53 = vld [vmem:[%s8051_s2] ss:$0 sm:$0xff] }
 0x875   : > { %v4772_v12 = vmax.f32 %v4742_v9, 0.0  ;;  %v4773_v24 = vmax.f32 %v4760_v25, 0.0 }
 0x877   : > { %v4780_v50 = vpack.c.bf16 %v4772_v12, %v4768_v15  ;;  %v4781_v7 = vpack.c.bf16 %v4773_v24, %v4769_v58 }
 0x879   : > { %5022 = vmatmul.bf16.vlgmr.msra.gmra.mxu0 %v4780_v50  ;;  %5040 = vmatmul.bf16.vlgmr.msra.gmra.mxu1 %v4781_v7 }
 0x87a   : > { %v4744_v62 = vpop.f32.mrf.mxu0  ;;  %v4762_v56 = vpop.f32.mrf.mxu1 }
 0x87b   : > { %v4703_v57 = vpop.f32.mrf.mxu2  ;;  %v4721_v4 = vpop.f32.mrf.mxu3  ;;  %v4745_v16 = vadd.f32 %v4744_v62, %v4648_v21  ;;  %v4763_v55 = vadd.f32 %v4762_v56, %v4649_v61 }
 0x87c   : > { %v4704_v31 = vadd.f32 %v4703_v57, %v4646_v20  ;;  %v4722_v34 = vadd.f32 %v4721_v4, %v4647_v52 }
 0x87d   : > { %v4776_v5 = vmax.f32 %v4745_v16, 0.0  ;;  %v4777_v28 = vmax.f32 %v4763_v55, 0.0 }
 0x87e   : > { %v4766_v23 = vmax.f32 %v4704_v31, 0.0  ;;  %v4767_v45 = vmax.f32 %v4722_v34, 0.0 }
 0x87f   : > { %v4784_v33 = vpack.c.bf16 %v4776_v5, %v4776_v5  ;;  %v4785_v8 = vpack.c.bf16 %v4777_v28, %v4777_v28 }
 0x882   : > { %v4746_v11 = vpop.f32.mrf.mxu0  ;;  %v4764_v14 = vpop.f32.mrf.mxu1 }
 0x883   : > { %v4705_v54 = vpop.f32.mrf.mxu2  ;;  %v4723_v27 = vpop.f32.mrf.mxu3 }
 0x884   : > { %v4706_v32 = vadd.f32 %v4705_v54, %v4646_v20  ;;  %v4724_v19 = vadd.f32 %v4723_v27, %v4647_v52 }
 0x886   : > { %v4770_v48 = vmax.f32 %v4706_v32, 0.0  ;;  %v4771_v44 = vmax.f32 %v4724_v19, 0.0 }
 0x888   : > { %v4778_v6 = vpack.c.bf16 %v4770_v48, %v4766_v23  ;;  %v4779_v49 = vpack.c.bf16 %v4771_v44, %v4767_v45 }
 0x889   : > { %5027 = vmatmul.bf16.gmra.mxu0 %v4784_v33  ;;  %5045 = vmatmul.bf16.gmra.mxu1 %v4785_v8 }
 0x88a   : > { %4986 = vmatmul.bf16.vlgmr.msra.gmra.mxu2 %v4778_v6  ;;  %5004 = vmatmul.bf16.vlgmr.msrb.gmra.mxu3 %v4779_v49 }
 0x88b   : > { %v4708_v59 = vpop.f32.mrf.mxu2  ;;  %v4726_v46 = vpop.f32.mrf.mxu3 }
 0x88c   : > { %v4709_v29 = vadd.f32 %v4708_v59, %v4646_v20  ;;  %v4727_v10 = vadd.f32 %v4726_v46, %v4647_v52 }
 0x88e   : > { %v4774_v42 = vmax.f32 %v4709_v29, 0.0  ;;  %v4775_v60 = vmax.f32 %v4727_v10, 0.0 }
 0x890   : > { %v4782_v39 = vpack.c.bf16 %v4774_v42, %v4774_v42  ;;  %v4783_v0 = vpack.c.bf16 %v4775_v60, %v4775_v60 }
 0x893   : > { %v4710_v26 = vpop.f32.mrf.mxu2  ;;  %v4728_v63 = vpop.f32.mrf.mxu3 }
 0x89a   : > { %4991 = vmatmul.bf16.gmra.mxu2 %v4782_v39  ;;  %5009 = vmatmul.bf16.gmra.mxu3 %v4783_v0 }
 0x8f6   : > { %v5023_v51 = vpop.f32.mrf.mxu0  ;;  %v5041_v18 = vpop.f32.mrf.mxu1 }
 0x8fe   : > { %v5025_v30 = vpop.f32.mrf.mxu0  ;;  %v5043_v21 = vpop.f32.mrf.mxu1 }
 0x906   : > { %v5028_v61 = vpop.f32.mrf.mxu0  ;;  %v5046_v41 = vpop.f32.mrf.mxu1 }
 0x90d   : > { %v4987_v2 = vpop.f32.mrf.mxu2  ;;  %v5005_v47 = vpop.f32.mrf.mxu3 }
 0x90e   : > { %v5006_v40 = vadd.f32 %v5005_v47, %v4987_v2  ;;  %v5030_v1 = vpop.f32.mrf.mxu0  ;;  %v5048_v35 = vpop.f32.mrf.mxu1  ;;  %v6342_v47 = vld [vmem:[%s708_s30] ss:$0 sm:$0xff] }
 0x910   : > { %v5024_v9 = vadd.f32 %v5023_v51, %v5006_v40 }
 0x912   : > { %v5042_v25 = vadd.f32 %v5041_v18, %v5024_v9 }
 0x914   : > { %v5050_v13 = vadd.f32 %v5042_v25, %v7945_v43 }
 0x915   : > { %v4989_v15 = vpop.f32.mrf.mxu2  ;;  %v5007_v58 = vpop.f32.mrf.mxu3 }
 0x916   : > { %v5008_v12 = vadd.f32 %v5007_v58, %v4989_v15  ;;  %v5057_v24 = vadd.f32 %v6341_v53, %v5050_v13 }
 0x918   : > { %v5026_v50 = vadd.f32 %v5025_v30, %v5008_v12  ;;  %v5060_v7 = vadd.f32 %v5057_v24, %v7640_v3 }
 0x91a   : > { %v5044_v62 = vadd.f32 %v5043_v21, %v5026_v50  ;;  %v5063_v56 = vsel %vm758_vm1, %v5060_v7, 0.0 }
 0x91b   : > { %5064 = vadd.xlane.f32.xlu1 %v5063_v56 }
 0x91c   : > { %v5051_v57 = vadd.f32 %v5044_v62, %v7952_v22 }
 0x91d   : > { %v4992_v4 = vpop.f32.mrf.mxu2  ;;  %v5010_v20 = vpop.f32.mrf.mxu3 }
 0x91e   : > { %v5011_v52 = vadd.f32 %v5010_v20, %v4992_v4  ;;  %v5058_v16 = vadd.f32 %v6341_v53, %v5051_v57 }
 0x920   : > { %v5029_v55 = vadd.f32 %v5028_v61, %v5011_v52  ;;  %v5061_v43 = vadd.f32 %v5058_v16, %v7642_v37 }
 0x922   : > { %v5047_v31 = vadd.f32 %v5046_v41, %v5029_v55  ;;  %v5066_v34 = vsel %vm758_vm1, %v5061_v43, 0.0 }
 0x923   : > { %5067 = vadd.xlane.f32.xlu2 %v5066_v34 }
 0x924   : > { %v5052_v11 = vadd.f32 %v5047_v31, %v7958_v17 }
 0x925   : > { %v4994_v3 = vpop.f32.mrf.mxu2  ;;  %v5012_v14 = vpop.f32.mrf.mxu3 }
 0x926   : > { %v5059_v5 = vadd.f32 %v6341_v53, %v5052_v11 }
 0x928   : > { %v5062_v28 = vadd.f32 %v5059_v5, %v7657_v38 }
 0x92a   : > { %v5069_v22 = vsel %vm758_vm1, %v5062_v28, 0.0 }
 0x92b   : > { %5070 = vadd.xlane.f32.xlu0 %v5069_v22 }
 0x98e   : > { %v5065_v54 = vpop.xlane.xlu1 %5064 }
 0x98f   : > { %v5072_v27 = vmul.f32 %v5065_v54, %v7566_v36 }
 0x991   : > { %v5075_v32 = vsub.f32 %v5060_v7, %v5072_v27 }
 0x993   : > { %v5078_v19 = vmul.f32 %v5075_v32, %v5075_v32 }
 0x995   : > { %v5081_v37 = vsel %vm758_vm1, %v5078_v19, 0.0 }
 0x996   : > { %5082 = vadd.xlane.f32.xlu1 %v5081_v37  ;;  %v5068_v23 = vpop.xlane.xlu2 %5067 }
 0x997   : > { %v5073_v45 = vmul.f32 %v5068_v23, %v7566_v36 }
 0x999   : > { %v5076_v17 = vsub.f32 %v5061_v43, %v5073_v45 }
 0x99b   : > { %v5079_v48 = vmul.f32 %v5076_v17, %v5076_v17 }
 0x99d   : > { %v5084_v44 = vsel %vm758_vm1, %v5079_v48, 0.0 }
 0x99e   : > { %5085 = vadd.xlane.f32.xlu2 %v5084_v44  ;;  %v5071_v38 = vpop.xlane.xlu0 %5070 }
 0x99f   : > { %v5074_v33 = vmul.f32 %v5071_v38, %v7566_v36 }
 0x9a1   : > { %v5077_v8 = vsub.f32 %v5062_v28, %v5074_v33 }
 0x9a3   : > { %v5080_v6 = vmul.f32 %v5077_v8, %v5077_v8 }
 0x9a5   : > { %v5087_v49 = vsel %vm758_vm1, %v5080_v6, 0.0 }
 0x9a6   : > { %5088 = vadd.xlane.f32.xlu0 %v5087_v49 }
 0xa09   : > { %v5083_v59 = vpop.xlane.xlu1 %5082 }
 0xa0a   : > { %v5090_v46 = vmul.f32 %v5083_v59, %v7566_v36 }
 0xa0c   : > { %v5093_v29 = vadd.f32 1e-05, %v5090_v46 }
 0xa0e   : > { %6400 = vrsqrt.f32 %v5093_v29  ;;  %vm5102_vm2 = vweird.f32 %v5093_v29 }
 0xa11   : > { %v5086_v10 = vpop.xlane.xlu2 %5085 }
 0xa12   : > { %v5091_v26 = vmul.f32 %v5086_v10, %v7566_v36 }
 0xa14   : > { %v6401_v63 = vpop.eup %6400  ;;  %v5094_v42 = vadd.f32 1e-05, %v5091_v26 }
 0xa15   : > { %v5097_v60 = vmul.f32 %v6401_v63, %v5093_v29  ;;  %vm5103_vm0 = vweird.f32 %v6401_v63 }
 0xa16   : > { %6402 = vrsqrt.f32 %v5094_v42  ;;  %vm5104_vm3 = vmor %vm5102_vm2, %vm5103_vm0  ;;  %vm5112_vm5 = vweird.f32 %v5094_v42 }
 0xa17   : > { %v5098_v39 = vmul.f32 %v6401_v63, %v5097_v60 }
 0xa19   : > { %v5099_v0 = vmul.f32 0.5, %v5098_v39  ;;  %v5089_v51 = vpop.xlane.xlu0 %5088 }
 0xa1a   : > { %v5092_v18 = vmul.f32 %v5089_v51, %v7566_v36  ;;  %v6343_v36 = vld [vmem:[%s711_s20] ss:$0 sm:$0xff]  ;;  %s8052_s20 = sld [smem:[#allocation8_spill]] (!%p6089_p5) }
 0xa1b   : > { %v5100_v30 = vsub.f32 1.5, %v5099_v0 }
 0xa1c   : > { %v6403_v21 = vpop.eup %6402  ;;  %v5095_v61 = vadd.f32 1e-05, %v5092_v18 }
 0xa1d   : > { %v5101_v41 = vmul.f32 %v6401_v63, %v5100_v30  ;;  %v5107_v2 = vmul.f32 %v6403_v21, %v5094_v42  ;;  %vm5113_vm4 = vweird.f32 %v6403_v21 }
 0xa1e   : > { %6404 = vrsqrt.f32 %v5095_v61  ;;  %vm5114_vm6 = vmor %vm5112_vm5, %vm5113_vm4  ;;  %vm5122_vm8 = vweird.f32 %v5095_v61 }
 0xa1f   : > { %v5105_v40 = vsel %vm5104_vm3, %v6401_v63, %v5101_v41  ;;  %v5108_v1 = vmul.f32 %v6403_v21, %v5107_v2 }
 0xa20   : > { %v5126_v35 = vmul.f32 %v5105_v40, %v5075_v32 }
 0xa21   : > { %v5109_v9 = vmul.f32 0.5, %v5108_v1 }
 0xa22   : > { %v5132_v25 = vmul.f32 %v6342_v47, %v5126_v35 }
 0xa23   : > { %v5110_v53 = vsub.f32 1.5, %v5109_v9 }
 0xa24   : > { %v6405_v13 = vpop.eup %6404  ;;  %v5138_v15 = vadd.f32 %v6343_v36, %v5132_v25 }
 0xa25   : > { %v5111_v58 = vmul.f32 %v6403_v21, %v5110_v53  ;;  %v5117_v12 = vmul.f32 %v6405_v13, %v5095_v61  ;;  %vm5123_vm7 = vweird.f32 %v6405_v13 }
 0xa26   : > { %5141 = vst.msk [vmem:[#allocation2] sm:$0xff] %vm758_vm1, %v5138_v15  ;;  %vm5124_vm9 = vmor %vm5122_vm8, %vm5123_vm7 }
 0xa27   : > { %v5115_v24 = vsel %vm5114_vm6, %v6403_v21, %v5111_v58  ;;  %v5118_v50 = vmul.f32 %v6405_v13, %v5117_v12 }
 0xa28   : > { %v5127_v7 = vmul.f32 %v5115_v24, %v5076_v17 }
 0xa29   : > { %v5119_v62 = vmul.f32 0.5, %v5118_v50 }
 0xa2a   : > { %v5133_v56 = vmul.f32 %v6342_v47, %v5127_v7 }
 0xa2b   : > { %v5120_v57 = vsub.f32 1.5, %v5119_v62 }
 0xa2c   : > { %v5139_v4 = vadd.f32 %v6343_v36, %v5133_v56 }
 0xa2d   : > { %v5121_v20 = vmul.f32 %v6405_v13, %v5120_v57 }
 0xa2e   : > { %5142 = vst.msk [vmem:[#allocation2 + $0x8] sm:$0xff] %vm758_vm1, %v5139_v4 }
 0xa2f   : > { %v5125_v52 = vsel %vm5124_vm9, %v6405_v13, %v5121_v20 }
 0xa30   : > { %v5128_v16 = vmul.f32 %v5125_v52, %v5077_v8 }
 0xa32   : > { %v5134_v55 = vmul.f32 %v6342_v47, %v5128_v16  ;;  %5147 = sbr.rel (%p6089_p5) target bundleno = 2753 (0xac1), region = 96 }
 0xa34   : > { %v5140_v43 = vadd.f32 %v6343_v36, %v5134_v55 }
 0xa36   : > { %5143 = vst.msk [vmem:[#allocation2 + $0x10] sm:$0xff] %vm758_vm1, %v5140_v43 }
 0xa37   : > { %v5151_v31 = vld [vmem:[%s8052_s20] sm:$0xff]  ;;  %v5149_v14 = vld [vmem:[#allocation3] sm:$0x1]  ;;  %v5177_v48 = vlaneseq  ;;  %vm5184_vm10 = vcmask 1040384   ;;  %vm5186_vm11 = vcmask 58368  }
 0xa38   : > { %v6409_v34 = vld [vmem:[%s8053_s26] ss:$0 sm:$0xff]  ;;  %v5168_v11 = vmul.f32 %v5151_v31, %v5140_v43  ;;  %v5152_v3 = vmul.f32 %v5151_v31, %v5138_v15  ;;  %6264 = vpush %v5149_v14  ;;  %v5162_v22 = vmul.f32 %v5151_v31, %v5139_v4 }
 0xa39   : > { %v5178_v33 = vand.u32 127, %v5177_v48 }
 0xa3a   : > { %v5169_v5 = vmul.f32 %v6409_v34, %v5168_v11  ;;  %v5156_v28 = vmul.f32 %v6409_v34, %v5152_v3  ;;  %v5163_v32 = vmul.f32 %v6409_v34, %v5162_v22 }
 0xa3c   : > { %v5170_v54 = vsel %vm758_vm1, %v5169_v5, 0.0  ;;  %v5157_v27 = vsel %vm758_vm1, %v5156_v28, 0.0  ;;  %v5164_v19 = vsel %vm758_vm1, %v5163_v32, 0.0 }
 0xa3d   : > { %5171 = vadd.xlane.f32.xlu1 %v5170_v54  ;;  %5158 = vadd.xlane.f32.xlu0 %v5157_v27 }
 0xa45   : > { %5165 = vadd.xlane.f32.xlu0 %v5164_v19 }
 0xa69   : > { %s6265_s0 = spop %6264 }
 0xa6a   : > { %v5160_v23 = vstv %s6265_s0 }
 0xab0   : > { %v5159_v37 = vpop.xlane.xlu0 %5158  ;;  %v5172_v45 = vpop.xlane.xlu1 %5171 }
 0xab1   : > { %v5173_v17 = vadd.f32 %v5172_v45, %v5160_v23  ;;  %v5161_v44 = vadd.f32 %v5160_v23, %v5159_v37 }
 0xab3   : > { %v5175_v8 = vadd.f32 %v5173_v17, %v5161_v44 }
 0xab5   : > { %v5182_v59 = vperm.slane %v5175_v8, %v5178_v33 }
 0xab8   : > { %v5166_v38 = vpop.xlane.xlu0 %5165 }
 0xab9   : > { %v5167_v6 = vadd.f32 %v5166_v38, %v5160_v23 }
 0xabb   : > { %v5174_v49 = vadd.f32 %v5167_v6, %v5161_v44 }
 0xabd   : > { %v5179_v46 = vperm.slane %v5174_v49, %v5178_v33 }
 0xabf   : > { %v5185_v29 = vsel %vm5184_vm10, %v5179_v46, %v5182_v59 }
 0xac0   : > { %5187 = vst.msk [vmem:[#allocation4] sm:$0x3] %vm5186_vm11, %v5185_v29 }
 0xac1 PF: > { %p6270_p6 = scmp.eq.s32.totalorder %s6561_s27, 1  ;;  %s6461_s17 = smov [#allocation4]  }
 0xac2   : > { %s5194_s29 = sshll.u32 %s6461_s17, 4  ;;  %s8054_s19 = sld [smem:[#allocation14_spill]]  ;;  %s5195_s29 = int_to_ptr.vmem [resolvable:$true] %s5194_s29 }
 0xac8   : > { %s5196_s28 = sshll.u32 %s8054_s19, 4  ;;  %s5197_s28 = int_to_ptr.hbm [resolvable:$true] %s5196_s28 }
 0xac9   : > { %6267 = dma.vmem_to_hbm [thread:$0]  (%p6270_p6), %s5195_s29, 32, %s5197_s28, [#allocation5]  }
 0xaca   : > { %6443 = dma.done.wait (%p6270_p6), [#allocation5], 32  }
 0xacb   : > { %6445 = vsyncadd (%p6270_p6), [#allocation5], 4294967264 }
 0xacc PF: > { %s8055_s3 = sld [smem:[#allocation7_spill]] }
 0xad2   : > { %s30_s26 = sadd.s32 1, %s8055_s3  }
 0xad3   : > { %p27_p7 = scmp.ge.s32.totalorder %s30_s26, 4  }
 0xad5   :  { %29 = sbr.rel (!%p27_p7) target bundleno = 9 (0x9), region = 156 }
 0xada   :  { %5210 = vsyncpa [#allocation5], 1 }
 0xadb   :  { %5212 = vsyncpa [#allocation5 + $0x1], 1 }

</bundles_post_ra>
